<compile_context>
chip_gen: v6e
topology: v6e:2x2x1
jax: 0.10.0
libtpu: 0.0.40
codegen_flags: <defaults>
</compile_context>

<pallas_src>
import functools

import jax
import jax.numpy as jnp
import numpy as np
from jax import lax
from jax.experimental import pallas as pl
from jax.experimental.pallas import tpu as pltpu


# ----------------------------------------------------------------------------
# Fused kernel: ReLU -> zero-pad (VMEM) -> dilated depthwise + pointwise conv
# (per-tap MXU matmuls, register accumulator) -> BatchNorm (stats + affine).
# ----------------------------------------------------------------------------
def _dilconv_fused_kernel(x_ref, w_ref, g_ref, b_ref, o_ref, xpad_ref,
                          *, K, dil, pad, Ho, Wo, eps):
    N, H, W, C = x_ref.shape
    C_out = o_ref.shape[-1]
    M = Ho * Wo
    inv_cnt = 1.0 / float(N * M)

    # Pad border is zero for every image -> zero the scratch once, up front.
    xpad_ref[...] = jnp.zeros_like(xpad_ref)

    s1 = jnp.zeros((1, C_out), jnp.float32)   # BN: sum over (N, Ho, Wo)
    s2 = jnp.zeros((1, C_out), jnp.float32)   # BN: sum of squares

    for n in range(N):                         # N is tiny & static -> unrolled
        # op[0] ReLU + zero-pad, entirely in VMEM (padding never touches HBM).
        xpad_ref[pad:pad + H, pad:pad + W, :] = jnp.maximum(
            x_ref[n].astype(jnp.float32), 0.0)

        # op[1] dilated depthwise + op[2] pointwise conv, fused: for each of
        # the K*K taps, one MXU matmul against the combined weight
        # w_taps[t, c, co] = w_dw[c, kh, kw] * w_pw[co, c], accumulated in
        # registers.  The (Ho, Wo, C) -> (Ho*Wo, C) reshape only collapses
        # leading dims (lane dim unchanged) so it is a pure tile relabel.
        acc = jnp.zeros((M, C_out), jnp.float32)
        for kh in range(K):
            for kw in range(K):
                t = kh * K + kw
                sl = xpad_ref[kh * dil:kh * dil + Ho,
                              kw * dil:kw * dil + Wo, :].reshape(M, C)
                acc = acc + jnp.dot(sl, w_ref[t],
                                    preferred_element_type=jnp.float32)

        o_ref[n * M:(n + 1) * M, :] = acc
        s1 = s1 + jnp.sum(acc, axis=0, keepdims=True)
        s2 = s2 + jnp.sum(acc * acc, axis=0, keepdims=True)

    # op[3] BatchNorm2d (training-mode batch statistics, biased variance).
    mean = s1 * inv_cnt                                    # (1, C_out)
    var = s2 * inv_cnt - mean * mean
    scale = g_ref[...] * lax.rsqrt(var + eps)
    shift = b_ref[...] - mean * scale

    # Affine pass in per-image chunks (keeps live vregs ~ M/8).
    for n in range(N):
        blk = o_ref[n * M:(n + 1) * M, :]
        o_ref[n * M:(n + 1) * M, :] = blk * scale + shift


# ----------------------------------------------------------------------------
# Glue
# ----------------------------------------------------------------------------
def _combined_tap_weights(w_dw, w_pw):
    """w_dw: (C,1,K,K) (PyTorch depthwise); w_pw: (C_out,C,1,1).

    Returns (K*K, C, C_out) with w[t, c, co] = w_dw[c,0,kh,kw] * w_pw[co,c],
    so depthwise-then-pointwise collapses into per-tap matmuls.
    """
    C, _, K, _ = w_dw.shape
    wdw = jnp.transpose(w_dw[:, 0], (1, 2, 0))              # (K, K, C)
    wpw = jnp.transpose(w_pw[:, :, 0, 0], (1, 0))           # (C, C_out)
    return (wdw[..., None] * wpw[None, None]).reshape(K * K, C, wpw.shape[1])


def dilconv_forward(x, w_dw, w_pw, gamma, beta, *, stride=1, padding=2,
                    dilation=2, eps=1e-5):
    """DilConv forward (NHWC). x: (N, H, W, C_in) -> (N, Ho, Wo, C_out)."""
    assert stride == 1, "TODO(synk): stride > 1 not wired up"
    N, H, W, C = x.shape
    K = w_dw.shape[-1]
    C_out = w_pw.shape[0]
    Hp, Wp = H + 2 * padding, W + 2 * padding
    Ho = Hp - dilation * (K - 1)               # stride == 1
    Wo = Wp - dilation * (K - 1)
    M = Ho * Wo

    w_taps = _combined_tap_weights(w_dw.astype(jnp.float32),
                                   w_pw.astype(jnp.float32))
    g2 = gamma.astype(jnp.float32).reshape(1, C_out)
    b2 = beta.astype(jnp.float32).reshape(1, C_out)

    kernel = functools.partial(_dilconv_fused_kernel, K=K, dil=dilation,
                               pad=padding, Ho=Ho, Wo=Wo, eps=eps)
    out_flat = pl.pallas_call(
        kernel,
        out_shape=jax.ShapeDtypeStruct((N * M, C_out), jnp.float32),
        grid=(1,),
        in_specs=[
            pl.BlockSpec((N, H, W, C), lambda i: (0, 0, 0, 0)),
            pl.BlockSpec((K * K, C, C_out), lambda i: (0, 0, 0)),
            pl.BlockSpec((1, C_out), lambda i: (0, 0)),
            pl.BlockSpec((1, C_out), lambda i: (0, 0)),
        ],
        out_specs=pl.BlockSpec((N * M, C_out), lambda i: (0, 0)),
        scratch_shapes=[pltpu.VMEM((Hp, Wp, C), jnp.float32)],  # padded ReLU'd x
        compiler_params=pltpu.CompilerParams(
            dimension_semantics=("arbitrary",)),
    )(x.astype(jnp.float32), w_taps, g2, b2)

    # Free (metadata-only) reshape back to NHWC.
    return out_flat.reshape(N, Ho, Wo, C_out)


# ----------------------------------------------------------------------------
# Pure-JAX reference (XLA convs) for correctness check
# ----------------------------------------------------------------------------
def _ref_forward(x, w_dw, w_pw, gamma, beta, *, stride=1, padding=2,
                 dilation=2, eps=1e-5):
    C = x.shape[-1]
    xr = jnp.maximum(x, 0.0)
    wd = jnp.transpose(w_dw[:, 0], (1, 2, 0))[:, :, None, :]   # (K,K,1,C) HWIO
    y = lax.conv_general_dilated(
        xr, wd, (stride, stride), [(padding, padding), (padding, padding)],
        rhs_dilation=(dilation, dilation),
        dimension_numbers=("NHWC", "HWIO", "NHWC"), feature_group_count=C)
    wp = jnp.transpose(w_pw[:, :, 0, 0], (1, 0))[None, None]   # (1,1,C,C_out)
    y = lax.conv_general_dilated(
        y, wp, (1, 1), "VALID", dimension_numbers=("NHWC", "HWIO", "NHWC"))
    m = y.mean(axis=(0, 1, 2), keepdims=True)
    v = ((y - m) ** 2).mean(axis=(0, 1, 2), keepdims=True)
    return (y - m) * lax.rsqrt(v + eps) * gamma + beta


if __name__ == "__main__":
    # Standard DARTS dil_conv_3x3 config (normal cell): K=3, stride=1, dil=2, pad=2.
    N, H, W = 2, 16, 16
    C_in, C_out = 8, 16
    K, stride, dilation = 3, 1, 2
    padding = dilation * (K - 1) // 2          # = 2 -> 'same' output size

    key = jax.random.PRNGKey(0)
    k0, k1, k2, k3, k4 = jax.random.split(key, 5)
    x = jax.random.normal(k0, (N, H, W, C_in), jnp.float32)               # NHWC
    w_dw = 0.1 * jax.random.normal(k1, (C_in, 1, K, K), jnp.float32)      # PyTorch depthwise
    w_pw = 0.1 * jax.random.normal(k2, (C_out, C_in, 1, 1), jnp.float32)  # PyTorch pointwise
    gamma = 1.0 + 0.1 * jax.random.normal(k3, (C_out,), jnp.float32)
    beta = 0.1 * jax.random.normal(k4, (C_out,), jnp.float32)

    fwd = jax.jit(functools.partial(dilconv_forward, stride=stride,
                                    padding=padding, dilation=dilation))
    out = jax.block_until_ready(fwd(x, w_dw, w_pw, gamma, beta))
    assert out.shape == (N, H, W, C_out), out.shape

    ref = jax.block_until_ready(
        _ref_forward(x, w_dw, w_pw, gamma, beta, stride=stride,
                     padding=padding, dilation=dilation))
    np.testing.assert_allclose(np.asarray(out), np.asarray(ref),
                               rtol=1e-4, atol=1e-4)

    print("KERNEL_OK")
</pallas_src>

<mosaic_0001>
module attributes {stable_mosaic.version = 11 : i64} {
  func.func @_dilconv_fused_kernel(%arg0: i32, %arg1: memref<2x16x16x8xf32, #tpu.memory_space<vmem>>, %arg2: memref<9x8x16xf32, #tpu.memory_space<vmem>>, %arg3: memref<1x16xf32, #tpu.memory_space<vmem>>, %arg4: memref<1x16xf32, #tpu.memory_space<vmem>>, %arg5: memref<512x16xf32, #tpu.memory_space<vmem>>, %arg6: memref<20x20x8xf32, #tpu.memory_space<vmem>>) attributes {dimension_semantics = [#tpu.dimension_semantics<arbitrary>], iteration_bounds = array<i64: 1>, scalar_prefetch = 0 : i64, scratch_operands = 1 : i64, tpu.core_type = #tpu.core_type<tc>, window_params = [{pipeline_mode = #tpu.pipeline_mode<synchronous>, transform_indices = @transform_0, window_bounds = array<i64: 2, 16, 16, 8>}, {pipeline_mode = #tpu.pipeline_mode<synchronous>, transform_indices = @transform_1, window_bounds = array<i64: 9, 8, 16>}, {pipeline_mode = #tpu.pipeline_mode<synchronous>, transform_indices = @transform_2, window_bounds = array<i64: 1, 16>}, {pipeline_mode = #tpu.pipeline_mode<synchronous>, transform_indices = @transform_3, window_bounds = array<i64: 1, 16>}, {pipeline_mode = #tpu.pipeline_mode<synchronous>, transform_indices = @transform_4, window_bounds = array<i64: 512, 16>}]} {
    %cst = arith.constant 0.000000e+00 : f32
    %0 = vector.broadcast %cst : f32 to vector<20x20x8xf32>
    %c0 = arith.constant 0 : index
    %c0_0 = arith.constant 0 : index
    %c0_1 = arith.constant 0 : index
    %1 = vector.load %arg6[%c0, %c0_0, %c0_1] : memref<20x20x8xf32, #tpu.memory_space<vmem>>, vector<20x20x8xf32>
    tpu.vector_store %arg6[%c0, %c0_0, %c0_1], %0 {strides = array<i32>} : memref<20x20x8xf32, #tpu.memory_space<vmem>>, vector<20x20x8xf32>,
    %cst_2 = arith.constant 0.000000e+00 : f32
    %2 = vector.broadcast %cst_2 : f32 to vector<1x16xf32>
    %cst_3 = arith.constant 0.000000e+00 : f32
    %3 = vector.broadcast %cst_3 : f32 to vector<1x16xf32>
    %c0_4 = arith.constant 0 : index
    %c0_5 = arith.constant 0 : index
    %c0_6 = arith.constant 0 : index
    %c0_7 = arith.constant 0 : index
    %4 = vector.load %arg1[%c0_4, %c0_5, %c0_6, %c0_7] : memref<2x16x16x8xf32, #tpu.memory_space<vmem>>, vector<1x16x16x8xf32>
    %5 = vector.shape_cast %4 : vector<1x16x16x8xf32> to vector<16x16x8xf32>
    %cst_8 = arith.constant 0.000000e+00 : f32
    %6 = vector.broadcast %cst_8 : f32 to vector<16x16x8xf32>
    %7 = arith.maximumf %5, %6 : vector<16x16x8xf32>
    %c2 = arith.constant 2 : index
    %c2_9 = arith.constant 2 : index
    %c0_10 = arith.constant 0 : index
    %8 = vector.load %arg6[%c2, %c2_9, %c0_10] : memref<20x20x8xf32, #tpu.memory_space<vmem>>, vector<16x16x8xf32>
    tpu.vector_store %arg6[%c2, %c2_9, %c0_10], %7 {strides = array<i32>} : memref<20x20x8xf32, #tpu.memory_space<vmem>>, vector<16x16x8xf32>,
    %cst_11 = arith.constant 0.000000e+00 : f32
    %9 = vector.broadcast %cst_11 : f32 to vector<256x16xf32>
    %c0_12 = arith.constant 0 : index
    %c0_13 = arith.constant 0 : index
    %c0_14 = arith.constant 0 : index
    %10 = vector.load %arg6[%c0_12, %c0_13, %c0_14] : memref<20x20x8xf32, #tpu.memory_space<vmem>>, vector<16x16x8xf32>
    %11 = vector.shape_cast %10 : vector<16x16x8xf32> to vector<256x8xf32>
    %c0_15 = arith.constant 0 : index
    %c0_16 = arith.constant 0 : index
    %c0_17 = arith.constant 0 : index
    %12 = vector.load %arg2[%c0_15, %c0_16, %c0_17] : memref<9x8x16xf32, #tpu.memory_space<vmem>>, vector<1x8x16xf32>
    %13 = vector.shape_cast %12 : vector<1x8x16xf32> to vector<8x16xf32>
    %cst_18 = arith.constant dense<0.000000e+00> : vector<256x16xf32>
    %14 = tpu.matmul %11, %13, %cst_18 {dimension_numbers = #tpu.dot_dimension_numbers<[1], [0], [0], [1], [0, 0, 1, 1], [], []>} : vector<256x8xf32>, vector<8x16xf32>, vector<256x16xf32> -> vector<256x16xf32>
    %15 = arith.addf %9, %14 : vector<256x16xf32>
    %c0_19 = arith.constant 0 : index
    %c2_20 = arith.constant 2 : index
    %c0_21 = arith.constant 0 : index
    %16 = vector.load %arg6[%c0_19, %c2_20, %c0_21] : memref<20x20x8xf32, #tpu.memory_space<vmem>>, vector<16x16x8xf32>
    %17 = vector.shape_cast %16 : vector<16x16x8xf32> to vector<256x8xf32>
    %c1 = arith.constant 1 : index
    %c0_22 = arith.constant 0 : index
    %c0_23 = arith.constant 0 : index
    %18 = vector.load %arg2[%c1, %c0_22, %c0_23] : memref<9x8x16xf32, #tpu.memory_space<vmem>>, vector<1x8x16xf32>
    %19 = vector.shape_cast %18 : vector<1x8x16xf32> to vector<8x16xf32>
    %cst_24 = arith.constant dense<0.000000e+00> : vector<256x16xf32>
    %20 = tpu.matmul %17, %19, %cst_24 {dimension_numbers = #tpu.dot_dimension_numbers<[1], [0], [0], [1], [0, 0, 1, 1], [], []>} : vector<256x8xf32>, vector<8x16xf32>, vector<256x16xf32> -> vector<256x16xf32>
    %21 = arith.addf %15, %20 : vector<256x16xf32>
    %c0_25 = arith.constant 0 : index
    %c4 = arith.constant 4 : index
    %c0_26 = arith.constant 0 : index
    %22 = vector.load %arg6[%c0_25, %c4, %c0_26] : memref<20x20x8xf32, #tpu.memory_space<vmem>>, vector<16x16x8xf32>
    %23 = vector.shape_cast %22 : vector<16x16x8xf32> to vector<256x8xf32>
    %c2_27 = arith.constant 2 : index
    %c0_28 = arith.constant 0 : index
    %c0_29 = arith.constant 0 : index
    %24 = vector.load %arg2[%c2_27, %c0_28, %c0_29] : memref<9x8x16xf32, #tpu.memory_space<vmem>>, vector<1x8x16xf32>
    %25 = vector.shape_cast %24 : vector<1x8x16xf32> to vector<8x16xf32>
    %cst_30 = arith.constant dense<0.000000e+00> : vector<256x16xf32>
    %26 = tpu.matmul %23, %25, %cst_30 {dimension_numbers = #tpu.dot_dimension_numbers<[1], [0], [0], [1], [0, 0, 1, 1], [], []>} : vector<256x8xf32>, vector<8x16xf32>, vector<256x16xf32> -> vector<256x16xf32>
    %27 = arith.addf %21, %26 : vector<256x16xf32>
    %c2_31 = arith.constant 2 : index
    %c0_32 = arith.constant 0 : index
    %c0_33 = arith.constant 0 : index
    %28 = vector.load %arg6[%c2_31, %c0_32, %c0_33] : memref<20x20x8xf32, #tpu.memory_space<vmem>>, vector<16x16x8xf32>
    %29 = vector.shape_cast %28 : vector<16x16x8xf32> to vector<256x8xf32>
    %c3 = arith.constant 3 : index
    %c0_34 = arith.constant 0 : index
    %c0_35 = arith.constant 0 : index
    %30 = vector.load %arg2[%c3, %c0_34, %c0_35] : memref<9x8x16xf32, #tpu.memory_space<vmem>>, vector<1x8x16xf32>
    %31 = vector.shape_cast %30 : vector<1x8x16xf32> to vector<8x16xf32>
    %cst_36 = arith.constant dense<0.000000e+00> : vector<256x16xf32>
    %32 = tpu.matmul %29, %31, %cst_36 {dimension_numbers = #tpu.dot_dimension_numbers<[1], [0], [0], [1], [0, 0, 1, 1], [], []>} : vector<256x8xf32>, vector<8x16xf32>, vector<256x16xf32> -> vector<256x16xf32>
    %33 = arith.addf %27, %32 : vector<256x16xf32>
    %c2_37 = arith.constant 2 : index
    %c2_38 = arith.constant 2 : index
    %c0_39 = arith.constant 0 : index
    %34 = vector.load %arg6[%c2_37, %c2_38, %c0_39] : memref<20x20x8xf32, #tpu.memory_space<vmem>>, vector<16x16x8xf32>
    %35 = vector.shape_cast %34 : vector<16x16x8xf32> to vector<256x8xf32>
    %c4_40 = arith.constant 4 : index
    %c0_41 = arith.constant 0 : index
    %c0_42 = arith.constant 0 : index
    %36 = vector.load %arg2[%c4_40, %c0_41, %c0_42] : memref<9x8x16xf32, #tpu.memory_space<vmem>>, vector<1x8x16xf32>
    %37 = vector.shape_cast %36 : vector<1x8x16xf32> to vector<8x16xf32>
    %cst_43 = arith.constant dense<0.000000e+00> : vector<256x16xf32>
    %38 = tpu.matmul %35, %37, %cst_43 {dimension_numbers = #tpu.dot_dimension_numbers<[1], [0], [0], [1], [0, 0, 1, 1], [], []>} : vector<256x8xf32>, vector<8x16xf32>, vector<256x16xf32> -> vector<256x16xf32>
    %39 = arith.addf %33, %38 : vector<256x16xf32>
    %c2_44 = arith.constant 2 : index
    %c4_45 = arith.constant 4 : index
    %c0_46 = arith.constant 0 : index
    %40 = vector.load %arg6[%c2_44, %c4_45, %c0_46] : memref<20x20x8xf32, #tpu.memory_space<vmem>>, vector<16x16x8xf32>
    %41 = vector.shape_cast %40 : vector<16x16x8xf32> to vector<256x8xf32>
    %c5 = arith.constant 5 : index
    %c0_47 = arith.constant 0 : index
    %c0_48 = arith.constant 0 : index
    %42 = vector.load %arg2[%c5, %c0_47, %c0_48] : memref<9x8x16xf32, #tpu.memory_space<vmem>>, vector<1x8x16xf32>
    %43 = vector.shape_cast %42 : vector<1x8x16xf32> to vector<8x16xf32>
    %cst_49 = arith.constant dense<0.000000e+00> : vector<256x16xf32>
    %44 = tpu.matmul %41, %43, %cst_49 {dimension_numbers = #tpu.dot_dimension_numbers<[1], [0], [0], [1], [0, 0, 1, 1], [], []>} : vector<256x8xf32>, vector<8x16xf32>, vector<256x16xf32> -> vector<256x16xf32>
    %45 = arith.addf %39, %44 : vector<256x16xf32>
    %c4_50 = arith.constant 4 : index
    %c0_51 = arith.constant 0 : index
    %c0_52 = arith.constant 0 : index
    %46 = vector.load %arg6[%c4_50, %c0_51, %c0_52] : memref<20x20x8xf32, #tpu.memory_space<vmem>>, vector<16x16x8xf32>
    %47 = vector.shape_cast %46 : vector<16x16x8xf32> to vector<256x8xf32>
    %c6 = arith.constant 6 : index
    %c0_53 = arith.constant 0 : index
    %c0_54 = arith.constant 0 : index
    %48 = vector.load %arg2[%c6, %c0_53, %c0_54] : memref<9x8x16xf32, #tpu.memory_space<vmem>>, vector<1x8x16xf32>
    %49 = vector.shape_cast %48 : vector<1x8x16xf32> to vector<8x16xf32>
    %cst_55 = arith.constant dense<0.000000e+00> : vector<256x16xf32>
    %50 = tpu.matmul %47, %49, %cst_55 {dimension_numbers = #tpu.dot_dimension_numbers<[1], [0], [0], [1], [0, 0, 1, 1], [], []>} : vector<256x8xf32>, vector<8x16xf32>, vector<256x16xf32> -> vector<256x16xf32>
    %51 = arith.addf %45, %50 : vector<256x16xf32>
    %c4_56 = arith.constant 4 : index
    %c2_57 = arith.constant 2 : index
    %c0_58 = arith.constant 0 : index
    %52 = vector.load %arg6[%c4_56, %c2_57, %c0_58] : memref<20x20x8xf32, #tpu.memory_space<vmem>>, vector<16x16x8xf32>
    %53 = vector.shape_cast %52 : vector<16x16x8xf32> to vector<256x8xf32>
    %c7 = arith.constant 7 : index
    %c0_59 = arith.constant 0 : index
    %c0_60 = arith.constant 0 : index
    %54 = vector.load %arg2[%c7, %c0_59, %c0_60] : memref<9x8x16xf32, #tpu.memory_space<vmem>>, vector<1x8x16xf32>
    %55 = vector.shape_cast %54 : vector<1x8x16xf32> to vector<8x16xf32>
    %cst_61 = arith.constant dense<0.000000e+00> : vector<256x16xf32>
    %56 = tpu.matmul %53, %55, %cst_61 {dimension_numbers = #tpu.dot_dimension_numbers<[1], [0], [0], [1], [0, 0, 1, 1], [], []>} : vector<256x8xf32>, vector<8x16xf32>, vector<256x16xf32> -> vector<256x16xf32>
    %57 = arith.addf %51, %56 : vector<256x16xf32>
    %c4_62 = arith.constant 4 : index
    %c4_63 = arith.constant 4 : index
    %c0_64 = arith.constant 0 : index
    %58 = vector.load %arg6[%c4_62, %c4_63, %c0_64] : memref<20x20x8xf32, #tpu.memory_space<vmem>>, vector<16x16x8xf32>
    %59 = vector.shape_cast %58 : vector<16x16x8xf32> to vector<256x8xf32>
    %c8 = arith.constant 8 : index
    %c0_65 = arith.constant 0 : index
    %c0_66 = arith.constant 0 : index
    %60 = vector.load %arg2[%c8, %c0_65, %c0_66] : memref<9x8x16xf32, #tpu.memory_space<vmem>>, vector<1x8x16xf32>
    %61 = vector.shape_cast %60 : vector<1x8x16xf32> to vector<8x16xf32>
    %cst_67 = arith.constant dense<0.000000e+00> : vector<256x16xf32>
    %62 = tpu.matmul %59, %61, %cst_67 {dimension_numbers = #tpu.dot_dimension_numbers<[1], [0], [0], [1], [0, 0, 1, 1], [], []>} : vector<256x8xf32>, vector<8x16xf32>, vector<256x16xf32> -> vector<256x16xf32>
    %63 = arith.addf %57, %62 : vector<256x16xf32>
    %c0_68 = arith.constant 0 : index
    %c0_69 = arith.constant 0 : index
    %64 = vector.load %arg5[%c0_68, %c0_69] : memref<512x16xf32, #tpu.memory_space<vmem>>, vector<256x16xf32>
    tpu.vector_store %arg5[%c0_68, %c0_69], %63 {strides = array<i32>} : memref<512x16xf32, #tpu.memory_space<vmem>>, vector<256x16xf32>,
    %cst_70 = arith.constant dense<0.000000e+00> : vector<16xf32>
    %65 = vector.multi_reduction <add>, %63, %cst_70 [0] : vector<256x16xf32> to vector<16xf32>
    %66 = vector.shape_cast %65 : vector<16xf32> to vector<1x16xf32>
    %67 = arith.addf %2, %66 : vector<1x16xf32>
    %68 = arith.mulf %63, %63 : vector<256x16xf32>
    %cst_71 = arith.constant dense<0.000000e+00> : vector<16xf32>
    %69 = vector.multi_reduction <add>, %68, %cst_71 [0] : vector<256x16xf32> to vector<16xf32>
    %70 = vector.shape_cast %69 : vector<16xf32> to vector<1x16xf32>
    %71 = arith.addf %3, %70 : vector<1x16xf32>
    %c1_72 = arith.constant 1 : index
    %c0_73 = arith.constant 0 : index
    %c0_74 = arith.constant 0 : index
    %c0_75 = arith.constant 0 : index
    %72 = vector.load %arg1[%c1_72, %c0_73, %c0_74, %c0_75] : memref<2x16x16x8xf32, #tpu.memory_space<vmem>>, vector<1x16x16x8xf32>
    %73 = vector.shape_cast %72 : vector<1x16x16x8xf32> to vector<16x16x8xf32>
    %cst_76 = arith.constant 0.000000e+00 : f32
    %74 = vector.broadcast %cst_76 : f32 to vector<16x16x8xf32>
    %75 = arith.maximumf %73, %74 : vector<16x16x8xf32>
    %c2_77 = arith.constant 2 : index
    %c2_78 = arith.constant 2 : index
    %c0_79 = arith.constant 0 : index
    %76 = vector.load %arg6[%c2_77, %c2_78, %c0_79] : memref<20x20x8xf32, #tpu.memory_space<vmem>>, vector<16x16x8xf32>
    tpu.vector_store %arg6[%c2_77, %c2_78, %c0_79], %75 {strides = array<i32>} : memref<20x20x8xf32, #tpu.memory_space<vmem>>, vector<16x16x8xf32>,
    %cst_80 = arith.constant 0.000000e+00 : f32
    %77 = vector.broadcast %cst_80 : f32 to vector<256x16xf32>
    %c0_81 = arith.constant 0 : index
    %c0_82 = arith.constant 0 : index
    %c0_83 = arith.constant 0 : index
    %78 = vector.load %arg6[%c0_81, %c0_82, %c0_83] : memref<20x20x8xf32, #tpu.memory_space<vmem>>, vector<16x16x8xf32>
    %79 = vector.shape_cast %78 : vector<16x16x8xf32> to vector<256x8xf32>
    %c0_84 = arith.constant 0 : index
    %c0_85 = arith.constant 0 : index
    %c0_86 = arith.constant 0 : index
    %80 = vector.load %arg2[%c0_84, %c0_85, %c0_86] : memref<9x8x16xf32, #tpu.memory_space<vmem>>, vector<1x8x16xf32>
    %81 = vector.shape_cast %80 : vector<1x8x16xf32> to vector<8x16xf32>
    %cst_87 = arith.constant dense<0.000000e+00> : vector<256x16xf32>
    %82 = tpu.matmul %79, %81, %cst_87 {dimension_numbers = #tpu.dot_dimension_numbers<[1], [0], [0], [1], [0, 0, 1, 1], [], []>} : vector<256x8xf32>, vector<8x16xf32>, vector<256x16xf32> -> vector<256x16xf32>
    %83 = arith.addf %77, %82 : vector<256x16xf32>
    %c0_88 = arith.constant 0 : index
    %c2_89 = arith.constant 2 : index
    %c0_90 = arith.constant 0 : index
    %84 = vector.load %arg6[%c0_88, %c2_89, %c0_90] : memref<20x20x8xf32, #tpu.memory_space<vmem>>, vector<16x16x8xf32>
    %85 = vector.shape_cast %84 : vector<16x16x8xf32> to vector<256x8xf32>
    %c1_91 = arith.constant 1 : index
    %c0_92 = arith.constant 0 : index
    %c0_93 = arith.constant 0 : index
    %86 = vector.load %arg2[%c1_91, %c0_92, %c0_93] : memref<9x8x16xf32, #tpu.memory_space<vmem>>, vector<1x8x16xf32>
    %87 = vector.shape_cast %86 : vector<1x8x16xf32> to vector<8x16xf32>
    %cst_94 = arith.constant dense<0.000000e+00> : vector<256x16xf32>
    %88 = tpu.matmul %85, %87, %cst_94 {dimension_numbers = #tpu.dot_dimension_numbers<[1], [0], [0], [1], [0, 0, 1, 1], [], []>} : vector<256x8xf32>, vector<8x16xf32>, vector<256x16xf32> -> vector<256x16xf32>
    %89 = arith.addf %83, %88 : vector<256x16xf32>
    %c0_95 = arith.constant 0 : index
    %c4_96 = arith.constant 4 : index
    %c0_97 = arith.constant 0 : index
    %90 = vector.load %arg6[%c0_95, %c4_96, %c0_97] : memref<20x20x8xf32, #tpu.memory_space<vmem>>, vector<16x16x8xf32>
    %91 = vector.shape_cast %90 : vector<16x16x8xf32> to vector<256x8xf32>
    %c2_98 = arith.constant 2 : index
    %c0_99 = arith.constant 0 : index
    %c0_100 = arith.constant 0 : index
    %92 = vector.load %arg2[%c2_98, %c0_99, %c0_100] : memref<9x8x16xf32, #tpu.memory_space<vmem>>, vector<1x8x16xf32>
    %93 = vector.shape_cast %92 : vector<1x8x16xf32> to vector<8x16xf32>
    %cst_101 = arith.constant dense<0.000000e+00> : vector<256x16xf32>
    %94 = tpu.matmul %91, %93, %cst_101 {dimension_numbers = #tpu.dot_dimension_numbers<[1], [0], [0], [1], [0, 0, 1, 1], [], []>} : vector<256x8xf32>, vector<8x16xf32>, vector<256x16xf32> -> vector<256x16xf32>
    %95 = arith.addf %89, %94 : vector<256x16xf32>
    %c2_102 = arith.constant 2 : index
    %c0_103 = arith.constant 0 : index
    %c0_104 = arith.constant 0 : index
    %96 = vector.load %arg6[%c2_102, %c0_103, %c0_104] : memref<20x20x8xf32, #tpu.memory_space<vmem>>, vector<16x16x8xf32>
    %97 = vector.shape_cast %96 : vector<16x16x8xf32> to vector<256x8xf32>
    %c3_105 = arith.constant 3 : index
    %c0_106 = arith.constant 0 : index
    %c0_107 = arith.constant 0 : index
    %98 = vector.load %arg2[%c3_105, %c0_106, %c0_107] : memref<9x8x16xf32, #tpu.memory_space<vmem>>, vector<1x8x16xf32>
    %99 = vector.shape_cast %98 : vector<1x8x16xf32> to vector<8x16xf32>
    %cst_108 = arith.constant dense<0.000000e+00> : vector<256x16xf32>
    %100 = tpu.matmul %97, %99, %cst_108 {dimension_numbers = #tpu.dot_dimension_numbers<[1], [0], [0], [1], [0, 0, 1, 1], [], []>} : vector<256x8xf32>, vector<8x16xf32>, vector<256x16xf32> -> vector<256x16xf32>
    %101 = arith.addf %95, %100 : vector<256x16xf32>
    %c2_109 = arith.constant 2 : index
    %c2_110 = arith.constant 2 : index
    %c0_111 = arith.constant 0 : index
    %102 = vector.load %arg6[%c2_109, %c2_110, %c0_111] : memref<20x20x8xf32, #tpu.memory_space<vmem>>, vector<16x16x8xf32>
    %103 = vector.shape_cast %102 : vector<16x16x8xf32> to vector<256x8xf32>
    %c4_112 = arith.constant 4 : index
    %c0_113 = arith.constant 0 : index
    %c0_114 = arith.constant 0 : index
    %104 = vector.load %arg2[%c4_112, %c0_113, %c0_114] : memref<9x8x16xf32, #tpu.memory_space<vmem>>, vector<1x8x16xf32>
    %105 = vector.shape_cast %104 : vector<1x8x16xf32> to vector<8x16xf32>
    %cst_115 = arith.constant dense<0.000000e+00> : vector<256x16xf32>
    %106 = tpu.matmul %103, %105, %cst_115 {dimension_numbers = #tpu.dot_dimension_numbers<[1], [0], [0], [1], [0, 0, 1, 1], [], []>} : vector<256x8xf32>, vector<8x16xf32>, vector<256x16xf32> -> vector<256x16xf32>
    %107 = arith.addf %101, %106 : vector<256x16xf32>
    %c2_116 = arith.constant 2 : index
    %c4_117 = arith.constant 4 : index
    %c0_118 = arith.constant 0 : index
    %108 = vector.load %arg6[%c2_116, %c4_117, %c0_118] : memref<20x20x8xf32, #tpu.memory_space<vmem>>, vector<16x16x8xf32>
    %109 = vector.shape_cast %108 : vector<16x16x8xf32> to vector<256x8xf32>
    %c5_119 = arith.constant 5 : index
    %c0_120 = arith.constant 0 : index
    %c0_121 = arith.constant 0 : index
    %110 = vector.load %arg2[%c5_119, %c0_120, %c0_121] : memref<9x8x16xf32, #tpu.memory_space<vmem>>, vector<1x8x16xf32>
    %111 = vector.shape_cast %110 : vector<1x8x16xf32> to vector<8x16xf32>
    %cst_122 = arith.constant dense<0.000000e+00> : vector<256x16xf32>
    %112 = tpu.matmul %109, %111, %cst_122 {dimension_numbers = #tpu.dot_dimension_numbers<[1], [0], [0], [1], [0, 0, 1, 1], [], []>} : vector<256x8xf32>, vector<8x16xf32>, vector<256x16xf32> -> vector<256x16xf32>
    %113 = arith.addf %107, %112 : vector<256x16xf32>
    %c4_123 = arith.constant 4 : index
    %c0_124 = arith.constant 0 : index
    %c0_125 = arith.constant 0 : index
    %114 = vector.load %arg6[%c4_123, %c0_124, %c0_125] : memref<20x20x8xf32, #tpu.memory_space<vmem>>, vector<16x16x8xf32>
    %115 = vector.shape_cast %114 : vector<16x16x8xf32> to vector<256x8xf32>
    %c6_126 = arith.constant 6 : index
    %c0_127 = arith.constant 0 : index
    %c0_128 = arith.constant 0 : index
    %116 = vector.load %arg2[%c6_126, %c0_127, %c0_128] : memref<9x8x16xf32, #tpu.memory_space<vmem>>, vector<1x8x16xf32>
    %117 = vector.shape_cast %116 : vector<1x8x16xf32> to vector<8x16xf32>
    %cst_129 = arith.constant dense<0.000000e+00> : vector<256x16xf32>
    %118 = tpu.matmul %115, %117, %cst_129 {dimension_numbers = #tpu.dot_dimension_numbers<[1], [0], [0], [1], [0, 0, 1, 1], [], []>} : vector<256x8xf32>, vector<8x16xf32>, vector<256x16xf32> -> vector<256x16xf32>
    %119 = arith.addf %113, %118 : vector<256x16xf32>
    %c4_130 = arith.constant 4 : index
    %c2_131 = arith.constant 2 : index
    %c0_132 = arith.constant 0 : index
    %120 = vector.load %arg6[%c4_130, %c2_131, %c0_132] : memref<20x20x8xf32, #tpu.memory_space<vmem>>, vector<16x16x8xf32>
    %121 = vector.shape_cast %120 : vector<16x16x8xf32> to vector<256x8xf32>
    %c7_133 = arith.constant 7 : index
    %c0_134 = arith.constant 0 : index
    %c0_135 = arith.constant 0 : index
    %122 = vector.load %arg2[%c7_133, %c0_134, %c0_135] : memref<9x8x16xf32, #tpu.memory_space<vmem>>, vector<1x8x16xf32>
    %123 = vector.shape_cast %122 : vector<1x8x16xf32> to vector<8x16xf32>
    %cst_136 = arith.constant dense<0.000000e+00> : vector<256x16xf32>
    %124 = tpu.matmul %121, %123, %cst_136 {dimension_numbers = #tpu.dot_dimension_numbers<[1], [0], [0], [1], [0, 0, 1, 1], [], []>} : vector<256x8xf32>, vector<8x16xf32>, vector<256x16xf32> -> vector<256x16xf32>
    %125 = arith.addf %119, %124 : vector<256x16xf32>
    %c4_137 = arith.constant 4 : index
    %c4_138 = arith.constant 4 : index
    %c0_139 = arith.constant 0 : index
    %126 = vector.load %arg6[%c4_137, %c4_138, %c0_139] : memref<20x20x8xf32, #tpu.memory_space<vmem>>, vector<16x16x8xf32>
    %127 = vector.shape_cast %126 : vector<16x16x8xf32> to vector<256x8xf32>
    %c8_140 = arith.constant 8 : index
    %c0_141 = arith.constant 0 : index
    %c0_142 = arith.constant 0 : index
    %128 = vector.load %arg2[%c8_140, %c0_141, %c0_142] : memref<9x8x16xf32, #tpu.memory_space<vmem>>, vector<1x8x16xf32>
    %129 = vector.shape_cast %128 : vector<1x8x16xf32> to vector<8x16xf32>
    %cst_143 = arith.constant dense<0.000000e+00> : vector<256x16xf32>
    %130 = tpu.matmul %127, %129, %cst_143 {dimension_numbers = #tpu.dot_dimension_numbers<[1], [0], [0], [1], [0, 0, 1, 1], [], []>} : vector<256x8xf32>, vector<8x16xf32>, vector<256x16xf32> -> vector<256x16xf32>
    %131 = arith.addf %125, %130 : vector<256x16xf32>
    %c256 = arith.constant 256 : index
    %c0_144 = arith.constant 0 : index
    %132 = vector.load %arg5[%c256, %c0_144] : memref<512x16xf32, #tpu.memory_space<vmem>>, vector<256x16xf32>
    tpu.vector_store %arg5[%c256, %c0_144], %131 {strides = array<i32>} : memref<512x16xf32, #tpu.memory_space<vmem>>, vector<256x16xf32>,
    %cst_145 = arith.constant dense<0.000000e+00> : vector<16xf32>
    %133 = vector.multi_reduction <add>, %131, %cst_145 [0] : vector<256x16xf32> to vector<16xf32>
    %134 = vector.shape_cast %133 : vector<16xf32> to vector<1x16xf32>
    %135 = arith.addf %67, %134 : vector<1x16xf32>
    %136 = arith.mulf %131, %131 : vector<256x16xf32>
    %cst_146 = arith.constant dense<0.000000e+00> : vector<16xf32>
    %137 = vector.multi_reduction <add>, %136, %cst_146 [0] : vector<256x16xf32> to vector<16xf32>
    %138 = vector.shape_cast %137 : vector<16xf32> to vector<1x16xf32>
    %139 = arith.addf %71, %138 : vector<1x16xf32>
    %cst_147 = arith.constant 0.001953125 : f32
    %140 = vector.broadcast %cst_147 : f32 to vector<1x16xf32>
    %141 = arith.mulf %135, %140 : vector<1x16xf32>
    %cst_148 = arith.constant 0.001953125 : f32
    %142 = vector.broadcast %cst_148 : f32 to vector<1x16xf32>
    %143 = arith.mulf %139, %142 : vector<1x16xf32>
    %144 = arith.mulf %141, %141 : vector<1x16xf32>
    %145 = arith.subf %143, %144 : vector<1x16xf32>
    %c0_149 = arith.constant 0 : index
    %c0_150 = arith.constant 0 : index
    %146 = vector.load %arg3[%c0_149, %c0_150] : memref<1x16xf32, #tpu.memory_space<vmem>>, vector<1x16xf32>
    %cst_151 = arith.constant 9.99999974E-6 : f32
    %147 = vector.broadcast %cst_151 : f32 to vector<1x16xf32>
    %148 = arith.addf %145, %147 : vector<1x16xf32>
    %149 = math.rsqrt %148 : vector<1x16xf32>
    %150 = arith.mulf %146, %149 : vector<1x16xf32>
    %c0_152 = arith.constant 0 : index
    %c0_153 = arith.constant 0 : index
    %151 = vector.load %arg4[%c0_152, %c0_153] : memref<1x16xf32, #tpu.memory_space<vmem>>, vector<1x16xf32>
    %152 = arith.mulf %141, %150 : vector<1x16xf32>
    %153 = arith.subf %151, %152 : vector<1x16xf32>
    %c0_154 = arith.constant 0 : index
    %c0_155 = arith.constant 0 : index
    %154 = vector.load %arg5[%c0_154, %c0_155] : memref<512x16xf32, #tpu.memory_space<vmem>>, vector<256x16xf32>
    %155 = vector.broadcast %150 : vector<1x16xf32> to vector<256x16xf32>
    %156 = arith.mulf %154, %155 : vector<256x16xf32>
    %157 = vector.broadcast %153 : vector<1x16xf32> to vector<256x16xf32>
    %158 = arith.addf %156, %157 : vector<256x16xf32>
    %c0_156 = arith.constant 0 : index
    %c0_157 = arith.constant 0 : index
    %159 = vector.load %arg5[%c0_156, %c0_157] : memref<512x16xf32, #tpu.memory_space<vmem>>, vector<256x16xf32>
    tpu.vector_store %arg5[%c0_156, %c0_157], %158 {strides = array<i32>} : memref<512x16xf32, #tpu.memory_space<vmem>>, vector<256x16xf32>,
    %c256_158 = arith.constant 256 : index
    %c0_159 = arith.constant 0 : index
    %160 = vector.load %arg5[%c256_158, %c0_159] : memref<512x16xf32, #tpu.memory_space<vmem>>, vector<256x16xf32>
    %161 = vector.broadcast %150 : vector<1x16xf32> to vector<256x16xf32>
    %162 = arith.mulf %160, %161 : vector<256x16xf32>
    %163 = vector.broadcast %153 : vector<1x16xf32> to vector<256x16xf32>
    %164 = arith.addf %162, %163 : vector<256x16xf32>
    %c256_160 = arith.constant 256 : index
    %c0_161 = arith.constant 0 : index
    %165 = vector.load %arg5[%c256_160, %c0_161] : memref<512x16xf32, #tpu.memory_space<vmem>>, vector<256x16xf32>
    tpu.vector_store %arg5[%c256_160, %c0_161], %164 {strides = array<i32>} : memref<512x16xf32, #tpu.memory_space<vmem>>, vector<256x16xf32>,
    return
  }
  func.func @transform_0(%arg0: i32) -> (i32, i32, i32, i32) {
    %c0_i32 = arith.constant 0 : i32
    %c0_i32_0 = arith.constant 0 : i32
    %c0_i32_1 = arith.constant 0 : i32
    %c0_i32_2 = arith.constant 0 : i32
    %c0_i32_3 = arith.constant 0 : i32
    return %c0_i32, %c0_i32_0, %c0_i32_1, %c0_i32_2 : i32, i32, i32, i32
  }
  func.func @transform_1(%arg0: i32) -> (i32, i32, i32) {
    %c0_i32 = arith.constant 0 : i32
    %c0_i32_0 = arith.constant 0 : i32
    %c0_i32_1 = arith.constant 0 : i32
    %c0_i32_2 = arith.constant 0 : i32
    return %c0_i32, %c0_i32_0, %c0_i32_1 : i32, i32, i32
  }
  func.func @transform_2(%arg0: i32) -> (i32, i32) {
    %c0_i32 = arith.constant 0 : i32
    %c0_i32_0 = arith.constant 0 : i32
    %c0_i32_1 = arith.constant 0 : i32
    return %c0_i32, %c0_i32_0 : i32, i32
  }
  func.func @transform_3(%arg0: i32) -> (i32, i32) {
    %c0_i32 = arith.constant 0 : i32
    %c0_i32_0 = arith.constant 0 : i32
    %c0_i32_1 = arith.constant 0 : i32
    return %c0_i32, %c0_i32_0 : i32, i32
  }
  func.func @transform_4(%arg0: i32) -> (i32, i32) {
    %c0_i32 = arith.constant 0 : i32
    %c0_i32_0 = arith.constant 0 : i32
    %c0_i32_1 = arith.constant 0 : i32
    return %c0_i32, %c0_i32_0 : i32, i32
  }
}

</mosaic_0001>

<bundles_post_ra>
// kernel: dilconv_forward.1
= control target key start
LH: loop header
LB: loop body
LE: loop exit
PB: predicated region body
PF: predicated region fallthrough
CT: control target
= control target key end

     0   :  { %vm18_vm0 = vcmask 64512   ;;  %vm21_vm1 = vcmask 60416   ;;  %v9953_v3 = vmov 0.0   ;;  %s13370_s0 = inlined_call_operand.vmem [shape: f32[2,16,16,8], index: 0, kind: input, shape index: {}]   ;;  %s13371_s1 = inlined_call_operand.vmem [shape: f32[9,8,16], index: 1, kind: input, shape index: {}]   ;;  %s13372_s2 = inlined_call_operand.vmem [shape: f32[1,16], index: 2, kind: input, shape index: {}]   ;;  %s13373_s3 = inlined_call_operand.vmem [shape: f32[1,16], index: 3, kind: input, shape index: {}]   ;;  %s13374_s4 = inlined_call_operand.hbm [shape: f32[512,16], index: 4, kind: output, shape index: {}]  }
   0x1   :  { %v9985_v0 = vld [vmem:[%s13371_s1 + $0x8] sm:$0xff]  ;;  %v9990_v1 = vld [vmem:[%s13371_s1] sm:$0xff]  ;;  %v9995_v2 = vld [vmem:[%s13371_s1 + $0x10] sm:$0xff]  ;;  %19 = vst.msk [vmem:[#allocation2] sm:$0xff] %vm18_vm0, %v9953_v3 }
   0x2   :  { %9025 = vmatprep.subr.mxu0 %v9985_v0  ;;  %9075 = vmatprep.subr.mxu1 %v9990_v1  ;;  %20 = vst.msk [vmem:[#allocation2 + $0x8] sm:$0xff] %vm18_vm0, %v9953_v3  ;;  %23 = vst.msk [vmem:[#allocation2 + $0x18] sm:$0xff] %vm18_vm0, %v9953_v3  ;;  %v10062_v4 = vld [vmem:[%s13371_s1 + $0x18] sm:$0xff]  ;;  %v80_v5 = vld [vmem:[%s13370_s0] sm:$0xff] }
   0x3   :  { %24 = vst.msk [vmem:[#allocation2 + $0x20] sm:$0xff] %vm18_vm0, %v9953_v3  ;;  %26 = vst.msk [vmem:[#allocation2 + $0x30] sm:$0xff] %vm18_vm0, %v9953_v3  ;;  %v81_v6 = vld [vmem:[%s13370_s0 + $0x8] sm:$0xff]  ;;  %9026 = vmatpush3.msra.mxu0 %v9985_v0  ;;  %9076 = vmatpush3.msra.mxu1 %v9990_v1  ;;  %v112_v7 = vmax.f32 %v80_v5, 0.0  ;;  %v82_v9 = vld [vmem:[%s13370_s0 + $0x10] sm:$0xff] }
   0x4   :  { %27 = vst.msk [vmem:[#allocation2 + $0x38] sm:$0xff] %vm18_vm0, %v9953_v3  ;;  %29 = vst.msk [vmem:[#allocation2 + $0x48] sm:$0xff] %vm18_vm0, %v9953_v3  ;;  %v113_v8 = vmax.f32 %v81_v6, 0.0  ;;  %v83_v10 = vld [vmem:[%s13370_s0 + $0x18] sm:$0xff]  ;;  %v84_v11 = vld [vmem:[%s13370_s0 + $0x20] sm:$0xff]  ;;  %9125 = vmatprep.subr.mxu0 %v9995_v2  ;;  %9175 = vmatprep.subr.mxu1 %v10062_v4  ;;  %v114_v12 = vmax.f32 %v82_v9, 0.0 }
   0x5   :  { %30 = vst.msk [vmem:[#allocation2 + $0x50] sm:$0xff] %vm18_vm0, %v9953_v3  ;;  %32 = vst.msk [vmem:[#allocation2 + $0x60] sm:$0xff] %vm18_vm0, %v9953_v3  ;;  %v115_v13 = vmax.f32 %v83_v10, 0.0  ;;  %v116_v14 = vmax.f32 %v84_v11, 0.0  ;;  %v85_v15 = vld [vmem:[%s13370_s0 + $0x28] sm:$0xff]  ;;  %v86_v16 = vld [vmem:[%s13370_s0 + $0x30] sm:$0xff] }
   0x6   :  { %33 = vst.msk [vmem:[#allocation2 + $0x68] sm:$0xff] %vm18_vm0, %v9953_v3  ;;  %35 = vst.msk [vmem:[#allocation2 + $0x78] sm:$0xff] %vm18_vm0, %v9953_v3  ;;  %v87_v17 = vld [vmem:[%s13370_s0 + $0x38] sm:$0xff]  ;;  %v117_v18 = vmax.f32 %v85_v15, 0.0  ;;  %v118_v19 = vmax.f32 %v86_v16, 0.0  ;;  %v88_v21 = vld [vmem:[%s13370_s0 + $0x40] sm:$0xff] }
   0x7   :  { %36 = vst.msk [vmem:[#allocation2 + $0x80] sm:$0xff] %vm18_vm0, %v9953_v3  ;;  %38 = vst.msk [vmem:[#allocation2 + $0x90] sm:$0xff] %vm18_vm0, %v9953_v3  ;;  %v119_v20 = vmax.f32 %v87_v17, 0.0  ;;  %v89_v22 = vld [vmem:[%s13370_s0 + $0x48] sm:$0xff]  ;;  %v90_v23 = vld [vmem:[%s13370_s0 + $0x50] sm:$0xff]  ;;  %v120_v24 = vmax.f32 %v88_v21, 0.0 }
   0x8   :  { %39 = vst.msk [vmem:[#allocation2 + $0x98] sm:$0xff] %vm18_vm0, %v9953_v3  ;;  %41 = vst.msk [vmem:[#allocation2 + $0xa8] sm:$0xff] %vm18_vm0, %v9953_v3  ;;  %v121_v25 = vmax.f32 %v89_v22, 0.0  ;;  %v122_v26 = vmax.f32 %v90_v23, 0.0  ;;  %v91_v27 = vld [vmem:[%s13370_s0 + $0x58] sm:$0xff]  ;;  %v92_v28 = vld [vmem:[%s13370_s0 + $0x60] sm:$0xff] }
   0x9   :  { %42 = vst.msk [vmem:[#allocation2 + $0xb0] sm:$0xff] %vm18_vm0, %v9953_v3  ;;  %44 = vst.msk [vmem:[#allocation2 + $0xc0] sm:$0xff] %vm18_vm0, %v9953_v3  ;;  %v93_v29 = vld [vmem:[%s13370_s0 + $0x68] sm:$0xff]  ;;  %v123_v30 = vmax.f32 %v91_v27, 0.0  ;;  %v124_v31 = vmax.f32 %v92_v28, 0.0  ;;  %v94_v33 = vld [vmem:[%s13370_s0 + $0x70] sm:$0xff] }
   0xa   :  { %45 = vst.msk [vmem:[#allocation2 + $0xc8] sm:$0xff] %vm18_vm0, %v9953_v3  ;;  %47 = vst.msk [vmem:[#allocation2 + $0xd8] sm:$0xff] %vm18_vm0, %v9953_v3  ;;  %v125_v32 = vmax.f32 %v93_v29, 0.0  ;;  %v95_v34 = vld [vmem:[%s13370_s0 + $0x78] sm:$0xff]  ;;  %v96_v35 = vld [vmem:[%s13370_s0 + $0x80] sm:$0xff]  ;;  %v126_v36 = vmax.f32 %v94_v33, 0.0 }
   0xb   :  { %48 = vst.msk [vmem:[#allocation2 + $0xe0] sm:$0xff] %vm18_vm0, %v9953_v3  ;;  %50 = vst.msk [vmem:[#allocation2 + $0xf0] sm:$0xff] %vm18_vm0, %v9953_v3  ;;  %v127_v37 = vmax.f32 %v95_v34, 0.0  ;;  %v128_v38 = vmax.f32 %v96_v35, 0.0  ;;  %v97_v39 = vld [vmem:[%s13370_s0 + $0x88] sm:$0xff]  ;;  %v98_v40 = vld [vmem:[%s13370_s0 + $0x90] sm:$0xff] }
   0xc   :  { %51 = vst.msk [vmem:[#allocation2 + $0xf8] sm:$0xff] %vm18_vm0, %v9953_v3  ;;  %53 = vst.msk [vmem:[#allocation2 + $0x108] sm:$0xff] %vm18_vm0, %v9953_v3  ;;  %v99_v41 = vld [vmem:[%s13370_s0 + $0x98] sm:$0xff]  ;;  %v210_v42 = vld [vmem:[#allocation2 + $0x2] sm:$0xff]  ;;  %v129_v45 = vmax.f32 %v97_v39, 0.0  ;;  %v130_v46 = vmax.f32 %v98_v40, 0.0 }
   0xd   :  { %54 = vst.msk [vmem:[#allocation2 + $0x110] sm:$0xff] %vm18_vm0, %v9953_v3  ;;  %56 = vst.msk [vmem:[#allocation2 + $0x120] sm:$0xff] %vm18_vm0, %v9953_v3  ;;  %v177_v43 = vld [vmem:[#allocation2] sm:$0xff]  ;;  %v131_v47 = vmax.f32 %v99_v41, 0.0  ;;  %9027 = vmatprep.mubr.msk.f32.mxu0 %vm18_vm0, %v210_v42  ;;  %v178_v48 = vld [vmem:[#allocation2 + $0x8] sm:$0xff] }
   0xe   :  { %57 = vst.msk [vmem:[#allocation2 + $0x128] sm:$0xff] %vm18_vm0, %v9953_v3  ;;  %59 = vst.msk [vmem:[#allocation2 + $0x138] sm:$0xff] %vm18_vm0, %v9953_v3  ;;  %9077 = vmatprep.mubr.msk.f32.mxu1 %vm18_vm0, %v177_v43  ;;  %v212_v49 = vld [vmem:[#allocation2 + $0x1a] sm:$0xff]  ;;  %v101_v6 = vld [vmem:[%s13370_s0 + $0xa8] sm:$0xff] }
   0xf   :  { %60 = vst.msk [vmem:[#allocation2 + $0x140] sm:$0xff] %vm18_vm0, %v9953_v3  ;;  %62 = vst.msk [vmem:[#allocation2 + $0x150] sm:$0xff] %vm18_vm0, %v9953_v3  ;;  %v179_v50 = vld [vmem:[#allocation2 + $0x18] sm:$0xff]  ;;  %9078 = vmatmul.mubr.msk.f32.vlgmr.msra.gmra.mxu1 %vm18_vm0, %v178_v48  ;;  %v100_v51 = vld [vmem:[%s13370_s0 + $0xa0] sm:$0xff]  ;;  %v133_v9 = vmax.f32 %v101_v6, 0.0 }
  0x10   :  { %63 = vst.msk [vmem:[#allocation2 + $0x158] sm:$0xff] %vm18_vm0, %v9953_v3  ;;  %65 = vst.msk [vmem:[#allocation2 + $0x168] sm:$0xff] %vm18_vm0, %v9953_v3  ;;  %9176 = vmatpush3.msra.mxu1 %v10062_v4  ;;  %v180_v53 = vld [vmem:[#allocation2 + $0x20] sm:$0xff]  ;;  %v132_v54 = vmax.f32 %v100_v51, 0.0  ;;  %9080 = vmatprep.mubr.msk.f32.mxu1 %vm18_vm0, %v179_v50  ;;  %v109_v42 = vld [vmem:[%s13370_s0 + $0xe8] sm:$0xff] }
  0x11   :  { %66 = vst.msk [vmem:[#allocation2 + $0x170] sm:$0xff] %vm18_vm0, %v9953_v3  ;;  %68 = vst.msk [vmem:[#allocation2 + $0x180] sm:$0xff] %vm18_vm0, %v9953_v3  ;;  %v108_v39 = vld [vmem:[%s13370_s0 + $0xe0] sm:$0xff]  ;;  %v110_v43 = vld [vmem:[%s13370_s0 + $0xf0] sm:$0xff] }
  0x12   :  { %69 = vst.msk [vmem:[#allocation2 + $0x188] sm:$0xff] %vm18_vm0, %v9953_v3  ;;  %71 = vst.msk [vmem:[#allocation2 + $0x198] sm:$0xff] %vm18_vm0, %v9953_v3  ;;  %v140_v41 = vmax.f32 %v108_v39, 0.0  ;;  %v8103_v48 = vld [vmem:[%s13370_s0 + $0x100] sm:$0xff]  ;;  %v8105_v51 = vld [vmem:[%s13370_s0 + $0x110] sm:$0xff] }
  0x13   :  { %72 = vst.msk [vmem:[#allocation2 + $0x1a0] sm:$0xff] %vm18_vm0, %v9953_v3  ;;  %74 = vst.msk [vmem:[#allocation2 + $0x1b0] sm:$0xff] %vm18_vm0, %v9953_v3  ;;  %9081 = vmatmul.mubr.msk.f32.gmra.mxu1 %vm18_vm0, %v180_v53  ;;  %v3834_v50 = vmax.f32 %v8103_v48, 0.0  ;;  %v3836_v53 = vmax.f32 %v8105_v51, 0.0 }
  0x14   :  { %75 = vst.msk [vmem:[#allocation2 + $0x1b8] sm:$0xff] %vm18_vm0, %v9953_v3  ;;  %77 = vst.msk [vmem:[#allocation2 + $0x1c8] sm:$0xff] %vm18_vm0, %v9953_v3 }
  0x15   :  { %78 = vst.msk [vmem:[#allocation2 + $0x1d0] sm:$0xff] %vm18_vm0, %v9953_v3  ;;  %145 = vst.msk [vmem:[#allocation2 + $0x32] sm:$0xff] %vm18_vm0, %v112_v7  ;;  %v102_v7 = vld [vmem:[%s13370_s0 + $0xb0] sm:$0xff] }
  0x16   :  { %22 = vst.msk [vmem:[#allocation2 + $0x10] sm:$0xf] %vm21_vm1, %v9953_v3  ;;  %25 = vst.msk [vmem:[#allocation2 + $0x28] sm:$0xf] %vm21_vm1, %v9953_v3  ;;  %v134_v10 = vmax.f32 %v102_v7, 0.0 }
  0x17   :  { %28 = vst.msk [vmem:[#allocation2 + $0x40] sm:$0xf] %vm21_vm1, %v9953_v3  ;;  %31 = vst.msk [vmem:[#allocation2 + $0x58] sm:$0xf] %vm21_vm1, %v9953_v3 }
  0x18   :  { %34 = vst.msk [vmem:[#allocation2 + $0x70] sm:$0xf] %vm21_vm1, %v9953_v3  ;;  %37 = vst.msk [vmem:[#allocation2 + $0x88] sm:$0xf] %vm21_vm1, %v9953_v3 }
  0x19   :  { %40 = vst.msk [vmem:[#allocation2 + $0xa0] sm:$0xf] %vm21_vm1, %v9953_v3  ;;  %43 = vst.msk [vmem:[#allocation2 + $0xb8] sm:$0xf] %vm21_vm1, %v9953_v3 }
  0x1a   :  { %46 = vst.msk [vmem:[#allocation2 + $0xd0] sm:$0xf] %vm21_vm1, %v9953_v3  ;;  %49 = vst.msk [vmem:[#allocation2 + $0xe8] sm:$0xf] %vm21_vm1, %v9953_v3 }
  0x1b   :  { %52 = vst.msk [vmem:[#allocation2 + $0x100] sm:$0xf] %vm21_vm1, %v9953_v3  ;;  %55 = vst.msk [vmem:[#allocation2 + $0x118] sm:$0xf] %vm21_vm1, %v9953_v3 }
  0x1c   :  { %58 = vst.msk [vmem:[#allocation2 + $0x130] sm:$0xf] %vm21_vm1, %v9953_v3  ;;  %61 = vst.msk [vmem:[#allocation2 + $0x148] sm:$0xf] %vm21_vm1, %v9953_v3  ;;  %v10159_v55 = vld [vmem:[#allocation2 + $0x32] sm:$0xff] }
  0x1d   :  { %64 = vst.msk [vmem:[#allocation2 + $0x160] sm:$0xf] %vm21_vm1, %v9953_v3  ;;  %67 = vst.msk [vmem:[#allocation2 + $0x178] sm:$0xf] %vm21_vm1, %v9953_v3  ;;  %v211_v44 = vld [vmem:[#allocation2 + $0xa] sm:$0xff]  ;;  %v213_v52 = vld [vmem:[#allocation2 + $0x22] sm:$0xff] }
  0x1e   :  { %70 = vst.msk [vmem:[#allocation2 + $0x190] sm:$0xf] %vm21_vm1, %v9953_v3  ;;  %73 = vst.msk [vmem:[#allocation2 + $0x1a8] sm:$0xf] %vm21_vm1, %v9953_v3  ;;  %9028 = vmatmul.mubr.msk.f32.vlgmr.msra.gmra.mxu0 %vm18_vm0, %v211_v44  ;;  %v10161_v56 = vld [vmem:[#allocation2 + $0x30] sm:$0xff] }
  0x1f   :  { %76 = vst.msk [vmem:[#allocation2 + $0x1c0] sm:$0xf] %vm21_vm1, %v9953_v3  ;;  %79 = vst.msk [vmem:[#allocation2 + $0x1d8] sm:$0xf] %vm21_vm1, %v9953_v3  ;;  %9126 = vmatpush3.msra.mxu0 %v9995_v2  ;;  %9030 = vmatprep.mubr.msk.f32.mxu0 %vm18_vm0, %v212_v49 }
  0x20   :  { %146 = vst.msk [vmem:[#allocation2 + $0x3a] sm:$0xff] %vm18_vm0, %v113_v8  ;;  %147 = vst.msk [vmem:[#allocation2 + $0x4a] sm:$0xff] %vm18_vm0, %v114_v12  ;;  %9083 = vmatprep.mubr.msk.f32.mxu1 %vm18_vm0, %v10161_v56  ;;  %v103_v8 = vld [vmem:[%s13370_s0 + $0xb8] sm:$0xff]  ;;  %v104_v12 = vld [vmem:[%s13370_s0 + $0xc0] sm:$0xff] }
  0x21   :  { %148 = vst.msk [vmem:[#allocation2 + $0x52] sm:$0xff] %vm18_vm0, %v115_v13  ;;  %149 = vst.msk [vmem:[#allocation2 + $0x62] sm:$0xff] %vm18_vm0, %v116_v14  ;;  %v135_v11 = vmax.f32 %v103_v8, 0.0  ;;  %v105_v13 = vld [vmem:[%s13370_s0 + $0xc8] sm:$0xff]  ;;  %v106_v14 = vld [vmem:[%s13370_s0 + $0xd0] sm:$0xff]  ;;  %v136_v16 = vmax.f32 %v104_v12, 0.0 }
  0x22   :  { %150 = vst.msk [vmem:[#allocation2 + $0x6a] sm:$0xff] %vm18_vm0, %v117_v18  ;;  %151 = vst.msk [vmem:[#allocation2 + $0x7a] sm:$0xff] %vm18_vm0, %v118_v19  ;;  %9031 = vmatmul.mubr.msk.f32.gmra.mxu0 %vm18_vm0, %v213_v52  ;;  %v137_v17 = vmax.f32 %v105_v13, 0.0  ;;  %v138_v18 = vmax.f32 %v106_v14, 0.0  ;;  %v107_v19 = vld [vmem:[%s13370_s0 + $0xd8] sm:$0xff] }
  0x23   :  { %152 = vst.msk [vmem:[#allocation2 + $0x82] sm:$0xff] %vm18_vm0, %v119_v20  ;;  %153 = vst.msk [vmem:[#allocation2 + $0x92] sm:$0xff] %vm18_vm0, %v120_v24  ;;  %9033 = vmatprep.mubr.msk.f32.mxu0 %vm18_vm0, %v10159_v55  ;;  %v10246_v20 = vld [vmem:[%s13371_s1 + $0x20] sm:$0xff]  ;;  %v139_v23 = vmax.f32 %v107_v19, 0.0  ;;  %v10259_v24 = vld [vmem:[%s13371_s1 + $0x28] sm:$0xff] }
  0x24   :  { %154 = vst.msk [vmem:[#allocation2 + $0x9a] sm:$0xff] %vm18_vm0, %v121_v25  ;;  %155 = vst.msk [vmem:[#allocation2 + $0xaa] sm:$0xff] %vm18_vm0, %v122_v26  ;;  %9225 = vmatprep.subr.mxu0 %v10246_v20  ;;  %9275 = vmatprep.subr.mxu1 %v10259_v24 }
  0x25   :  { %156 = vst.msk [vmem:[#allocation2 + $0xb2] sm:$0xff] %vm18_vm0, %v123_v30  ;;  %157 = vst.msk [vmem:[#allocation2 + $0xc2] sm:$0xff] %vm18_vm0, %v124_v31 }
  0x26   :  { %158 = vst.msk [vmem:[#allocation2 + $0xca] sm:$0xff] %vm18_vm0, %v125_v32  ;;  %159 = vst.msk [vmem:[#allocation2 + $0xda] sm:$0xff] %vm18_vm0, %v126_v36 }
  0x27   :  { %160 = vst.msk [vmem:[#allocation2 + $0xe2] sm:$0xff] %vm18_vm0, %v127_v37  ;;  %161 = vst.msk [vmem:[#allocation2 + $0xf2] sm:$0xff] %vm18_vm0, %v128_v38  ;;  %v10170_v57 = vld [vmem:[#allocation2 + $0x3a] sm:$0xff]  ;;  %v10174_v59 = vld [vmem:[#allocation2 + $0x4a] sm:$0xff] }
  0x28   :  { %162 = vst.msk [vmem:[#allocation2 + $0xfa] sm:$0xff] %vm18_vm0, %v129_v45  ;;  %163 = vst.msk [vmem:[#allocation2 + $0x10a] sm:$0xff] %vm18_vm0, %v130_v46  ;;  %v10172_v58 = vld [vmem:[#allocation2 + $0x38] sm:$0xff]  ;;  %v10176_v60 = vld [vmem:[#allocation2 + $0x48] sm:$0xff]  ;;  %9034 = vmatmul.mubr.msk.f32.gmra.mxu0 %vm18_vm0, %v10170_v57  ;;  %v141_v45 = vmax.f32 %v109_v42, 0.0  ;;  %v142_v46 = vmax.f32 %v110_v43, 0.0 }
  0x29   :  { %164 = vst.msk [vmem:[#allocation2 + $0x112] sm:$0xff] %vm18_vm0, %v131_v47  ;;  %165 = vst.msk [vmem:[#allocation2 + $0x122] sm:$0xff] %vm18_vm0, %v132_v54  ;;  %9084 = vmatmul.mubr.msk.f32.gmra.mxu1 %vm18_vm0, %v10172_v58  ;;  %9036 = vmatprep.mubr.msk.f32.mxu0 %vm18_vm0, %v10174_v59  ;;  %v10186_v61 = vld [vmem:[#allocation2 + $0x52] sm:$0xff]  ;;  %v10190_v63 = vld [vmem:[#allocation2 + $0x62] sm:$0xff] }
  0x2a   :  { %9086 = vmatprep.mubr.msk.f32.mxu1 %vm18_vm0, %v10176_v60  ;;  %v10188_v62 = vld [vmem:[#allocation2 + $0x50] sm:$0xff]  ;;  %v10192_v0 = vld [vmem:[#allocation2 + $0x60] sm:$0xff]  ;;  %v10204_v2 = vld [vmem:[#allocation2 + $0x68] sm:$0xff]  ;;  %166 = vst.msk [vmem:[#allocation2 + $0x12a] sm:$0xff] %vm18_vm0, %v133_v9 }
  0x2b   :  { %v10202_v1 = vld [vmem:[#allocation2 + $0x6a] sm:$0xff]  ;;  %v10206_v3 = vld [vmem:[#allocation2 + $0x7a] sm:$0xff]  ;;  %v10210_v5 = vld [vmem:[#allocation2 + $0x82] sm:$0xff]  ;;  %167 = vst.msk [vmem:[#allocation2 + $0x13a] sm:$0xff] %vm18_vm0, %v134_v10 }
  0x2c   :  { %9037 = vmatmul.mubr.msk.f32.gmra.mxu0 %vm18_vm0, %v10186_v61  ;;  %v10208_v4 = vld [vmem:[#allocation2 + $0x78] sm:$0xff]  ;;  %v10238_v15 = vld [vmem:[#allocation2 + $0x80] sm:$0xff]  ;;  %v10250_v22 = vld [vmem:[#allocation2 + $0x90] sm:$0xff]  ;;  %168 = vst.msk [vmem:[#allocation2 + $0x142] sm:$0xff] %vm18_vm0, %v135_v11 }
  0x2d   :  { %9087 = vmatmul.mubr.msk.f32.gmra.mxu1 %vm18_vm0, %v10188_v62  ;;  %9039 = vmatprep.mubr.msk.f32.mxu0 %vm18_vm0, %v10190_v63  ;;  %v10248_v21 = vld [vmem:[#allocation2 + $0x92] sm:$0xff]  ;;  %169 = vst.msk [vmem:[#allocation2 + $0x152] sm:$0xff] %vm18_vm0, %v136_v16  ;;  %170 = vst.msk [vmem:[#allocation2 + $0x15a] sm:$0xff] %vm18_vm0, %v137_v17  ;;  %v10274_v25 = vld [vmem:[#allocation2 + $0x9a] sm:$0xff] }
  0x2e   :  { %9089 = vmatprep.mubr.msk.f32.mxu1 %vm18_vm0, %v10192_v0  ;;  %171 = vst.msk [vmem:[#allocation2 + $0x16a] sm:$0xff] %vm18_vm0, %v138_v18  ;;  %172 = vst.msk [vmem:[#allocation2 + $0x172] sm:$0xff] %vm18_vm0, %v139_v23  ;;  %v10276_v26 = vld [vmem:[#allocation2 + $0x98] sm:$0xff]  ;;  %v10278_v27 = vld [vmem:[#allocation2 + $0xaa] sm:$0xff] }
  0x2f   :  { %13416 = vst [vmem:[#allocation6_spill] sm:$0xff] %v10276_v26  ;;  %v10280_v28 = vld [vmem:[#allocation2 + $0xa8] sm:$0xff]  ;;  %v10290_v29 = vld [vmem:[#allocation2 + $0xb2] sm:$0xff]  ;;  %v10296_v32 = vld [vmem:[#allocation2 + $0xc0] sm:$0xff] }
  0x30   :  { %9040 = vmatmul.mubr.msk.f32.gmra.mxu0 %vm18_vm0, %v10202_v1  ;;  %13417 = vst [vmem:[#allocation7_spill] sm:$0xff] %v10280_v28  ;;  %v10292_v30 = vld [vmem:[#allocation2 + $0xb0] sm:$0xff]  ;;  %v10294_v31 = vld [vmem:[#allocation2 + $0xc2] sm:$0xff]  ;;  %13419 = vst [vmem:[#allocation9_spill] sm:$0xff] %v10296_v32 }
  0x31   :  { %9090 = vmatmul.mubr.msk.f32.gmra.mxu1 %vm18_vm0, %v10204_v2  ;;  %9042 = vmatprep.mubr.msk.f32.mxu0 %vm18_vm0, %v10206_v3  ;;  %13418 = vst [vmem:[#allocation8_spill] sm:$0xff] %v10292_v30  ;;  %v10306_v33 = vld [vmem:[#allocation2 + $0xca] sm:$0xff]  ;;  %v10310_v35 = vld [vmem:[#allocation2 + $0xda] sm:$0xff]  ;;  %v10318_v37 = vld [vmem:[#allocation2 + $0xe2] sm:$0xff] }
  0x32   :  { %9092 = vmatprep.mubr.msk.f32.mxu1 %vm18_vm0, %v10208_v4  ;;  %v10308_v34 = vld [vmem:[#allocation2 + $0xc8] sm:$0xff]  ;;  %v10312_v36 = vld [vmem:[#allocation2 + $0xd8] sm:$0xff]  ;;  %v10320_v38 = vld [vmem:[#allocation2 + $0xe0] sm:$0xff]  ;;  %173 = vst.msk [vmem:[#allocation2 + $0x182] sm:$0xff] %vm18_vm0, %v140_v41 }
  0x33   :  { %13420 = vst [vmem:[#allocation10_spill] sm:$0xff] %v10308_v34  ;;  %13421 = vst [vmem:[#allocation11_spill] sm:$0xff] %v10312_v36  ;;  %v10329_v40 = vld [vmem:[#allocation2 + $0xf2] sm:$0xff] }
  0x34   :  { %9043 = vmatmul.mubr.msk.f32.gmra.mxu0 %vm18_vm0, %v10210_v5  ;;  %13422 = vst [vmem:[#allocation12_spill] sm:$0xff] %v10320_v38  ;;  %v10337_v44 = vld [vmem:[#allocation2 + $0xf0] sm:$0xff]  ;;  %v111_v47 = vld [vmem:[%s13370_s0 + $0xf8] sm:$0xff]  ;;  %174 = vst.msk [vmem:[#allocation2 + $0x18a] sm:$0xff] %vm18_vm0, %v141_v45 }
  0x35   :  { %9093 = vmatmul.mubr.msk.f32.gmra.mxu1 %vm18_vm0, %v10238_v15  ;;  %9045 = vmatprep.mubr.msk.f32.mxu0 %vm18_vm0, %v10248_v21  ;;  %13423 = vst [vmem:[#allocation13_spill] sm:$0xff] %v10337_v44  ;;  %v143_v49 = vmax.f32 %v111_v47, 0.0  ;;  %v10353_v52 = vld [vmem:[#allocation2 + $0x34] sm:$0xff]  ;;  %175 = vst.msk [vmem:[#allocation2 + $0x19a] sm:$0xff] %vm18_vm0, %v142_v46 }
  0x36   :  { %9095 = vmatprep.mubr.msk.f32.mxu1 %vm18_vm0, %v10250_v22  ;;  %v8106_v54 = vld [vmem:[%s13370_s0 + $0x118] sm:$0xff] }
  0x38   :  { %9046 = vmatmul.mubr.msk.f32.gmra.mxu0 %vm18_vm0, %v10274_v25 }
  0x39   :  { %9096 = vmatmul.mubr.msk.f32.gmra.mxu1 %vm18_vm0, %v10276_v26  ;;  %9048 = vmatprep.mubr.msk.f32.mxu0 %vm18_vm0, %v10278_v27 }
  0x3a   :  { %9098 = vmatprep.mubr.msk.f32.mxu1 %vm18_vm0, %v10280_v28 }
  0x3c   :  { %9049 = vmatmul.mubr.msk.f32.gmra.mxu0 %vm18_vm0, %v10290_v29 }
  0x3d   :  { %9099 = vmatmul.mubr.msk.f32.gmra.mxu1 %vm18_vm0, %v10292_v30  ;;  %9051 = vmatprep.mubr.msk.f32.mxu0 %vm18_vm0, %v10294_v31 }
  0x3e   :  { %9101 = vmatprep.mubr.msk.f32.mxu1 %vm18_vm0, %v10296_v32 }
  0x40   :  { %9052 = vmatmul.mubr.msk.f32.gmra.mxu0 %vm18_vm0, %v10306_v33 }
  0x41   :  { %9102 = vmatmul.mubr.msk.f32.gmra.mxu1 %vm18_vm0, %v10308_v34  ;;  %9054 = vmatprep.mubr.msk.f32.mxu0 %vm18_vm0, %v10310_v35 }
  0x42   :  { %9104 = vmatprep.mubr.msk.f32.mxu1 %vm18_vm0, %v10312_v36 }
  0x44   :  { %9055 = vmatmul.mubr.msk.f32.gmra.mxu0 %vm18_vm0, %v10318_v37 }
  0x45   :  { %9105 = vmatmul.mubr.msk.f32.gmra.mxu1 %vm18_vm0, %v10320_v38 }
  0x46   :  { %9 = vsyncpa [#allocation4], 0  ;;  %9057 = vmatprep.mubr.msk.f32.mxu0 %vm18_vm0, %v10329_v40  ;;  %9107 = vmatprep.mubr.msk.f32.mxu1 %vm18_vm0, %v10337_v44  ;;  %v10364_v6 = vld [vmem:[#allocation2 + $0xfa] sm:$0xff]  ;;  %v10368_v8 = vld [vmem:[#allocation2 + $0x4c] sm:$0xff]  ;;  %176 = vst.msk [vmem:[#allocation2 + $0x1a2] sm:$0xff] %vm18_vm0, %v143_v49  ;;  %v3837_v9 = vmax.f32 %v8106_v54, 0.0 }
  0x47   :  { %v10366_v7 = vld [vmem:[#allocation2 + $0xf8] sm:$0xff]  ;;  %3866 = vst.msk [vmem:[#allocation2 + $0x32] sm:$0xff] %vm18_vm0, %v3834_v50  ;;  %v10372_v10 = vld [vmem:[#allocation2 + $0x10a] sm:$0xff]  ;;  %3868 = vst.msk [vmem:[#allocation2 + $0x4a] sm:$0xff] %vm18_vm0, %v3836_v53  ;;  %vm3596_vm2 = vcmask 130048  }
  0x48   :  { %13424 = vst [vmem:[#allocation14_spill] sm:$0xff] %v10366_v7  ;;  %v10374_v11 = vld [vmem:[#allocation2 + $0x108] sm:$0xff]  ;;  %v10376_v12 = vld [vmem:[#allocation2 + $0x54] sm:$0xff]  ;;  %9058 = vmatmul.mubr.msk.f32.gmra.mxu0 %vm18_vm0, %v10364_v6  ;;  %v10394_v17 = vld [vmem:[#allocation2 + $0x120] sm:$0xff] }
  0x49   :  { %13425 = vst [vmem:[#allocation15_spill] sm:$0xff] %v10374_v11  ;;  %3869 = vst.msk [vmem:[#allocation2 + $0x52] sm:$0xff] %vm18_vm0, %v3837_v9  ;;  %9108 = vmatmul.mubr.msk.f32.gmra.mxu1 %vm18_vm0, %v10366_v7  ;;  %9060 = vmatprep.mubr.msk.f32.mxu0 %vm18_vm0, %v10372_v10  ;;  %v10388_v13 = vld [vmem:[#allocation2 + $0x112] sm:$0xff]  ;;  %v10392_v16 = vld [vmem:[#allocation2 + $0x122] sm:$0xff] }
  0x4a   :  { %9110 = vmatprep.mubr.msk.f32.mxu1 %vm18_vm0, %v10374_v11  ;;  %v10390_v14 = vld [vmem:[#allocation2 + $0x110] sm:$0xff]  ;;  %13427 = vst [vmem:[#allocation17_spill] sm:$0xff] %v10394_v17  ;;  %v10406_v19 = vld [vmem:[#allocation2 + $0x128] sm:$0xff]  ;;  %v10408_v23 = vld [vmem:[#allocation2 + $0x13a] sm:$0xff] }
  0x4b   :  { %13426 = vst [vmem:[#allocation16_spill] sm:$0xff] %v10390_v14  ;;  %v10404_v18 = vld [vmem:[#allocation2 + $0x12a] sm:$0xff]  ;;  %13428 = vst [vmem:[#allocation18_spill] sm:$0xff] %v10406_v19  ;;  %v10410_v39 = vld [vmem:[#allocation2 + $0x138] sm:$0xff] }
  0x4c   :  { %9061 = vmatmul.mubr.msk.f32.gmra.mxu0 %vm18_vm0, %v10388_v13  ;;  %13429 = vst [vmem:[#allocation19_spill] sm:$0xff] %v10410_v39  ;;  %v10420_v41 = vld [vmem:[#allocation2 + $0x142] sm:$0xff]  ;;  %v10424_v43 = vld [vmem:[#allocation2 + $0x152] sm:$0xff]  ;;  %v10436_v46 = vld [vmem:[#allocation2 + $0x15a] sm:$0xff] }
  0x4d   :  { %9111 = vmatmul.mubr.msk.f32.gmra.mxu1 %vm18_vm0, %v10390_v14  ;;  %9063 = vmatprep.mubr.msk.f32.mxu0 %vm18_vm0, %v10392_v16  ;;  %v10422_v42 = vld [vmem:[#allocation2 + $0x140] sm:$0xff]  ;;  %v10426_v45 = vld [vmem:[#allocation2 + $0x150] sm:$0xff]  ;;  %v10438_v47 = vld [vmem:[#allocation2 + $0x158] sm:$0xff] }
  0x4e   :  { %9113 = vmatprep.mubr.msk.f32.mxu1 %vm18_vm0, %v10394_v17  ;;  %13430 = vst [vmem:[#allocation20_spill] sm:$0xff] %v10422_v42  ;;  %13431 = vst [vmem:[#allocation21_spill] sm:$0xff] %v10426_v45  ;;  %v10440_v48 = vld [vmem:[#allocation2 + $0x16a] sm:$0xff]  ;;  %v10452_v50 = vld [vmem:[#allocation2 + $0x172] sm:$0xff] }
  0x4f   :  { %13432 = vst [vmem:[#allocation22_spill] sm:$0xff] %v10438_v47  ;;  %13433 = vst [vmem:[#allocation23_spill] sm:$0xff] %v10440_v48  ;;  %v10442_v49 = vld [vmem:[#allocation2 + $0x168] sm:$0xff]  ;;  %v10454_v51 = vld [vmem:[#allocation2 + $0x170] sm:$0xff] }
  0x50   :  { %9064 = vmatmul.mubr.msk.f32.gmra.mxu0 %vm18_vm0, %v10404_v18  ;;  %13434 = vst [vmem:[#allocation24_spill] sm:$0xff] %v10442_v49  ;;  %13435 = vst [vmem:[#allocation25_spill] sm:$0xff] %v10452_v50  ;;  %v886_v53 = vld [vmem:[#allocation2 + $0x4] sm:$0xff]  ;;  %v887_v54 = vld [vmem:[#allocation2 + $0xc] sm:$0xff] }
  0x51   :  { %9114 = vmatmul.mubr.msk.f32.gmra.mxu1 %vm18_vm0, %v10406_v19  ;;  %9066 = vmatprep.mubr.msk.f32.mxu0 %vm18_vm0, %v10408_v23  ;;  %13436 = vst [vmem:[#allocation26_spill] sm:$0xff] %v10454_v51  ;;  %v888_v9 = vld [vmem:[#allocation2 + $0x1c] sm:$0xff] }
  0x52   :  { %9116 = vmatprep.mubr.msk.f32.mxu1 %vm18_vm0, %v10410_v39 }
  0x54   :  { %9067 = vmatmul.mubr.msk.f32.gmra.mxu0 %vm18_vm0, %v10420_v41 }
  0x55   :  { %9117 = vmatmul.mubr.msk.f32.gmra.mxu1 %vm18_vm0, %v10422_v42  ;;  %9069 = vmatprep.mubr.msk.f32.mxu0 %vm18_vm0, %v10424_v43 }
  0x56   :  { %9119 = vmatprep.mubr.msk.f32.mxu1 %vm18_vm0, %v10426_v45 }
  0x58   :  { %9070 = vmatmul.mubr.msk.f32.gmra.mxu0 %vm18_vm0, %v10436_v46 }
  0x59   :  { %9120 = vmatmul.mubr.msk.f32.gmra.mxu1 %vm18_vm0, %v10438_v47  ;;  %9072 = vmatprep.mubr.msk.f32.mxu0 %vm18_vm0, %v10440_v48  ;;  %v10469_v48 = vld [vmem:[%s13371_s1 + $0x30] sm:$0xff] }
  0x5a   :  { %9122 = vmatprep.mubr.msk.f32.mxu1 %vm18_vm0, %v10442_v49 }
  0x5c   :  { %9073 = vmatmul.mubr.msk.f32.gmra.mxu0 %vm18_vm0, %v10452_v50  ;;  %v10474_v50 = vld [vmem:[%s13371_s1 + $0x38] sm:$0xff] }
  0x5d   :  { %9123 = vmatmul.mubr.msk.f32.gmra.mxu1 %vm18_vm0, %v10454_v51  ;;  %9127 = vmatprep.mubr.msk.f32.mxu0 %vm18_vm0, %v886_v53  ;;  %v10524_v53 = vld [vmem:[#allocation2 + $0x94] sm:$0xff] }
  0x5e   :  { %9177 = vmatprep.mubr.msk.f32.mxu1 %vm18_vm0, %v10161_v56  ;;  %v889_v56 = vld [vmem:[#allocation2 + $0x24] sm:$0xff] }
  0x60   :  { %9128 = vmatmul.mubr.msk.f32.vlgmr.msra.gmra.mxu0 %vm18_vm0, %v887_v54  ;;  %v10534_v54 = vld [vmem:[#allocation2 + $0x9c] sm:$0xff] }
  0x61   :  { %9178 = vmatmul.mubr.msk.f32.vlgmr.msra.gmra.mxu1 %vm18_vm0, %v10172_v58  ;;  %9226 = vmatpush3.msra.mxu0 %v10246_v20  ;;  %v10490_v58 = vld [vmem:[#allocation2 + $0x3c] sm:$0xff] }
  0x62   :  { %9276 = vmatpush3.msra.mxu1 %v10259_v24  ;;  %9130 = vmatprep.mubr.msk.f32.mxu0 %vm18_vm0, %v888_v9  ;;  %v10512_v20 = vld [vmem:[#allocation2 + $0x7c] sm:$0xff]  ;;  %v10522_v24 = vld [vmem:[#allocation2 + $0x84] sm:$0xff]  ;;  %v10536_v9 = vld [vmem:[#allocation2 + $0xac] sm:$0xff] }
  0x63   :  { %9180 = vmatprep.mubr.msk.f32.mxu1 %vm18_vm0, %v10176_v60  ;;  %9325 = vmatprep.subr.mxu0 %v10469_v48  ;;  %v10500_v60 = vld [vmem:[#allocation2 + $0x64] sm:$0xff] }
  0x64   :  { %9375 = vmatprep.subr.mxu1 %v10474_v50  ;;  %9131 = vmatmul.mubr.msk.f32.gmra.mxu0 %vm18_vm0, %v889_v56  ;;  %v10546_v56 = vld [vmem:[#allocation2 + $0xb4] sm:$0xff] }
  0x65   :  { %9181 = vmatmul.mubr.msk.f32.gmra.mxu1 %vm18_vm0, %v10188_v62  ;;  %9133 = vmatprep.mubr.msk.f32.mxu0 %vm18_vm0, %v10353_v52  ;;  %v10510_v62 = vld [vmem:[#allocation2 + $0x6c] sm:$0xff] }
  0x66   :  { %9183 = vmatprep.mubr.msk.f32.mxu1 %vm18_vm0, %v10192_v0 }
  0x68   :  { %9134 = vmatmul.mubr.msk.f32.gmra.mxu0 %vm18_vm0, %v10490_v58 }
  0x69   :  { %9184 = vmatmul.mubr.msk.f32.gmra.mxu1 %vm18_vm0, %v10204_v2  ;;  %9136 = vmatprep.mubr.msk.f32.mxu0 %vm18_vm0, %v10368_v8 }
  0x6a   :  { %9186 = vmatprep.mubr.msk.f32.mxu1 %vm18_vm0, %v10208_v4 }
  0x6c   :  { %9137 = vmatmul.mubr.msk.f32.gmra.mxu0 %vm18_vm0, %v10376_v12 }
  0x6d   :  { %9187 = vmatmul.mubr.msk.f32.gmra.mxu1 %vm18_vm0, %v10238_v15  ;;  %9139 = vmatprep.mubr.msk.f32.mxu0 %vm18_vm0, %v10500_v60 }
  0x6e   :  { %9189 = vmatprep.mubr.msk.f32.mxu1 %vm18_vm0, %v10250_v22 }
  0x70   :  { %9140 = vmatmul.mubr.msk.f32.gmra.mxu0 %vm18_vm0, %v10510_v62 }
  0x71   :  { %9190 = vmatmul.mubr.msk.f32.gmra.mxu1 %vm18_vm0, %v10276_v26  ;;  %9142 = vmatprep.mubr.msk.f32.mxu0 %vm18_vm0, %v10512_v20  ;;  %v10638_v26 = vld [vmem:[#allocation2 + $0x198] sm:$0xff] }
  0x72   :  { %9192 = vmatprep.mubr.msk.f32.mxu1 %vm18_vm0, %v10280_v28  ;;  %v10636_v28 = vld [vmem:[#allocation2 + $0x16c] sm:$0xff]  ;;  %13439 = vst [vmem:[#allocation29_spill] sm:$0xff] %v10638_v26 }
  0x74   :  { %9143 = vmatmul.mubr.msk.f32.gmra.mxu0 %vm18_vm0, %v10522_v24 }
  0x75   :  { %9193 = vmatmul.mubr.msk.f32.gmra.mxu1 %vm18_vm0, %v10292_v30  ;;  %9145 = vmatprep.mubr.msk.f32.mxu0 %vm18_vm0, %v10524_v53  ;;  %v10548_v30 = vld [vmem:[#allocation2 + $0xc4] sm:$0xff] }
  0x76   :  { %9195 = vmatprep.mubr.msk.f32.mxu1 %vm18_vm0, %v10296_v32  ;;  %v10560_v32 = vld [vmem:[#allocation2 + $0xdc] sm:$0xff] }
  0x78   :  { %9146 = vmatmul.mubr.msk.f32.gmra.mxu0 %vm18_vm0, %v10534_v54 }
  0x79   :  { %9196 = vmatmul.mubr.msk.f32.gmra.mxu1 %vm18_vm0, %v10308_v34  ;;  %9148 = vmatprep.mubr.msk.f32.mxu0 %vm18_vm0, %v10536_v9  ;;  %v10558_v34 = vld [vmem:[#allocation2 + $0xcc] sm:$0xff] }
  0x7a   :  { %9198 = vmatprep.mubr.msk.f32.mxu1 %vm18_vm0, %v10312_v36  ;;  %v10572_v36 = vld [vmem:[#allocation2 + $0xf4] sm:$0xff] }
  0x7c   :  { %9149 = vmatmul.mubr.msk.f32.gmra.mxu0 %vm18_vm0, %v10546_v56 }
  0x7d   :  { %9199 = vmatmul.mubr.msk.f32.gmra.mxu1 %vm18_vm0, %v10320_v38  ;;  %9151 = vmatprep.mubr.msk.f32.mxu0 %vm18_vm0, %v10548_v30  ;;  %v10570_v38 = vld [vmem:[#allocation2 + $0xe4] sm:$0xff] }
  0x7e   :  { %9201 = vmatprep.mubr.msk.f32.mxu1 %vm18_vm0, %v10337_v44  ;;  %v10584_v44 = vld [vmem:[#allocation2 + $0x10c] sm:$0xff] }
  0x80   :  { %9152 = vmatmul.mubr.msk.f32.gmra.mxu0 %vm18_vm0, %v10558_v34 }
  0x81   :  { %9202 = vmatmul.mubr.msk.f32.gmra.mxu1 %vm18_vm0, %v10366_v7  ;;  %9154 = vmatprep.mubr.msk.f32.mxu0 %vm18_vm0, %v10560_v32  ;;  %v10582_v7 = vld [vmem:[#allocation2 + $0xfc] sm:$0xff] }
  0x82   :  { %9204 = vmatprep.mubr.msk.f32.mxu1 %vm18_vm0, %v10374_v11  ;;  %v10596_v11 = vld [vmem:[#allocation2 + $0x124] sm:$0xff] }
  0x84   :  { %9155 = vmatmul.mubr.msk.f32.gmra.mxu0 %vm18_vm0, %v10570_v38 }
  0x85   :  { %9205 = vmatmul.mubr.msk.f32.gmra.mxu1 %vm18_vm0, %v10390_v14  ;;  %9157 = vmatprep.mubr.msk.f32.mxu0 %vm18_vm0, %v10572_v36  ;;  %v10594_v14 = vld [vmem:[#allocation2 + $0x114] sm:$0xff] }
  0x86   :  { %9207 = vmatprep.mubr.msk.f32.mxu1 %vm18_vm0, %v10394_v17  ;;  %v10608_v17 = vld [vmem:[#allocation2 + $0x13c] sm:$0xff] }
  0x88   :  { %9158 = vmatmul.mubr.msk.f32.gmra.mxu0 %vm18_vm0, %v10582_v7 }
  0x89   :  { %9208 = vmatmul.mubr.msk.f32.gmra.mxu1 %vm18_vm0, %v10406_v19  ;;  %9160 = vmatprep.mubr.msk.f32.mxu0 %vm18_vm0, %v10584_v44  ;;  %v10606_v19 = vld [vmem:[#allocation2 + $0x12c] sm:$0xff] }
  0x8a   :  { %9210 = vmatprep.mubr.msk.f32.mxu1 %vm18_vm0, %v10410_v39  ;;  %v10620_v39 = vld [vmem:[#allocation2 + $0x154] sm:$0xff] }
  0x8c   :  { %9161 = vmatmul.mubr.msk.f32.gmra.mxu0 %vm18_vm0, %v10594_v14 }
  0x8d   :  { %9211 = vmatmul.mubr.msk.f32.gmra.mxu1 %vm18_vm0, %v10422_v42  ;;  %9163 = vmatprep.mubr.msk.f32.mxu0 %vm18_vm0, %v10596_v11  ;;  %v10618_v42 = vld [vmem:[#allocation2 + $0x144] sm:$0xff] }
  0x8e   :  { %9213 = vmatprep.mubr.msk.f32.mxu1 %vm18_vm0, %v10426_v45  ;;  %v10622_v45 = vld [vmem:[#allocation2 + $0x180] sm:$0xff] }
  0x8f   :  { %13437 = vst [vmem:[#allocation27_spill] sm:$0xff] %v10622_v45 }
  0x90   :  { %9164 = vmatmul.mubr.msk.f32.gmra.mxu0 %vm18_vm0, %v10606_v19 }
  0x91   :  { %9214 = vmatmul.mubr.msk.f32.gmra.mxu1 %vm18_vm0, %v10438_v47  ;;  %9166 = vmatprep.mubr.msk.f32.mxu0 %vm18_vm0, %v10608_v17  ;;  %v10632_v47 = vld [vmem:[#allocation2 + $0x15c] sm:$0xff] }
  0x92   :  { %9216 = vmatprep.mubr.msk.f32.mxu1 %vm18_vm0, %v10442_v49  ;;  %v10634_v49 = vld [vmem:[#allocation2 + $0x188] sm:$0xff] }
  0x93   :  { %13438 = vst [vmem:[#allocation28_spill] sm:$0xff] %v10634_v49 }
  0x94   :  { %9167 = vmatmul.mubr.msk.f32.gmra.mxu0 %vm18_vm0, %v10618_v42 }
  0x95   :  { %9217 = vmatmul.mubr.msk.f32.gmra.mxu1 %vm18_vm0, %v10454_v51  ;;  %9169 = vmatprep.mubr.msk.f32.mxu0 %vm18_vm0, %v10620_v39  ;;  %v10650_v51 = vld [vmem:[#allocation2 + $0x1a0] sm:$0xff] }
  0x96   :  { %9219 = vmatprep.mubr.msk.f32.mxu1 %vm18_vm0, %v10622_v45  ;;  %v10648_v45 = vld [vmem:[#allocation2 + $0x174] sm:$0xff]  ;;  %13440 = vst [vmem:[#allocation30_spill] sm:$0xff] %v10650_v51 }
  0x98   :  { %9170 = vmatmul.mubr.msk.f32.gmra.mxu0 %vm18_vm0, %v10632_v47 }
  0x99   :  { %9220 = vmatmul.mubr.msk.f32.gmra.mxu1 %vm18_vm0, %v10634_v49  ;;  %9172 = vmatprep.mubr.msk.f32.mxu0 %vm18_vm0, %v10636_v28 }
  0x9a   :  { %9222 = vmatprep.mubr.msk.f32.mxu1 %vm18_vm0, %v10638_v26  ;;  %v8104_v26 = vld [vmem:[%s13370_s0 + $0x108] sm:$0xff] }
  0x9b   :  { %v3835_v49 = vmax.f32 %v8104_v26, 0.0  ;;  %v8108_v26 = vld [vmem:[%s13370_s0 + $0x128] sm:$0xff] }
  0x9c   :  { %9173 = vmatmul.mubr.msk.f32.gmra.mxu0 %vm18_vm0, %v10648_v45 }
  0x9d   :  { %9223 = vmatmul.mubr.msk.f32.gmra.mxu1 %vm18_vm0, %v10650_v51  ;;  %9227 = vmatprep.mubr.msk.f32.mxu0 %vm18_vm0, %v10159_v55  ;;  %v10670_v51 = vld [vmem:[%s13371_s1 + $0x40] sm:$0xff]  ;;  %v10675_v55 = vld [vmem:[%s13371_s1 + $0x8] sm:$0xff]  ;;  %3867 = vst.msk [vmem:[#allocation2 + $0x3a] sm:$0xff] %vm18_vm0, %v3835_v49 }
  0x9e   :  { %9277 = vmatprep.mubr.msk.f32.mxu1 %vm18_vm0, %v10353_v52  ;;  %v3839_v52 = vmax.f32 %v8108_v26, 0.0  ;;  %v8111_v49 = vld [vmem:[%s13370_s0 + $0x140] sm:$0xff] }
  0xa0   :  { %9228 = vmatmul.mubr.msk.f32.vlgmr.msra.gmra.mxu0 %vm18_vm0, %v10170_v57  ;;  %v8107_v57 = vld [vmem:[%s13370_s0 + $0x120] sm:$0xff]  ;;  %3871 = vst.msk [vmem:[#allocation2 + $0x6a] sm:$0xff] %vm18_vm0, %v3839_v52  ;;  %v8114_v52 = vld [vmem:[%s13370_s0 + $0x158] sm:$0xff] }
  0xa1   :  { %9278 = vmatmul.mubr.msk.f32.vlgmr.msra.gmra.mxu1 %vm18_vm0, %v10490_v58  ;;  %9326 = vmatpush3.msra.mxu0 %v10469_v48  ;;  %v8112_v58 = vld [vmem:[%s13370_s0 + $0x148] sm:$0xff] }
  0xa2   :  { %9376 = vmatpush3.msra.mxu1 %v10474_v50  ;;  %9230 = vmatprep.mubr.msk.f32.mxu0 %vm18_vm0, %v10174_v59  ;;  %v3838_v59 = vmax.f32 %v8107_v57, 0.0  ;;  %v3842_v50 = vmax.f32 %v8111_v49, 0.0  ;;  %v3843_v57 = vmax.f32 %v8112_v58, 0.0  ;;  %v8116_v49 = vld [vmem:[%s13370_s0 + $0x168] sm:$0xff] }
  0xa3   :  { %9280 = vmatprep.mubr.msk.f32.mxu1 %vm18_vm0, %v10368_v8  ;;  %9425 = vmatprep.subr.mxu0 %v10670_v51  ;;  %v10770_v58 = vld [vmem:[#allocation2 + $0xcc] sm:$0xff] }
  0xa4   :  { %9475 = vmatprep.subr.mxu1 %v10675_v55  ;;  %9231 = vmatmul.mubr.msk.f32.gmra.mxu0 %vm18_vm0, %v10186_v61  ;;  %3870 = vst.msk [vmem:[#allocation2 + $0x62] sm:$0xff] %vm18_vm0, %v3838_v59  ;;  %v8109_v61 = vld [vmem:[%s13370_s0 + $0x130] sm:$0xff]  ;;  %3874 = vst.msk [vmem:[#allocation2 + $0x92] sm:$0xff] %vm18_vm0, %v3842_v50  ;;  %v10768_v50 = vld [vmem:[#allocation2 + $0xc4] sm:$0xff] }
  0xa5   :  { %9281 = vmatmul.mubr.msk.f32.gmra.mxu1 %vm18_vm0, %v10376_v12  ;;  %9233 = vmatprep.mubr.msk.f32.mxu0 %vm18_vm0, %v10190_v63  ;;  %v3840_v8 = vmax.f32 %v8109_v61, 0.0  ;;  %v8110_v12 = vld [vmem:[%s13370_s0 + $0x138] sm:$0xff]  ;;  %3875 = vst.msk [vmem:[#allocation2 + $0x9a] sm:$0xff] %vm18_vm0, %v3843_v57  ;;  %v8113_v59 = vld [vmem:[%s13370_s0 + $0x150] sm:$0xff] }
  0xa6   :  { %9283 = vmatprep.mubr.msk.f32.mxu1 %vm18_vm0, %v10500_v60  ;;  %v3841_v48 = vmax.f32 %v8110_v12, 0.0  ;;  %v3844_v26 = vmax.f32 %v8113_v59, 0.0  ;;  %v10748_v61 = vld [vmem:[#allocation2 + $0xac] sm:$0xff]  ;;  %v10750_v12 = vld [vmem:[#allocation2 + $0xb4] sm:$0xff] }
  0xa7   :  { %3872 = vst.msk [vmem:[#allocation2 + $0x7a] sm:$0xff] %vm18_vm0, %v3840_v8  ;;  %v3845_v8 = vmax.f32 %v8114_v52, 0.0  ;;  %v8118_v59 = vld [vmem:[%s13370_s0 + $0x178] sm:$0xff]  ;;  %v10790_v52 = vld [vmem:[#allocation2 + $0xe4] sm:$0xff] }
  0xa8   :  { %9234 = vmatmul.mubr.msk.f32.gmra.mxu0 %vm18_vm0, %v10202_v1  ;;  %3873 = vst.msk [vmem:[#allocation2 + $0x82] sm:$0xff] %vm18_vm0, %v3841_v48  ;;  %3876 = vst.msk [vmem:[#allocation2 + $0xaa] sm:$0xff] %vm18_vm0, %v3844_v26  ;;  %v10788_v26 = vld [vmem:[#allocation2 + $0xdc] sm:$0xff] }
  0xa9   :  { %9284 = vmatmul.mubr.msk.f32.gmra.mxu1 %vm18_vm0, %v10510_v62  ;;  %9236 = vmatprep.mubr.msk.f32.mxu0 %vm18_vm0, %v10206_v3  ;;  %3877 = vst.msk [vmem:[#allocation2 + $0xb2] sm:$0xff] %vm18_vm0, %v3845_v8 }
  0xaa   :  { %9286 = vmatprep.mubr.msk.f32.mxu1 %vm18_vm0, %v10512_v20 }
  0xac   :  { %9237 = vmatmul.mubr.msk.f32.gmra.mxu0 %vm18_vm0, %v10210_v5 }
  0xad   :  { %9287 = vmatmul.mubr.msk.f32.gmra.mxu1 %vm18_vm0, %v10522_v24  ;;  %9239 = vmatprep.mubr.msk.f32.mxu0 %vm18_vm0, %v10248_v21 }
  0xae   :  { %9289 = vmatprep.mubr.msk.f32.mxu1 %vm18_vm0, %v10524_v53 }
  0xb0   :  { %9240 = vmatmul.mubr.msk.f32.gmra.mxu0 %vm18_vm0, %v10274_v25 }
  0xb1   :  { %9290 = vmatmul.mubr.msk.f32.gmra.mxu1 %vm18_vm0, %v10534_v54  ;;  %9242 = vmatprep.mubr.msk.f32.mxu0 %vm18_vm0, %v10278_v27 }
  0xb2   :  { %9292 = vmatprep.mubr.msk.f32.mxu1 %vm18_vm0, %v10536_v9  ;;  %v8115_v9 = vld [vmem:[%s13370_s0 + $0x160] sm:$0xff] }
  0xb3   :  { %v3846_v48 = vmax.f32 %v8115_v9, 0.0  ;;  %v8120_v9 = vld [vmem:[%s13370_s0 + $0x188] sm:$0xff] }
  0xb4   :  { %9243 = vmatmul.mubr.msk.f32.gmra.mxu0 %vm18_vm0, %v10290_v29 }
  0xb5   :  { %9293 = vmatmul.mubr.msk.f32.gmra.mxu1 %vm18_vm0, %v10546_v56  ;;  %9245 = vmatprep.mubr.msk.f32.mxu0 %vm18_vm0, %v10294_v31  ;;  %v3847_v56 = vmax.f32 %v8116_v49, 0.0  ;;  %3878 = vst.msk [vmem:[#allocation2 + $0xc2] sm:$0xff] %vm18_vm0, %v3846_v48  ;;  %v10808_v48 = vld [vmem:[#allocation2 + $0xf4] sm:$0xff]  ;;  %v10810_v49 = vld [vmem:[#allocation2 + $0xfc] sm:$0xff] }
  0xb6   :  { %9295 = vmatprep.mubr.msk.f32.mxu1 %vm18_vm0, %v10548_v30  ;;  %v8117_v30 = vld [vmem:[%s13370_s0 + $0x170] sm:$0xff] }
  0xb7   :  { %3879 = vst.msk [vmem:[#allocation2 + $0xca] sm:$0xff] %vm18_vm0, %v3847_v56  ;;  %v3848_v57 = vmax.f32 %v8117_v30, 0.0  ;;  %v8122_v30 = vld [vmem:[%s13370_s0 + $0x198] sm:$0xff] }
  0xb8   :  { %9246 = vmatmul.mubr.msk.f32.gmra.mxu0 %vm18_vm0, %v10306_v33 }
  0xb9   :  { %9296 = vmatmul.mubr.msk.f32.gmra.mxu1 %vm18_vm0, %v10558_v34  ;;  %9248 = vmatprep.mubr.msk.f32.mxu0 %vm18_vm0, %v10310_v35  ;;  %v3849_v34 = vmax.f32 %v8118_v59, 0.0  ;;  %3880 = vst.msk [vmem:[#allocation2 + $0xda] sm:$0xff] %vm18_vm0, %v3848_v57  ;;  %v10828_v57 = vld [vmem:[#allocation2 + $0x10c] sm:$0xff]  ;;  %v10830_v59 = vld [vmem:[#allocation2 + $0x114] sm:$0xff] }
  0xba   :  { %9298 = vmatprep.mubr.msk.f32.mxu1 %vm18_vm0, %v10560_v32  ;;  %v8119_v32 = vld [vmem:[%s13370_s0 + $0x180] sm:$0xff] }
  0xbb   :  { %3881 = vst.msk [vmem:[#allocation2 + $0xe2] sm:$0xff] %vm18_vm0, %v3849_v34  ;;  %v3850_v8 = vmax.f32 %v8119_v32, 0.0  ;;  %v8124_v32 = vld [vmem:[%s13370_s0 + $0x1a8] sm:$0xff] }
  0xbc   :  { %9249 = vmatmul.mubr.msk.f32.gmra.mxu0 %vm18_vm0, %v10318_v37 }
  0xbd   :  { %9299 = vmatmul.mubr.msk.f32.gmra.mxu1 %vm18_vm0, %v10570_v38  ;;  %9251 = vmatprep.mubr.msk.f32.mxu0 %vm18_vm0, %v10329_v40  ;;  %v3851_v38 = vmax.f32 %v8120_v9, 0.0  ;;  %3882 = vst.msk [vmem:[#allocation2 + $0xf2] sm:$0xff] %vm18_vm0, %v3850_v8  ;;  %v10848_v8 = vld [vmem:[#allocation2 + $0x124] sm:$0xff]  ;;  %v10850_v9 = vld [vmem:[#allocation2 + $0x12c] sm:$0xff] }
  0xbe   :  { %9301 = vmatprep.mubr.msk.f32.mxu1 %vm18_vm0, %v10572_v36  ;;  %v8121_v36 = vld [vmem:[%s13370_s0 + $0x190] sm:$0xff] }
  0xbf   :  { %3883 = vst.msk [vmem:[#allocation2 + $0xfa] sm:$0xff] %vm18_vm0, %v3851_v38  ;;  %v3852_v56 = vmax.f32 %v8121_v36, 0.0  ;;  %v8126_v36 = vld [vmem:[%s13370_s0 + $0x1b8] sm:$0xff] }
  0xc0   :  { %9252 = vmatmul.mubr.msk.f32.gmra.mxu0 %vm18_vm0, %v10364_v6 }
  0xc1   :  { %9302 = vmatmul.mubr.msk.f32.gmra.mxu1 %vm18_vm0, %v10582_v7  ;;  %9254 = vmatprep.mubr.msk.f32.mxu0 %vm18_vm0, %v10372_v10  ;;  %v3853_v7 = vmax.f32 %v8122_v30, 0.0  ;;  %3884 = vst.msk [vmem:[#allocation2 + $0x10a] sm:$0xff] %vm18_vm0, %v3852_v56  ;;  %v10868_v56 = vld [vmem:[#allocation2 + $0x13c] sm:$0xff]  ;;  %v10870_v30 = vld [vmem:[#allocation2 + $0x144] sm:$0xff] }
  0xc2   :  { %9304 = vmatprep.mubr.msk.f32.mxu1 %vm18_vm0, %v10584_v44  ;;  %v8123_v44 = vld [vmem:[%s13370_s0 + $0x1a0] sm:$0xff] }
  0xc3   :  { %3885 = vst.msk [vmem:[#allocation2 + $0x112] sm:$0xff] %vm18_vm0, %v3853_v7  ;;  %v3854_v34 = vmax.f32 %v8123_v44, 0.0  ;;  %v8128_v44 = vld [vmem:[%s13370_s0 + $0x1c8] sm:$0xff] }
  0xc4   :  { %9255 = vmatmul.mubr.msk.f32.gmra.mxu0 %vm18_vm0, %v10388_v13 }
  0xc5   :  { %9305 = vmatmul.mubr.msk.f32.gmra.mxu1 %vm18_vm0, %v10594_v14  ;;  %9257 = vmatprep.mubr.msk.f32.mxu0 %vm18_vm0, %v10392_v16  ;;  %v3855_v14 = vmax.f32 %v8124_v32, 0.0  ;;  %3886 = vst.msk [vmem:[#allocation2 + $0x122] sm:$0xff] %vm18_vm0, %v3854_v34  ;;  %v10888_v34 = vld [vmem:[#allocation2 + $0x154] sm:$0xff]  ;;  %v10890_v32 = vld [vmem:[#allocation2 + $0x15c] sm:$0xff] }
  0xc6   :  { %9307 = vmatprep.mubr.msk.f32.mxu1 %vm18_vm0, %v10596_v11  ;;  %v8125_v11 = vld [vmem:[%s13370_s0 + $0x1b0] sm:$0xff]  ;;  %13441 = vst [vmem:[#allocation31_spill] sm:$0xff] %v10890_v32 }
  0xc7   :  { %3887 = vst.msk [vmem:[#allocation2 + $0x12a] sm:$0xff] %vm18_vm0, %v3855_v14  ;;  %v3856_v38 = vmax.f32 %v8125_v11, 0.0  ;;  %v13442_v14 = vld [vmem:[#allocation23_spill] sm:$0xff]  ;;  %v8131_v11 = vld [vmem:[%s13370_s0 + $0x1e0] sm:$0xff] }
  0xc8   :  { %9258 = vmatmul.mubr.msk.f32.gmra.mxu0 %vm18_vm0, %v10404_v18 }
  0xc9   :  { %9308 = vmatmul.mubr.msk.f32.gmra.mxu1 %vm18_vm0, %v10606_v19  ;;  %9260 = vmatprep.mubr.msk.f32.mxu0 %vm18_vm0, %v10408_v23  ;;  %v3857_v19 = vmax.f32 %v8126_v36, 0.0  ;;  %3888 = vst.msk [vmem:[#allocation2 + $0x13a] sm:$0xff] %vm18_vm0, %v3856_v38  ;;  %v10911_v36 = vld [vmem:[#allocation2 + $0x182] sm:$0xff] }
  0xca   :  { %9310 = vmatprep.mubr.msk.f32.mxu1 %vm18_vm0, %v10608_v17  ;;  %v8127_v17 = vld [vmem:[%s13370_s0 + $0x1c0] sm:$0xff] }
  0xcb   :  { %3889 = vst.msk [vmem:[#allocation2 + $0x142] sm:$0xff] %vm18_vm0, %v3857_v19  ;;  %v3858_v7 = vmax.f32 %v8127_v17, 0.0  ;;  %v10913_v19 = vld [vmem:[#allocation2 + $0x184] sm:$0xff]  ;;  %v10915_v17 = vld [vmem:[#allocation2 + $0x16c] sm:$0xff] }
  0xcc   :  { %9261 = vmatmul.mubr.msk.f32.gmra.mxu0 %vm18_vm0, %v10420_v41  ;;  %13443 = vst [vmem:[#allocation23_spill] sm:$0xff] %v10913_v19 }
  0xcd   :  { %9311 = vmatmul.mubr.msk.f32.gmra.mxu1 %vm18_vm0, %v10618_v42  ;;  %9263 = vmatprep.mubr.msk.f32.mxu0 %vm18_vm0, %v10424_v43  ;;  %v3859_v42 = vmax.f32 %v8128_v44, 0.0  ;;  %3890 = vst.msk [vmem:[#allocation2 + $0x152] sm:$0xff] %vm18_vm0, %v3858_v7  ;;  %v3862_v7 = vmax.f32 %v8131_v11, 0.0  ;;  %v10933_v11 = vld [vmem:[#allocation2 + $0x18a] sm:$0xff] }
  0xce   :  { %9313 = vmatprep.mubr.msk.f32.mxu1 %vm18_vm0, %v10620_v39  ;;  %v8129_v39 = vld [vmem:[%s13370_s0 + $0x1d0] sm:$0xff] }
  0xcf   :  { %3891 = vst.msk [vmem:[#allocation2 + $0x15a] sm:$0xff] %vm18_vm0, %v3859_v42  ;;  %v3860_v38 = vmax.f32 %v8129_v39, 0.0  ;;  %v10917_v42 = vld [vmem:[#allocation2 + $0x174] sm:$0xff]  ;;  %3894 = vst.msk [vmem:[#allocation2 + $0x182] sm:$0xff] %vm18_vm0, %v3862_v7  ;;  %v2077_v7 = vld [vmem:[#allocation2 + $0x19c] sm:$0xff] }
  0xd0   :  { %9264 = vmatmul.mubr.msk.f32.gmra.mxu0 %vm18_vm0, %v10436_v46  ;;  %13444 = vst [vmem:[#allocation32_spill] sm:$0xff] %v10917_v42  ;;  %v13445_v39 = vld [vmem:[#allocation25_spill] sm:$0xff] }
  0xd1   :  { %9314 = vmatmul.mubr.msk.f32.gmra.mxu1 %vm18_vm0, %v10632_v47  ;;  %9266 = vmatprep.mubr.msk.f32.mxu0 %vm18_vm0, %v13442_v14  ;;  %v8130_v47 = vld [vmem:[%s13370_s0 + $0x1d8] sm:$0xff]  ;;  %3892 = vst.msk [vmem:[#allocation2 + $0x16a] sm:$0xff] %vm18_vm0, %v3860_v38  ;;  %v10935_v38 = vld [vmem:[#allocation2 + $0x18c] sm:$0xff] }
  0xd2   :  { %9316 = vmatprep.mubr.msk.f32.mxu1 %vm18_vm0, %v10636_v28  ;;  %v3861_v44 = vmax.f32 %v8130_v47, 0.0  ;;  %v8132_v28 = vld [vmem:[%s13370_s0 + $0x1e8] sm:$0xff]  ;;  %13446 = vst [vmem:[#allocation25_spill] sm:$0xff] %v10935_v38  ;;  %v8133_v47 = vld [vmem:[%s13370_s0 + $0x1f0] sm:$0xff] }
  0xd3   :  { %v3863_v32 = vmax.f32 %v8132_v28, 0.0  ;;  %v10943_v28 = vld [vmem:[#allocation2 + $0x19c] sm:$0xff] }
  0xd4   :  { %9267 = vmatmul.mubr.msk.f32.gmra.mxu0 %vm18_vm0, %v13445_v39  ;;  %3893 = vst.msk [vmem:[#allocation2 + $0x172] sm:$0xff] %vm18_vm0, %v3861_v44  ;;  %v3864_v44 = vmax.f32 %v8133_v47, 0.0  ;;  %13447 = vst [vmem:[#allocation33_spill] sm:$0xff] %v10943_v28  ;;  %v2078_v47 = vld [vmem:[#allocation2 + $0x1a4] sm:$0xff] }
  0xd5   :  { %9317 = vmatmul.mubr.msk.f32.gmra.mxu1 %vm18_vm0, %v10648_v45  ;;  %9269 = vmatprep.mubr.msk.f32.mxu0 %vm18_vm0, %v10911_v36  ;;  %v10940_v45 = vld [vmem:[#allocation2 + $0x19a] sm:$0xff]  ;;  %3895 = vst.msk [vmem:[#allocation2 + $0x18a] sm:$0xff] %vm18_vm0, %v3863_v32  ;;  %v10956_v32 = vld [vmem:[#allocation2 + $0x1a2] sm:$0xff] }
  0xd6   :  { %9319 = vmatprep.mubr.msk.f32.mxu1 %vm18_vm0, %v10913_v19  ;;  %v8134_v19 = vld [vmem:[%s13370_s0 + $0x1f8] sm:$0xff]  ;;  %3896 = vst.msk [vmem:[#allocation2 + $0x19a] sm:$0xff] %vm18_vm0, %v3864_v44  ;;  %v10958_v28 = vld [vmem:[#allocation2 + $0x1a4] sm:$0xff] }
  0xd7   :  { %v3865_v42 = vmax.f32 %v8134_v19, 0.0  ;;  %13448 = vst [vmem:[#allocation34_spill] sm:$0xff] %v10958_v28 }
  0xd8   :  { %9270 = vmatmul.mubr.msk.f32.gmra.mxu0 %vm18_vm0, %v10933_v11 }
  0xd9   :  { %9320 = vmatmul.mubr.msk.f32.gmra.mxu1 %vm18_vm0, %v10935_v38  ;;  %9272 = vmatprep.mubr.msk.f32.mxu0 %vm18_vm0, %v10940_v45  ;;  %3897 = vst.msk [vmem:[#allocation2 + $0x1a2] sm:$0xff] %vm18_vm0, %v3865_v42  ;;  %v10975_v42 = vld [vmem:[%s13371_s1] sm:$0xff] }
  0xda   :  { %9322 = vmatprep.mubr.msk.f32.mxu1 %vm18_vm0, %v2077_v7  ;;  %v9079_v7 = vpop.f32.mrf.mxu1 }
  0xdc   :  { %9273 = vmatmul.mubr.msk.f32.gmra.mxu0 %vm18_vm0, %v10956_v32 }
  0xdd   :  { %9323 = vmatmul.mubr.msk.f32.gmra.mxu1 %vm18_vm0, %v2078_v47  ;;  %9327 = vmatprep.mubr.msk.f32.mxu0 %vm18_vm0, %v10192_v0  ;;  %v10980_v0 = vld [vmem:[%s13371_s1 + $0x10] sm:$0xff] }
  0xde   :  { %9377 = vmatprep.mubr.msk.f32.mxu1 %vm18_vm0, %v10190_v63  ;;  %v9029_v19 = vpop.f32.mrf.mxu0 }
  0xdf   :  { %v10982_v44 = vadd.f32 %v9079_v7, %v9029_v19 }
  0xe0   :  { %9328 = vmatmul.mubr.msk.f32.vlgmr.msra.gmra.mxu0 %vm18_vm0, %v10204_v2  ;;  %v406_v63 = vpop.f32.mrf.mxu0  ;;  %v727_v2 = vpop.f32.mrf.mxu1 }
  0xe1   :  { %9378 = vmatmul.mubr.msk.f32.vlgmr.msra.gmra.mxu1 %vm18_vm0, %v10202_v1  ;;  %9426 = vmatpush3.msra.mxu0 %v10670_v51  ;;  %v10990_v1 = vadd.f32 %v727_v2, %v406_v63  ;;  %v13449_v2 = vld [vmem:[#allocation6_spill] sm:$0xff] }
  0xe2   :  { %9476 = vmatpush3.msra.mxu1 %v10675_v55  ;;  %9330 = vmatprep.mubr.msk.f32.mxu0 %vm18_vm0, %v10208_v4  ;;  %v9032_v47 = vpop.f32.mrf.mxu0  ;;  %v9082_v19 = vpop.f32.mrf.mxu1 }
  0xe3   :  { %9380 = vmatprep.mubr.msk.f32.mxu1 %vm18_vm0, %v10206_v3  ;;  %9525 = vmatprep.subr.mxu0 %v10975_v42  ;;  %v10998_v51 = vadd.f32 %v9082_v19, %v9032_v47 }
  0xe4   :  { %9575 = vmatprep.subr.mxu1 %v10980_v0  ;;  %9331 = vmatmul.mubr.msk.f32.gmra.mxu0 %vm18_vm0, %v10238_v15  ;;  %v416_v3 = vpop.f32.mrf.mxu0  ;;  %v737_v4 = vpop.f32.mrf.mxu1  ;;  %v13450_v15 = vld [vmem:[#allocation7_spill] sm:$0xff] }
  0xe5   :  { %9381 = vmatmul.mubr.msk.f32.gmra.mxu1 %vm18_vm0, %v10210_v5  ;;  %9333 = vmatprep.mubr.msk.f32.mxu0 %vm18_vm0, %v10250_v22  ;;  %v11004_v55 = vadd.f32 %v737_v4, %v416_v3  ;;  %v13451_v4 = vld [vmem:[#allocation8_spill] sm:$0xff] }
  0xe6   :  { %9383 = vmatprep.mubr.msk.f32.mxu1 %vm18_vm0, %v10248_v21 }
  0xe8   :  { %v9035_v7 = vpop.f32.mrf.mxu0  ;;  %9334 = vmatmul.mubr.msk.f32.gmra.mxu0 %vm18_vm0, %v13449_v2 }
  0xe9   :  { %v9085_v63 = vpop.f32.mrf.mxu1  ;;  %9384 = vmatmul.mubr.msk.f32.gmra.mxu1 %vm18_vm0, %v10274_v25  ;;  %9336 = vmatprep.mubr.msk.f32.mxu0 %vm18_vm0, %v13450_v15 }
  0xea   :  { %v11010_v5 = vadd.f32 %v9085_v63, %v9035_v7  ;;  %9386 = vmatprep.mubr.msk.f32.mxu1 %vm18_vm0, %v10278_v27  ;;  %v426_v21 = vpop.f32.mrf.mxu0  ;;  %v13452_v7 = vld [vmem:[#allocation9_spill] sm:$0xff] }
  0xeb   :  { %v747_v22 = vpop.f32.mrf.mxu1 }
  0xec   :  { %v11016_v47 = vadd.f32 %v747_v22, %v426_v21  ;;  %v9038_v19 = vpop.f32.mrf.mxu0  ;;  %9337 = vmatmul.mubr.msk.f32.gmra.mxu0 %vm18_vm0, %v13451_v4  ;;  %v13453_v22 = vld [vmem:[#allocation10_spill] sm:$0xff] }
  0xed   :  { %v9088_v3 = vpop.f32.mrf.mxu1  ;;  %9387 = vmatmul.mubr.msk.f32.gmra.mxu1 %vm18_vm0, %v10290_v29  ;;  %9339 = vmatprep.mubr.msk.f32.mxu0 %vm18_vm0, %v13452_v7 }
  0xee   :  { %v11022_v25 = vadd.f32 %v9088_v3, %v9038_v19  ;;  %9389 = vmatprep.mubr.msk.f32.mxu1 %vm18_vm0, %v10294_v31  ;;  %v436_v27 = vpop.f32.mrf.mxu0  ;;  %v13454_v19 = vld [vmem:[#allocation11_spill] sm:$0xff] }
  0xef   :  { %v757_v63 = vpop.f32.mrf.mxu1 }
  0xf0   :  { %v11028_v2 = vadd.f32 %v757_v63, %v436_v27  ;;  %v9041_v15 = vpop.f32.mrf.mxu0  ;;  %9340 = vmatmul.mubr.msk.f32.gmra.mxu0 %vm18_vm0, %v13453_v22  ;;  %v13455_v63 = vld [vmem:[#allocation12_spill] sm:$0xff] }
  0xf1   :  { %v9091_v21 = vpop.f32.mrf.mxu1  ;;  %9390 = vmatmul.mubr.msk.f32.gmra.mxu1 %vm18_vm0, %v10306_v33  ;;  %9342 = vmatprep.mubr.msk.f32.mxu0 %vm18_vm0, %v13454_v19 }
  0xf2   :  { %v11034_v29 = vadd.f32 %v9091_v21, %v9041_v15  ;;  %9392 = vmatprep.mubr.msk.f32.mxu1 %vm18_vm0, %v10310_v35  ;;  %v446_v31 = vpop.f32.mrf.mxu0  ;;  %v13456_v15 = vld [vmem:[#allocation13_spill] sm:$0xff] }
  0xf3   :  { %v767_v3 = vpop.f32.mrf.mxu1 }
  0xf4   :  { %v11040_v4 = vadd.f32 %v767_v3, %v446_v31  ;;  %v9044_v7 = vpop.f32.mrf.mxu0  ;;  %9343 = vmatmul.mubr.msk.f32.gmra.mxu0 %vm18_vm0, %v13455_v63  ;;  %v13457_v3 = vld [vmem:[#allocation14_spill] sm:$0xff] }
  0xf5   :  { %v9094_v27 = vpop.f32.mrf.mxu1  ;;  %9393 = vmatmul.mubr.msk.f32.gmra.mxu1 %vm18_vm0, %v10318_v37  ;;  %9345 = vmatprep.mubr.msk.f32.mxu0 %vm18_vm0, %v13456_v15 }
  0xf6   :  { %v11046_v33 = vadd.f32 %v9094_v27, %v9044_v7  ;;  %9395 = vmatprep.mubr.msk.f32.mxu1 %vm18_vm0, %v10329_v40  ;;  %v456_v35 = vpop.f32.mrf.mxu0  ;;  %v13458_v7 = vld [vmem:[#allocation15_spill] sm:$0xff] }
  0xf7   :  { %v777_v21 = vpop.f32.mrf.mxu1 }
  0xf8   :  { %v11052_v22 = vadd.f32 %v777_v21, %v456_v35  ;;  %v9047_v19 = vpop.f32.mrf.mxu0  ;;  %9346 = vmatmul.mubr.msk.f32.gmra.mxu0 %vm18_vm0, %v13457_v3  ;;  %v13459_v21 = vld [vmem:[#allocation16_spill] sm:$0xff] }
  0xf9   :  { %v9097_v31 = vpop.f32.mrf.mxu1  ;;  %9396 = vmatmul.mubr.msk.f32.gmra.mxu1 %vm18_vm0, %v10364_v6  ;;  %9348 = vmatprep.mubr.msk.f32.mxu0 %vm18_vm0, %v13458_v7 }
  0xfa   :  { %v11058_v37 = vadd.f32 %v9097_v31, %v9047_v19  ;;  %9398 = vmatprep.mubr.msk.f32.mxu1 %vm18_vm0, %v10372_v10  ;;  %v466_v40 = vpop.f32.mrf.mxu0  ;;  %v13460_v19 = vld [vmem:[#allocation17_spill] sm:$0xff] }
  0xfb   :  { %v787_v27 = vpop.f32.mrf.mxu1 }
  0xfc   :  { %v11064_v63 = vadd.f32 %v787_v27, %v466_v40  ;;  %v9050_v15 = vpop.f32.mrf.mxu0  ;;  %9349 = vmatmul.mubr.msk.f32.gmra.mxu0 %vm18_vm0, %v13459_v21  ;;  %v13461_v27 = vld [vmem:[#allocation18_spill] sm:$0xff] }
  0xfd   :  { %v9100_v35 = vpop.f32.mrf.mxu1  ;;  %9399 = vmatmul.mubr.msk.f32.gmra.mxu1 %vm18_vm0, %v10388_v13  ;;  %9351 = vmatprep.mubr.msk.f32.mxu0 %vm18_vm0, %v13460_v19 }
  0xfe   :  { %v11070_v6 = vadd.f32 %v9100_v35, %v9050_v15  ;;  %9401 = vmatprep.mubr.msk.f32.mxu1 %vm18_vm0, %v10392_v16  ;;  %v476_v10 = vpop.f32.mrf.mxu0  ;;  %v13462_v15 = vld [vmem:[#allocation19_spill] sm:$0xff] }
  0xff   :  { %v797_v31 = vpop.f32.mrf.mxu1 }
 0x100   :  { %v11076_v3 = vadd.f32 %v797_v31, %v476_v10  ;;  %v9053_v7 = vpop.f32.mrf.mxu0  ;;  %9352 = vmatmul.mubr.msk.f32.gmra.mxu0 %vm18_vm0, %v13461_v27  ;;  %v13463_v31 = vld [vmem:[#allocation20_spill] sm:$0xff] }
 0x101   :  { %v9103_v40 = vpop.f32.mrf.mxu1  ;;  %9402 = vmatmul.mubr.msk.f32.gmra.mxu1 %vm18_vm0, %v10404_v18  ;;  %9354 = vmatprep.mubr.msk.f32.mxu0 %vm18_vm0, %v13462_v15 }
 0x102   :  { %v11082_v13 = vadd.f32 %v9103_v40, %v9053_v7  ;;  %9404 = vmatprep.mubr.msk.f32.mxu1 %vm18_vm0, %v10408_v23  ;;  %v486_v16 = vpop.f32.mrf.mxu0  ;;  %v13464_v7 = vld [vmem:[#allocation21_spill] sm:$0xff] }
 0x103   :  { %v807_v35 = vpop.f32.mrf.mxu1 }
 0x104   :  { %v11088_v21 = vadd.f32 %v807_v35, %v486_v16  ;;  %v9056_v19 = vpop.f32.mrf.mxu0  ;;  %9355 = vmatmul.mubr.msk.f32.gmra.mxu0 %vm18_vm0, %v13463_v31  ;;  %v13465_v35 = vld [vmem:[#allocation22_spill] sm:$0xff] }
 0x105   :  { %v9106_v10 = vpop.f32.mrf.mxu1  ;;  %9405 = vmatmul.mubr.msk.f32.gmra.mxu1 %vm18_vm0, %v10420_v41  ;;  %9357 = vmatprep.mubr.msk.f32.mxu0 %vm18_vm0, %v13464_v7 }
 0x106   :  { %v11094_v18 = vadd.f32 %v9106_v10, %v9056_v19  ;;  %9407 = vmatprep.mubr.msk.f32.mxu1 %vm18_vm0, %v10424_v43  ;;  %v496_v23 = vpop.f32.mrf.mxu0  ;;  %v13466_v19 = vld [vmem:[#allocation24_spill] sm:$0xff] }
 0x107   :  { %v817_v40 = vpop.f32.mrf.mxu1 }
 0x108   :  { %v11100_v27 = vadd.f32 %v817_v40, %v496_v23  ;;  %v9059_v15 = vpop.f32.mrf.mxu0  ;;  %9358 = vmatmul.mubr.msk.f32.gmra.mxu0 %vm18_vm0, %v13465_v35  ;;  %v13467_v40 = vld [vmem:[#allocation26_spill] sm:$0xff] }
 0x109   :  { %v9109_v16 = vpop.f32.mrf.mxu1  ;;  %9408 = vmatmul.mubr.msk.f32.gmra.mxu1 %vm18_vm0, %v10436_v46  ;;  %9360 = vmatprep.mubr.msk.f32.mxu0 %vm18_vm0, %v13466_v19 }
 0x10a   :  { %v11106_v41 = vadd.f32 %v9109_v16, %v9059_v15  ;;  %9410 = vmatprep.mubr.msk.f32.mxu1 %vm18_vm0, %v13442_v14  ;;  %v506_v43 = vpop.f32.mrf.mxu0  ;;  %v13468_v15 = vld [vmem:[#allocation27_spill] sm:$0xff] }
 0x10b   :  { %v827_v10 = vpop.f32.mrf.mxu1 }
 0x10c   :  { %v11112_v31 = vadd.f32 %v827_v10, %v506_v43  ;;  %v9062_v7 = vpop.f32.mrf.mxu0  ;;  %9361 = vmatmul.mubr.msk.f32.gmra.mxu0 %vm18_vm0, %v13467_v40  ;;  %v13469_v10 = vld [vmem:[#allocation28_spill] sm:$0xff] }
 0x10d   :  { %v9112_v23 = vpop.f32.mrf.mxu1  ;;  %9411 = vmatmul.mubr.msk.f32.gmra.mxu1 %vm18_vm0, %v13445_v39  ;;  %9363 = vmatprep.mubr.msk.f32.mxu0 %vm18_vm0, %v13468_v15  ;;  %v2463_v40 = vld [vmem:[#allocation2 + $0x1b0] sm:$0xff] }
 0x10e   :  { %v11118_v46 = vadd.f32 %v9112_v23, %v9062_v7  ;;  %9413 = vmatprep.mubr.msk.f32.mxu1 %vm18_vm0, %v10911_v36  ;;  %v516_v14 = vpop.f32.mrf.mxu0  ;;  %v13471_v7 = vld [vmem:[#allocation29_spill] sm:$0xff] }
 0x10f   :  { %v837_v16 = vpop.f32.mrf.mxu1  ;;  %v2850_v15 = vld [vmem:[#allocation2 + $0x1b2] sm:$0xff] }
 0x110   :  { %v11124_v35 = vadd.f32 %v837_v16, %v516_v14  ;;  %v9065_v19 = vpop.f32.mrf.mxu0  ;;  %9364 = vmatmul.mubr.msk.f32.gmra.mxu0 %vm18_vm0, %v13469_v10  ;;  %v13473_v10 = vld [vmem:[#allocation30_spill] sm:$0xff] }
 0x111   :  { %v9115_v43 = vpop.f32.mrf.mxu1  ;;  %9414 = vmatmul.mubr.msk.f32.gmra.mxu1 %vm18_vm0, %v10933_v11  ;;  %9366 = vmatprep.mubr.msk.f32.mxu0 %vm18_vm0, %v13471_v7 }
 0x112   :  { %v11130_v39 = vadd.f32 %v9115_v43, %v9065_v19  ;;  %9416 = vmatprep.mubr.msk.f32.mxu1 %vm18_vm0, %v10940_v45  ;;  %v526_v36 = vpop.f32.mrf.mxu0  ;;  %v2464_v45 = vld [vmem:[#allocation2 + $0x1b8] sm:$0xff] }
 0x113   :  { %v847_v23 = vpop.f32.mrf.mxu1  ;;  %v2851_v19 = vld [vmem:[#allocation2 + $0x1ba] sm:$0xff] }
 0x114   :  { %13470 = vst [vmem:[#allocation6_spill] sm:$0xff] %v11130_v39  ;;  %v11136_v14 = vadd.f32 %v847_v23, %v526_v36  ;;  %v9068_v16 = vpop.f32.mrf.mxu0  ;;  %9367 = vmatmul.mubr.msk.f32.gmra.mxu0 %vm18_vm0, %v13473_v10  ;;  %v2465_v36 = vld [vmem:[#allocation2 + $0x1c8] sm:$0xff] }
 0x115   :  { %v9118_v28 = vpop.f32.mrf.mxu1  ;;  %9417 = vmatmul.mubr.msk.f32.gmra.mxu1 %vm18_vm0, %v10956_v32  ;;  %9369 = vmatprep.mubr.msk.f32.mxu0 %vm18_vm0, %v2463_v40  ;;  %v2852_v23 = vld [vmem:[#allocation2 + $0x1ca] sm:$0xff]  ;;  %v2853_v40 = vld [vmem:[#allocation2 + $0x1d2] sm:$0xff]  ;;  %v3931_v10 = vld [vmem:[#allocation2 + $0x2] sm:$0xff] }
 0x116   :  { %13472 = vst [vmem:[#allocation7_spill] sm:$0xff] %v11136_v14  ;;  %v11142_v11 = vadd.f32 %v9118_v28, %v9068_v16  ;;  %9419 = vmatprep.mubr.msk.f32.mxu1 %vm18_vm0, %v2850_v15  ;;  %v536_v43 = vpop.f32.mrf.mxu0  ;;  %v2466_v32 = vld [vmem:[#allocation2 + $0x1d0] sm:$0xff] }
 0x117   :  { %v857_v7 = vpop.f32.mrf.mxu1 }
 0x118   :  { %13474 = vst [vmem:[#allocation8_spill] sm:$0xff] %v11142_v11  ;;  %v11146_v14 = vadd.f32 %v857_v7, %v536_v43  ;;  %v9071_v39 = vpop.f32.mrf.mxu0  ;;  %9370 = vmatmul.mubr.msk.f32.gmra.mxu0 %vm18_vm0, %v2464_v45 }
 0x119   :  { %v9121_v38 = vpop.f32.mrf.mxu1  ;;  %9420 = vmatmul.mubr.msk.f32.gmra.mxu1 %vm18_vm0, %v2851_v19  ;;  %9372 = vmatprep.mubr.msk.f32.mxu0 %vm18_vm0, %v2465_v36 }
 0x11a   :  { %v11150_v28 = vadd.f32 %v9121_v38, %v9071_v39  ;;  %9422 = vmatprep.mubr.msk.f32.mxu1 %vm18_vm0, %v2852_v23  ;;  %v546_v15 = vpop.f32.mrf.mxu0  ;;  %v3932_v38 = vld [vmem:[#allocation2 + $0xa] sm:$0xff]  ;;  %v3933_v23 = vld [vmem:[#allocation2 + $0x1a] sm:$0xff] }
 0x11b   :  { %v867_v16 = vpop.f32.mrf.mxu1 }
 0x11c   :  { %v11154_v11 = vadd.f32 %v867_v16, %v546_v15  ;;  %v9074_v43 = vpop.f32.mrf.mxu0  ;;  %9373 = vmatmul.mubr.msk.f32.gmra.mxu0 %vm18_vm0, %v2466_v32  ;;  %v11171_v32 = vld [vmem:[%s13371_s1 + $0x18] sm:$0xff] }
 0x11d   :  { %v9124_v7 = vpop.f32.mrf.mxu1  ;;  %9423 = vmatmul.mubr.msk.f32.gmra.mxu1 %vm18_vm0, %v2853_v40  ;;  %9427 = vmatprep.mubr.msk.f32.mxu0 %vm18_vm0, %v10500_v60  ;;  %v11176_v60 = vld [vmem:[%s13371_s1 + $0x20] sm:$0xff] }
 0x11e   :  { %v11158_v45 = vadd.f32 %v9124_v7, %v9074_v43  ;;  %9477 = vmatprep.mubr.msk.f32.mxu1 %vm18_vm0, %v3931_v10  ;;  %v556_v39 = vpop.f32.mrf.mxu0  ;;  %v3934_v10 = vld [vmem:[#allocation2 + $0x22] sm:$0xff]  ;;  %v3935_v7 = vld [vmem:[#allocation2 + $0x32] sm:$0xff] }
 0x11f   :  { %v877_v19 = vpop.f32.mrf.mxu1 }
 0x120   :  { %v11163_v36 = vadd.f32 %v877_v19, %v556_v39  ;;  %v9129_v15 = vpop.f32.mrf.mxu0  ;;  %9428 = vmatmul.mubr.msk.f32.vlgmr.msra.gmra.mxu0 %vm18_vm0, %v10510_v62 }
 0x121   :  { %v9179_v16 = vpop.f32.mrf.mxu1  ;;  %9478 = vmatmul.mubr.msk.f32.vlgmr.msra.gmra.mxu1 %vm18_vm0, %v3932_v38  ;;  %v1242_v40 = vadd.f32 %v9129_v15, %v10982_v44  ;;  %9526 = vmatpush3.msra.mxu0 %v10975_v42  ;;  %v3937_v15 = vld [vmem:[#allocation2 + $0x4a] sm:$0xff] }
 0x122   :  { %9576 = vmatpush3.msra.mxu1 %v10980_v0  ;;  %v1082_v62 = vpop.f32.mrf.mxu0  ;;  %9430 = vmatprep.mubr.msk.f32.mxu0 %vm18_vm0, %v10512_v20 }
 0x123   :  { %v1469_v43 = vpop.f32.mrf.mxu1  ;;  %9480 = vmatprep.mubr.msk.f32.mxu1 %vm18_vm0, %v3933_v23  ;;  %v11184_v38 = vadd.f32 %v9179_v16, %v1242_v40  ;;  %v1241_v39 = vadd.f32 %v1082_v62, %v10990_v1  ;;  %9625 = vmatprep.subr.mxu0 %v11171_v32  ;;  %v3936_v1 = vld [vmem:[#allocation2 + $0x3a] sm:$0xff] }
 0x124   :  { %9675 = vmatprep.subr.mxu1 %v11176_v60  ;;  %v9132_v42 = vpop.f32.mrf.mxu0  ;;  %9431 = vmatmul.mubr.msk.f32.gmra.mxu0 %vm18_vm0, %v10522_v24 }
 0x125   :  { %v9182_v44 = vpop.f32.mrf.mxu1  ;;  %9481 = vmatmul.mubr.msk.f32.gmra.mxu1 %vm18_vm0, %v3934_v10  ;;  %v11192_v0 = vadd.f32 %v1469_v43, %v1241_v39  ;;  %v1244_v20 = vadd.f32 %v9132_v42, %v10998_v51  ;;  %9433 = vmatprep.mubr.msk.f32.mxu0 %vm18_vm0, %v10524_v53  ;;  %v3938_v10 = vld [vmem:[#allocation2 + $0x52] sm:$0xff] }
 0x126   :  { %9483 = vmatprep.mubr.msk.f32.mxu1 %vm18_vm0, %v3935_v7  ;;  %v1092_v19 = vpop.f32.mrf.mxu0 }
 0x127   :  { %v1479_v23 = vpop.f32.mrf.mxu1  ;;  %v11198_v16 = vadd.f32 %v9182_v44, %v1244_v20  ;;  %v1243_v40 = vadd.f32 %v1092_v19, %v11004_v55  ;;  %v3939_v55 = vld [vmem:[#allocation2 + $0x62] sm:$0xff]  ;;  %v3940_v20 = vld [vmem:[#allocation2 + $0x6a] sm:$0xff] }
 0x128   :  { %v9135_v24 = vpop.f32.mrf.mxu0  ;;  %9434 = vmatmul.mubr.msk.f32.gmra.mxu0 %vm18_vm0, %v10534_v54 }
 0x129   :  { %v9185_v62 = vpop.f32.mrf.mxu1  ;;  %9484 = vmatmul.mubr.msk.f32.gmra.mxu1 %vm18_vm0, %v3936_v1  ;;  %v11204_v51 = vadd.f32 %v1479_v23, %v1243_v40  ;;  %v1246_v53 = vadd.f32 %v9135_v24, %v11010_v5  ;;  %9436 = vmatprep.mubr.msk.f32.mxu0 %vm18_vm0, %v10748_v61  ;;  %v3942_v24 = vld [vmem:[#allocation2 + $0x82] sm:$0xff] }
 0x12a   :  { %9486 = vmatprep.mubr.msk.f32.mxu1 %vm18_vm0, %v3937_v15  ;;  %v1102_v43 = vpop.f32.mrf.mxu0 }
 0x12b   :  { %v1489_v7 = vpop.f32.mrf.mxu1  ;;  %v11210_v39 = vadd.f32 %v9185_v62, %v1246_v53  ;;  %v1245_v42 = vadd.f32 %v1102_v43, %v11016_v47  ;;  %v3941_v47 = vld [vmem:[#allocation2 + $0x7a] sm:$0xff] }
 0x12c   :  { %v9138_v54 = vpop.f32.mrf.mxu0  ;;  %9437 = vmatmul.mubr.msk.f32.gmra.mxu0 %vm18_vm0, %v10750_v12 }
 0x12d   :  { %v9188_v44 = vpop.f32.mrf.mxu1  ;;  %9487 = vmatmul.mubr.msk.f32.gmra.mxu1 %vm18_vm0, %v3938_v10  ;;  %v11216_v5 = vadd.f32 %v1489_v7, %v1245_v42  ;;  %v1248_v61 = vadd.f32 %v9138_v54, %v11022_v25  ;;  %9439 = vmatprep.mubr.msk.f32.mxu0 %vm18_vm0, %v10768_v50 }
 0x12e   :  { %9489 = vmatprep.mubr.msk.f32.mxu1 %vm18_vm0, %v3939_v55  ;;  %v1112_v1 = vpop.f32.mrf.mxu0  ;;  %v3944_v55 = vld [vmem:[#allocation2 + $0x9a] sm:$0xff] }
 0x12f   :  { %v1499_v19 = vpop.f32.mrf.mxu1  ;;  %v11222_v23 = vadd.f32 %v9188_v44, %v1248_v61  ;;  %v1247_v15 = vadd.f32 %v1112_v1, %v11028_v2  ;;  %v3943_v2 = vld [vmem:[#allocation2 + $0x92] sm:$0xff] }
 0x130   :  { %v9141_v12 = vpop.f32.mrf.mxu0  ;;  %9440 = vmatmul.mubr.msk.f32.gmra.mxu0 %vm18_vm0, %v10770_v58  ;;  %v3946_v1 = vld [vmem:[#allocation2 + $0xb2] sm:$0xff] }
 0x131   :  { %v9191_v40 = vpop.f32.mrf.mxu1  ;;  %9490 = vmatmul.mubr.msk.f32.gmra.mxu1 %vm18_vm0, %v3940_v20  ;;  %v11228_v25 = vadd.f32 %v1499_v19, %v1247_v15  ;;  %v1250_v50 = vadd.f32 %v9141_v12, %v11034_v29  ;;  %9442 = vmatprep.mubr.msk.f32.mxu0 %vm18_vm0, %v10788_v26 }
 0x132   :  { %9492 = vmatprep.mubr.msk.f32.mxu1 %vm18_vm0, %v3941_v47  ;;  %v1122_v62 = vpop.f32.mrf.mxu0 }
 0x133   :  { %v1509_v53 = vpop.f32.mrf.mxu1  ;;  %v11234_v10 = vadd.f32 %v9191_v40, %v1250_v50  ;;  %v1249_v43 = vadd.f32 %v1122_v62, %v11040_v4  ;;  %v3945_v4 = vld [vmem:[#allocation2 + $0xaa] sm:$0xff] }
 0x134   :  { %v9144_v58 = vpop.f32.mrf.mxu0  ;;  %9443 = vmatmul.mubr.msk.f32.gmra.mxu0 %vm18_vm0, %v10790_v52  ;;  %v3948_v50 = vld [vmem:[#allocation2 + $0xca] sm:$0xff] }
 0x135   :  { %v9194_v7 = vpop.f32.mrf.mxu1  ;;  %9493 = vmatmul.mubr.msk.f32.gmra.mxu1 %vm18_vm0, %v3942_v24  ;;  %v11240_v29 = vadd.f32 %v1509_v53, %v1249_v43  ;;  %v1252_v26 = vadd.f32 %v9144_v58, %v11046_v33  ;;  %9445 = vmatprep.mubr.msk.f32.mxu0 %vm18_vm0, %v10808_v48  ;;  %v3950_v58 = vld [vmem:[#allocation2 + $0xe2] sm:$0xff] }
 0x136   :  { %9495 = vmatprep.mubr.msk.f32.mxu1 %vm18_vm0, %v3943_v2  ;;  %v1132_v42 = vpop.f32.mrf.mxu0 }
 0x137   :  { %v1519_v54 = vpop.f32.mrf.mxu1  ;;  %v11246_v44 = vadd.f32 %v9194_v7, %v1252_v26  ;;  %v1251_v61 = vadd.f32 %v1132_v42, %v11052_v22  ;;  %v3947_v22 = vld [vmem:[#allocation2 + $0xc2] sm:$0xff] }
 0x138   :  { %v9147_v52 = vpop.f32.mrf.mxu0  ;;  %9446 = vmatmul.mubr.msk.f32.gmra.mxu0 %vm18_vm0, %v10810_v49 }
 0x139   :  { %v9197_v20 = vpop.f32.mrf.mxu1  ;;  %9496 = vmatmul.mubr.msk.f32.gmra.mxu1 %vm18_vm0, %v3944_v55  ;;  %v11252_v33 = vadd.f32 %v1519_v54, %v1251_v61  ;;  %v1254_v48 = vadd.f32 %v9147_v52, %v11058_v37  ;;  %9448 = vmatprep.mubr.msk.f32.mxu0 %vm18_vm0, %v10828_v57 }
 0x13a   :  { %9498 = vmatprep.mubr.msk.f32.mxu1 %vm18_vm0, %v3945_v4  ;;  %v1142_v19 = vpop.f32.mrf.mxu0  ;;  %v3952_v4 = vld [vmem:[#allocation2 + $0xfa] sm:$0xff] }
 0x13b   :  { %v1529_v47 = vpop.f32.mrf.mxu1  ;;  %v11258_v15 = vadd.f32 %v9197_v20, %v1254_v48  ;;  %v1253_v12 = vadd.f32 %v1142_v19, %v11064_v63  ;;  %v3949_v63 = vld [vmem:[#allocation2 + $0xda] sm:$0xff]  ;;  %v13475_v19 = vld [vmem:[#allocation31_spill] sm:$0xff] }
 0x13c   :  { %v9150_v49 = vpop.f32.mrf.mxu0  ;;  %9449 = vmatmul.mubr.msk.f32.gmra.mxu0 %vm18_vm0, %v10830_v59 }
 0x13d   :  { %v9200_v40 = vpop.f32.mrf.mxu1  ;;  %9499 = vmatmul.mubr.msk.f32.gmra.mxu1 %vm18_vm0, %v3946_v1  ;;  %v11264_v37 = vadd.f32 %v1529_v47, %v1253_v12  ;;  %v1256_v57 = vadd.f32 %v9150_v49, %v11070_v6  ;;  %9451 = vmatprep.mubr.msk.f32.mxu0 %vm18_vm0, %v10848_v8  ;;  %v3954_v47 = vld [vmem:[#allocation2 + $0x112] sm:$0xff] }
 0x13e   :  { %9501 = vmatprep.mubr.msk.f32.mxu1 %vm18_vm0, %v3947_v22  ;;  %v1152_v24 = vpop.f32.mrf.mxu0 }
 0x13f   :  { %v1539_v62 = vpop.f32.mrf.mxu1  ;;  %v11270_v53 = vadd.f32 %v9200_v40, %v1256_v57  ;;  %v1255_v2 = vadd.f32 %v1152_v24, %v11076_v3  ;;  %v3951_v3 = vld [vmem:[#allocation2 + $0xf2] sm:$0xff] }
 0x140   :  { %v9153_v59 = vpop.f32.mrf.mxu0  ;;  %9452 = vmatmul.mubr.msk.f32.gmra.mxu0 %vm18_vm0, %v10850_v9  ;;  %v13476_v24 = vld [vmem:[#allocation32_spill] sm:$0xff] }
 0x141   :  { %v9203_v43 = vpop.f32.mrf.mxu1  ;;  %9502 = vmatmul.mubr.msk.f32.gmra.mxu1 %vm18_vm0, %v3948_v50  ;;  %v11276_v6 = vadd.f32 %v1539_v62, %v1255_v2  ;;  %v1258_v8 = vadd.f32 %v9153_v59, %v11082_v13  ;;  %9454 = vmatprep.mubr.msk.f32.mxu0 %vm18_vm0, %v10868_v56  ;;  %v13477_v62 = vld [vmem:[#allocation23_spill] sm:$0xff] }
 0x142   :  { %9504 = vmatprep.mubr.msk.f32.mxu1 %vm18_vm0, %v3949_v63  ;;  %v1162_v7 = vpop.f32.mrf.mxu0  ;;  %v3956_v63 = vld [vmem:[#allocation2 + $0x12a] sm:$0xff] }
 0x143   :  { %v1549_v26 = vpop.f32.mrf.mxu1  ;;  %v11282_v55 = vadd.f32 %v9203_v43, %v1258_v8  ;;  %v1257_v42 = vadd.f32 %v1162_v7, %v11088_v21  ;;  %v3953_v21 = vld [vmem:[#allocation2 + $0x10a] sm:$0xff] }
 0x144   :  { %v9156_v9 = vpop.f32.mrf.mxu0  ;;  %9455 = vmatmul.mubr.msk.f32.gmra.mxu0 %vm18_vm0, %v10870_v30 }
 0x145   :  { %v9206_v54 = vpop.f32.mrf.mxu1  ;;  %9505 = vmatmul.mubr.msk.f32.gmra.mxu1 %vm18_vm0, %v3950_v58  ;;  %v11288_v13 = vadd.f32 %v1549_v26, %v1257_v42  ;;  %v1260_v56 = vadd.f32 %v9156_v9, %v11094_v18  ;;  %9457 = vmatprep.mubr.msk.f32.mxu0 %vm18_vm0, %v10888_v34  ;;  %v13478_v26 = vld [vmem:[#allocation25_spill] sm:$0xff] }
 0x146   :  { %9507 = vmatprep.mubr.msk.f32.mxu1 %vm18_vm0, %v3951_v3  ;;  %v1172_v61 = vpop.f32.mrf.mxu0  ;;  %v13479_v3 = vld [vmem:[#allocation6_spill] sm:$0xff]  ;;  %v13480_v9 = vld [vmem:[#allocation33_spill] sm:$0xff] }
 0x147   :  { %v1559_v52 = vpop.f32.mrf.mxu1  ;;  %v11294_v20 = vadd.f32 %v9206_v54, %v1260_v56  ;;  %v1259_v48 = vadd.f32 %v1172_v61, %v11100_v27  ;;  %v3955_v27 = vld [vmem:[#allocation2 + $0x122] sm:$0xff]  ;;  %v11335_v61 = vld [vmem:[#allocation2 + $0x152] sm:$0xff] }
 0x148   :  { %v9159_v30 = vpop.f32.mrf.mxu0  ;;  %9458 = vmatmul.mubr.msk.f32.gmra.mxu0 %vm18_vm0, %v13475_v19  ;;  %v11333_v54 = vld [vmem:[#allocation2 + $0x142] sm:$0xff] }
 0x149   :  { %v9209_v1 = vpop.f32.mrf.mxu1  ;;  %9508 = vmatmul.mubr.msk.f32.gmra.mxu1 %vm18_vm0, %v3952_v4  ;;  %v11300_v18 = vadd.f32 %v1559_v52, %v1259_v48  ;;  %v1262_v34 = vadd.f32 %v9159_v30, %v11106_v41  ;;  %9460 = vmatprep.mubr.msk.f32.mxu0 %vm18_vm0, %v10915_v17  ;;  %v3237_v4 = vld [vmem:[#allocation2 + $0x1b4] sm:$0xff]  ;;  %v13482_v19 = vld [vmem:[#allocation34_spill] sm:$0xff] }
 0x14a   :  { %9510 = vmatprep.mubr.msk.f32.mxu1 %vm18_vm0, %v3953_v21  ;;  %v1182_v22 = vpop.f32.mrf.mxu0  ;;  %v13481_v21 = vld [vmem:[#allocation7_spill] sm:$0xff] }
 0x14b   :  { %v1569_v12 = vpop.f32.mrf.mxu1  ;;  %v11306_v49 = vadd.f32 %v9209_v1, %v1262_v34  ;;  %v1261_v40 = vadd.f32 %v1182_v22, %v11112_v31  ;;  %v11318_v31 = vld [vmem:[#allocation2 + $0x13a] sm:$0xff] }
 0x14c   :  { %v9162_v57 = vpop.f32.mrf.mxu0  ;;  %9461 = vmatmul.mubr.msk.f32.gmra.mxu0 %vm18_vm0, %v13476_v24  ;;  %v11352_v24 = vld [vmem:[#allocation2 + $0x16a] sm:$0xff] }
 0x14d   :  { %v9212_v50 = vpop.f32.mrf.mxu1  ;;  %9511 = vmatmul.mubr.msk.f32.gmra.mxu1 %vm18_vm0, %v3954_v47  ;;  %v11312_v41 = vadd.f32 %v1569_v12, %v1261_v40  ;;  %v1264_v17 = vadd.f32 %v9162_v57, %v11118_v46  ;;  %9463 = vmatprep.mubr.msk.f32.mxu0 %vm18_vm0, %v13477_v62  ;;  %v13483_v47 = vld [vmem:[#allocation8_spill] sm:$0xff]  ;;  %v3238_v12 = vld [vmem:[#allocation2 + $0x1bc] sm:$0xff] }
 0x14e   :  { %9513 = vmatprep.mubr.msk.f32.mxu1 %vm18_vm0, %v3955_v27  ;;  %v1192_v2 = vpop.f32.mrf.mxu0  ;;  %v11350_v27 = vld [vmem:[#allocation2 + $0x15a] sm:$0xff] }
 0x14f   :  { %v1579_v59 = vpop.f32.mrf.mxu1  ;;  %v11320_v43 = vadd.f32 %v9212_v50, %v1264_v17  ;;  %v1263_v8 = vadd.f32 %v1192_v2, %v11124_v35  ;;  %v3239_v50 = vld [vmem:[#allocation2 + $0x1cc] sm:$0xff] }
 0x150   :  { %v9165_v58 = vpop.f32.mrf.mxu0  ;;  %9464 = vmatmul.mubr.msk.f32.gmra.mxu0 %vm18_vm0, %v13478_v26 }
 0x151   :  { %v9215_v7 = vpop.f32.mrf.mxu1  ;;  %9514 = vmatmul.mubr.msk.f32.gmra.mxu1 %vm18_vm0, %v3956_v63  ;;  %v11326_v46 = vadd.f32 %v1579_v59, %v1263_v8  ;;  %v1266_v42 = vadd.f32 %v9165_v58, %v13479_v3  ;;  %9466 = vmatprep.mubr.msk.f32.mxu0 %vm18_vm0, %v13480_v9  ;;  %v3240_v58 = vld [vmem:[#allocation2 + $0x1d4] sm:$0xff]  ;;  %v3898_v3 = vld [vmem:[#allocation2] sm:$0xff] }
 0x152   :  { %9516 = vmatprep.mubr.msk.f32.mxu1 %vm18_vm0, %v11318_v31  ;;  %v1202_v35 = vpop.f32.mrf.mxu0 }
 0x153   :  { %v1589_v56 = vpop.f32.mrf.mxu1  ;;  %v11337_v52 = vadd.f32 %v9215_v7, %v1266_v42  ;;  %v1265_v48 = vadd.f32 %v1202_v35, %v13481_v21  ;;  %v11366_v7 = vld [vmem:[#allocation2 + $0x172] sm:$0xff]  ;;  %v4606_v42 = vld [vmem:[#allocation2 + $0x4] sm:$0xff] }
 0x154   :  { %v9168_v30 = vpop.f32.mrf.mxu0  ;;  %9467 = vmatmul.mubr.msk.f32.gmra.mxu0 %vm18_vm0, %v13482_v19 }
 0x155   :  { %v9218_v1 = vpop.f32.mrf.mxu1  ;;  %9517 = vmatmul.mubr.msk.f32.gmra.mxu1 %vm18_vm0, %v11333_v54  ;;  %v11344_v34 = vadd.f32 %v1589_v56, %v1265_v48  ;;  %v1268_v22 = vadd.f32 %v9168_v30, %v13483_v47  ;;  %9469 = vmatprep.mubr.msk.f32.mxu0 %vm18_vm0, %v3237_v4  ;;  %v3899_v48 = vld [vmem:[#allocation2 + $0x8] sm:$0xff] }
 0x156   :  { %9519 = vmatprep.mubr.msk.f32.mxu1 %vm18_vm0, %v11335_v61  ;;  %v1212_v40 = vpop.f32.mrf.mxu0  ;;  %v4607_v30 = vld [vmem:[#allocation2 + $0xc] sm:$0xff] }
 0x157   :  { %v1599_v57 = vpop.f32.mrf.mxu1  ;;  %v11354_v17 = vadd.f32 %v9218_v1, %v1268_v22  ;;  %v1267_v62 = vadd.f32 %v1212_v40, %v11146_v14  ;;  %v3900_v22 = vld [vmem:[#allocation2 + $0x18] sm:$0xff] }
 0x158   :  { %v9171_v63 = vpop.f32.mrf.mxu0  ;;  %9470 = vmatmul.mubr.msk.f32.gmra.mxu0 %vm18_vm0, %v3238_v12  ;;  %v4608_v12 = vld [vmem:[#allocation2 + $0x1c] sm:$0xff] }
 0x159   :  { %v9221_v2 = vpop.f32.mrf.mxu1  ;;  %9520 = vmatmul.mubr.msk.f32.gmra.mxu1 %vm18_vm0, %v11350_v27  ;;  %v11360_v59 = vadd.f32 %v1599_v57, %v1267_v62  ;;  %v1270_v8 = vadd.f32 %v9171_v63, %v11150_v28  ;;  %9472 = vmatprep.mubr.msk.f32.mxu0 %vm18_vm0, %v3239_v50  ;;  %v11392_v50 = vld [vmem:[%s13371_s1 + $0x30] sm:$0xff]  ;;  %v3901_v63 = vld [vmem:[#allocation2 + $0x20] sm:$0xff] }
 0x15a   :  { %9522 = vmatprep.mubr.msk.f32.mxu1 %vm18_vm0, %v11352_v24  ;;  %v1222_v14 = vpop.f32.mrf.mxu0 }
 0x15b   :  { %v1609_v26 = vpop.f32.mrf.mxu1  ;;  %v11368_v9 = vadd.f32 %v9221_v2, %v1270_v8  ;;  %v1269_v35 = vadd.f32 %v1222_v14, %v11154_v11  ;;  %v4609_v2 = vld [vmem:[#allocation2 + $0x24] sm:$0xff]  ;;  %v11401_v14 = vld [vmem:[#allocation2 + $0x30] sm:$0xff] }
 0x15c   :  { %v9174_v56 = vpop.f32.mrf.mxu0  ;;  %9473 = vmatmul.mubr.msk.f32.gmra.mxu0 %vm18_vm0, %v3240_v58 }
 0x15d   :  { %v9224_v4 = vpop.f32.mrf.mxu1  ;;  %9523 = vmatmul.mubr.msk.f32.gmra.mxu1 %vm18_vm0, %v11366_v7  ;;  %v11374_v28 = vadd.f32 %v1609_v26, %v1269_v35  ;;  %v1272_v21 = vadd.f32 %v9174_v56, %v11158_v45  ;;  %9527 = vmatprep.mubr.msk.f32.mxu0 %vm18_vm0, %v3898_v3  ;;  %v11387_v45 = vld [vmem:[%s13371_s1 + $0x28] sm:$0xff]  ;;  %v11403_v26 = vld [vmem:[#allocation2 + $0x34] sm:$0xff]  ;;  %v11421_v56 = vld [vmem:[#allocation2 + $0x3c] sm:$0xff] }
 0x15e   :  { %9577 = vmatprep.mubr.msk.f32.mxu1 %vm18_vm0, %v4606_v42  ;;  %v1232_v1 = vpop.f32.mrf.mxu0 }
 0x15f   :  { %v1619_v19 = vpop.f32.mrf.mxu1  ;;  %v11379_v11 = vadd.f32 %v9224_v4, %v1272_v21  ;;  %v1271_v47 = vadd.f32 %v1232_v1, %v11163_v36 }
 0x160   :  { %v9229_v40 = vpop.f32.mrf.mxu0  ;;  %9528 = vmatmul.mubr.msk.f32.vlgmr.msra.gmra.mxu0 %vm18_vm0, %v3899_v48  ;;  %v11423_v48 = vld [vmem:[#allocation2 + $0x48] sm:$0xff] }
 0x161   :  { %v9279_v57 = vpop.f32.mrf.mxu1  ;;  %9578 = vmatmul.mubr.msk.f32.vlgmr.msra.gmra.mxu1 %vm18_vm0, %v4607_v30  ;;  %v11394_v62 = vadd.f32 %v1619_v19, %v1271_v47  ;;  %v2016_v36 = vadd.f32 %v9229_v40, %v11184_v38  ;;  %9626 = vmatpush3.msra.mxu0 %v11171_v32  ;;  %v11425_v30 = vld [vmem:[#allocation2 + $0x4c] sm:$0xff] }
 0x162   :  { %9676 = vmatpush3.msra.mxu1 %v11176_v60  ;;  %v1856_v8 = vpop.f32.mrf.mxu0  ;;  %9530 = vmatprep.mubr.msk.f32.mxu0 %vm18_vm0, %v3900_v22  ;;  %v11441_v40 = vld [vmem:[#allocation2 + $0x50] sm:$0xff] }
 0x163   :  { %v2243_v58 = vpop.f32.mrf.mxu1  ;;  %9580 = vmatprep.mubr.msk.f32.mxu1 %vm18_vm0, %v4608_v12  ;;  %v11405_v3 = vadd.f32 %v9279_v57, %v2016_v36  ;;  %v2015_v38 = vadd.f32 %v1856_v8, %v11192_v0  ;;  %9725 = vmatprep.subr.mxu0 %v11387_v45  ;;  %v11419_v0 = vld [vmem:[#allocation2 + $0x38] sm:$0xff] }
 0x164   :  { %9775 = vmatprep.subr.mxu1 %v11392_v50  ;;  %v9232_v32 = vpop.f32.mrf.mxu0  ;;  %9531 = vmatmul.mubr.msk.f32.gmra.mxu0 %vm18_vm0, %v3901_v63  ;;  %v11445_v63 = vld [vmem:[#allocation2 + $0x60] sm:$0xff] }
 0x165   :  { %v9282_v60 = vpop.f32.mrf.mxu1  ;;  %9581 = vmatmul.mubr.msk.f32.gmra.mxu1 %vm18_vm0, %v4609_v2  ;;  %v11412_v42 = vadd.f32 %v2243_v58, %v2015_v38  ;;  %v2018_v35 = vadd.f32 %v9232_v32, %v11198_v16  ;;  %9533 = vmatprep.mubr.msk.f32.mxu0 %vm18_vm0, %v11401_v14  ;;  %v11447_v2 = vld [vmem:[#allocation2 + $0x64] sm:$0xff] }
 0x166   :  { %9583 = vmatprep.mubr.msk.f32.mxu1 %vm18_vm0, %v11403_v26  ;;  %v1866_v4 = vpop.f32.mrf.mxu0  ;;  %13485 = vst [vmem:[#allocation10_spill] sm:$0xff] %v11447_v2 }
 0x167   :  { %v2253_v21 = vpop.f32.mrf.mxu1  ;;  %v11427_v1 = vadd.f32 %v9282_v60, %v2018_v35  ;;  %v2017_v16 = vadd.f32 %v1866_v4, %v11204_v51  ;;  %v11443_v51 = vld [vmem:[#allocation2 + $0x54] sm:$0xff]  ;;  %v11463_v35 = vld [vmem:[#allocation2 + $0x68] sm:$0xff] }
 0x168   :  { %v9235_v19 = vpop.f32.mrf.mxu0  ;;  %9534 = vmatmul.mubr.msk.f32.gmra.mxu0 %vm18_vm0, %v11419_v0  ;;  %13484 = vst [vmem:[#allocation9_spill] sm:$0xff] %v11443_v51 }
 0x169   :  { %v9285_v47 = vpop.f32.mrf.mxu1  ;;  %9584 = vmatmul.mubr.msk.f32.gmra.mxu1 %vm18_vm0, %v11421_v56  ;;  %v11434_v22 = vadd.f32 %v2253_v21, %v2017_v16  ;;  %v2020_v12 = vadd.f32 %v9235_v19, %v11210_v39  ;;  %9536 = vmatprep.mubr.msk.f32.mxu0 %vm18_vm0, %v11423_v48  ;;  %v11465_v16 = vld [vmem:[#allocation2 + $0x78] sm:$0xff] }
 0x16a   :  { %9586 = vmatprep.mubr.msk.f32.mxu1 %vm18_vm0, %v11425_v30  ;;  %v1876_v57 = vpop.f32.mrf.mxu0  ;;  %v4616_v19 = vld [vmem:[#allocation2 + $0x7c] sm:$0xff] }
 0x16b   :  { %v2263_v36 = vpop.f32.mrf.mxu1  ;;  %v11449_v8 = vadd.f32 %v9285_v47, %v2020_v12  ;;  %v2019_v39 = vadd.f32 %v1876_v57, %v11216_v5  ;;  %v4615_v5 = vld [vmem:[#allocation2 + $0x6c] sm:$0xff] }
 0x16c   :  { %v9238_v58 = vpop.f32.mrf.mxu0  ;;  %9537 = vmatmul.mubr.msk.f32.gmra.mxu0 %vm18_vm0, %v11441_v40 }
 0x16d   :  { %v9288_v38 = vpop.f32.mrf.mxu1  ;;  %9587 = vmatmul.mubr.msk.f32.gmra.mxu1 %vm18_vm0, %v11443_v51  ;;  %v11456_v32 = vadd.f32 %v2263_v36, %v2019_v39  ;;  %v2022_v60 = vadd.f32 %v9238_v58, %v11222_v23  ;;  %9539 = vmatprep.mubr.msk.f32.mxu0 %vm18_vm0, %v11445_v63  ;;  %v11479_v58 = vld [vmem:[#allocation2 + $0x80] sm:$0xff] }
 0x16e   :  { %9589 = vmatprep.mubr.msk.f32.mxu1 %vm18_vm0, %v11447_v2  ;;  %v1886_v4 = vpop.f32.mrf.mxu0  ;;  %v4618_v2 = vld [vmem:[#allocation2 + $0x94] sm:$0xff] }
 0x16f   :  { %v2273_v21 = vpop.f32.mrf.mxu1  ;;  %v11467_v47 = vadd.f32 %v9288_v38, %v2022_v60  ;;  %v2021_v12 = vadd.f32 %v1886_v4, %v11228_v25  ;;  %v4617_v38 = vld [vmem:[#allocation2 + $0x84] sm:$0xff]  ;;  %v11481_v4 = vld [vmem:[#allocation2 + $0x90] sm:$0xff] }
 0x170   :  { %v9241_v57 = vpop.f32.mrf.mxu0  ;;  %9540 = vmatmul.mubr.msk.f32.gmra.mxu0 %vm18_vm0, %v11463_v35 }
 0x171   :  { %v9291_v23 = vpop.f32.mrf.mxu1  ;;  %9590 = vmatmul.mubr.msk.f32.gmra.mxu1 %vm18_vm0, %v4615_v5  ;;  %v11473_v36 = vadd.f32 %v2273_v21, %v2021_v12  ;;  %v2024_v39 = vadd.f32 %v9241_v57, %v11234_v10  ;;  %9542 = vmatprep.mubr.msk.f32.mxu0 %vm18_vm0, %v11465_v16  ;;  %v11495_v57 = vld [vmem:[#allocation2 + $0x98] sm:$0xff] }
 0x172   :  { %9592 = vmatprep.mubr.msk.f32.mxu1 %vm18_vm0, %v4616_v19  ;;  %v1896_v25 = vpop.f32.mrf.mxu0  ;;  %13489 = vst [vmem:[#allocation14_spill] sm:$0xff] %v11495_v57 }
 0x173   :  { %13486 = vst [vmem:[#allocation11_spill] sm:$0xff] %v11473_v36  ;;  %v2283_v60 = vpop.f32.mrf.mxu1  ;;  %v11483_v51 = vadd.f32 %v9291_v23, %v2024_v39  ;;  %v2023_v5 = vadd.f32 %v1896_v25, %v11240_v29  ;;  %v4619_v23 = vld [vmem:[#allocation2 + $0x9c] sm:$0xff]  ;;  %v11497_v25 = vld [vmem:[#allocation2 + $0xa8] sm:$0xff] }
 0x174   :  { %v9244_v21 = vpop.f32.mrf.mxu0  ;;  %9543 = vmatmul.mubr.msk.f32.gmra.mxu0 %vm18_vm0, %v11479_v58  ;;  %13490 = vst [vmem:[#allocation15_spill] sm:$0xff] %v11497_v25 }
 0x175   :  { %13487 = vst [vmem:[#allocation12_spill] sm:$0xff] %v11483_v51  ;;  %v9294_v12 = vpop.f32.mrf.mxu1  ;;  %9593 = vmatmul.mubr.msk.f32.gmra.mxu1 %vm18_vm0, %v4617_v38  ;;  %v11489_v10 = vadd.f32 %v2283_v60, %v2023_v5  ;;  %v2026_v19 = vadd.f32 %v9244_v21, %v11246_v44  ;;  %9545 = vmatprep.mubr.msk.f32.mxu0 %vm18_vm0, %v11481_v4  ;;  %v4620_v51 = vld [vmem:[#allocation2 + $0xac] sm:$0xff] }
 0x176   :  { %9595 = vmatprep.mubr.msk.f32.mxu1 %vm18_vm0, %v4618_v2  ;;  %v1906_v29 = vpop.f32.mrf.mxu0  ;;  %v11511_v21 = vld [vmem:[#allocation2 + $0xb0] sm:$0xff] }
 0x177   :  { %13488 = vst [vmem:[#allocation13_spill] sm:$0xff] %v11489_v10  ;;  %v2293_v39 = vpop.f32.mrf.mxu1  ;;  %v11499_v36 = vadd.f32 %v9294_v12, %v2026_v19  ;;  %v2025_v38 = vadd.f32 %v1906_v29, %v11252_v33  ;;  %13493 = vst [vmem:[#allocation18_spill] sm:$0xff] %v11511_v21  ;;  %v4621_v12 = vld [vmem:[#allocation2 + $0xb4] sm:$0xff]  ;;  %v11513_v29 = vld [vmem:[#allocation2 + $0xc0] sm:$0xff] }
 0x178   :  { %v9247_v60 = vpop.f32.mrf.mxu0  ;;  %9546 = vmatmul.mubr.msk.f32.gmra.mxu0 %vm18_vm0, %v11495_v57  ;;  %13494 = vst [vmem:[#allocation19_spill] sm:$0xff] %v11513_v29 }
 0x179   :  { %13491 = vst [vmem:[#allocation16_spill] sm:$0xff] %v11499_v36  ;;  %v9297_v5 = vpop.f32.mrf.mxu1  ;;  %9596 = vmatmul.mubr.msk.f32.gmra.mxu1 %vm18_vm0, %v4619_v23  ;;  %v11505_v44 = vadd.f32 %v2293_v39, %v2025_v38  ;;  %v2028_v2 = vadd.f32 %v9247_v60, %v11258_v15  ;;  %9548 = vmatprep.mubr.msk.f32.mxu0 %vm18_vm0, %v11497_v25  ;;  %v4622_v36 = vld [vmem:[#allocation2 + $0xc4] sm:$0xff] }
 0x17a   :  { %9598 = vmatprep.mubr.msk.f32.mxu1 %vm18_vm0, %v4620_v51  ;;  %v1916_v33 = vpop.f32.mrf.mxu0  ;;  %v11527_v60 = vld [vmem:[#allocation2 + $0xc8] sm:$0xff] }
 0x17b   :  { %13492 = vst [vmem:[#allocation17_spill] sm:$0xff] %v11505_v44  ;;  %v2303_v19 = vpop.f32.mrf.mxu1  ;;  %v11515_v10 = vadd.f32 %v9297_v5, %v2028_v2  ;;  %v2027_v23 = vadd.f32 %v1916_v33, %v11264_v37  ;;  %13497 = vst [vmem:[#allocation22_spill] sm:$0xff] %v11527_v60  ;;  %v4623_v5 = vld [vmem:[#allocation2 + $0xcc] sm:$0xff]  ;;  %v11529_v33 = vld [vmem:[#allocation2 + $0xd8] sm:$0xff] }
 0x17c   :  { %v9250_v39 = vpop.f32.mrf.mxu0  ;;  %9549 = vmatmul.mubr.msk.f32.gmra.mxu0 %vm18_vm0, %v11511_v21 }
 0x17d   :  { %13495 = vst [vmem:[#allocation20_spill] sm:$0xff] %v11515_v10  ;;  %v9300_v38 = vpop.f32.mrf.mxu1  ;;  %9599 = vmatmul.mubr.msk.f32.gmra.mxu1 %vm18_vm0, %v4621_v12  ;;  %v11521_v15 = vadd.f32 %v2303_v19, %v2027_v23  ;;  %v2030_v51 = vadd.f32 %v9250_v39, %v11270_v53  ;;  %9551 = vmatprep.mubr.msk.f32.mxu0 %vm18_vm0, %v11513_v29  ;;  %v4624_v10 = vld [vmem:[#allocation2 + $0xdc] sm:$0xff] }
 0x17e   :  { %9601 = vmatprep.mubr.msk.f32.mxu1 %vm18_vm0, %v4622_v36  ;;  %v1926_v37 = vpop.f32.mrf.mxu0  ;;  %v11543_v39 = vld [vmem:[#allocation2 + $0xe0] sm:$0xff] }
 0x17f   :  { %13496 = vst [vmem:[#allocation21_spill] sm:$0xff] %v11521_v15  ;;  %v2313_v2 = vpop.f32.mrf.mxu1  ;;  %v11531_v44 = vadd.f32 %v9300_v38, %v2030_v51  ;;  %v2029_v12 = vadd.f32 %v1926_v37, %v11276_v6  ;;  %v4625_v38 = vld [vmem:[#allocation2 + $0xe4] sm:$0xff]  ;;  %v11545_v37 = vld [vmem:[#allocation2 + $0xf0] sm:$0xff] }
 0x180   :  { %v9253_v19 = vpop.f32.mrf.mxu0  ;;  %9552 = vmatmul.mubr.msk.f32.gmra.mxu0 %vm18_vm0, %v11527_v60 }
 0x181   :  { %13498 = vst [vmem:[#allocation24_spill] sm:$0xff] %v11531_v44  ;;  %v9303_v23 = vpop.f32.mrf.mxu1  ;;  %9602 = vmatmul.mubr.msk.f32.gmra.mxu1 %vm18_vm0, %v4623_v5  ;;  %v11537_v53 = vadd.f32 %v2313_v2, %v2029_v12  ;;  %v2032_v36 = vadd.f32 %v9253_v19, %v11282_v55  ;;  %9554 = vmatprep.mubr.msk.f32.mxu0 %vm18_vm0, %v11529_v33  ;;  %v4626_v44 = vld [vmem:[#allocation2 + $0xf4] sm:$0xff] }
 0x182   :  { %9604 = vmatprep.mubr.msk.f32.mxu1 %vm18_vm0, %v4624_v10  ;;  %v1936_v6 = vpop.f32.mrf.mxu0  ;;  %v11559_v19 = vld [vmem:[#allocation2 + $0xf8] sm:$0xff] }
 0x183   :  { %13499 = vst [vmem:[#allocation26_spill] sm:$0xff] %v11537_v53  ;;  %v2323_v51 = vpop.f32.mrf.mxu1  ;;  %v11547_v15 = vadd.f32 %v9303_v23, %v2032_v36  ;;  %v2031_v5 = vadd.f32 %v1936_v6, %v11288_v13  ;;  %v4627_v23 = vld [vmem:[#allocation2 + $0xfc] sm:$0xff]  ;;  %v11561_v6 = vld [vmem:[#allocation2 + $0x108] sm:$0xff] }
 0x184   :  { %v9256_v2 = vpop.f32.mrf.mxu0  ;;  %9555 = vmatmul.mubr.msk.f32.gmra.mxu0 %vm18_vm0, %v11543_v39 }
 0x185   :  { %13500 = vst [vmem:[#allocation27_spill] sm:$0xff] %v11547_v15  ;;  %v9306_v12 = vpop.f32.mrf.mxu1  ;;  %9605 = vmatmul.mubr.msk.f32.gmra.mxu1 %vm18_vm0, %v4625_v38  ;;  %v11553_v55 = vadd.f32 %v2323_v51, %v2031_v5  ;;  %v2034_v10 = vadd.f32 %v9256_v2, %v11294_v20  ;;  %9557 = vmatprep.mubr.msk.f32.mxu0 %vm18_vm0, %v11545_v37  ;;  %v4628_v15 = vld [vmem:[#allocation2 + $0x10c] sm:$0xff] }
 0x186   :  { %9607 = vmatprep.mubr.msk.f32.mxu1 %vm18_vm0, %v4626_v44  ;;  %v1946_v13 = vpop.f32.mrf.mxu0  ;;  %v11575_v2 = vld [vmem:[#allocation2 + $0x110] sm:$0xff] }
 0x187   :  { %13501 = vst [vmem:[#allocation28_spill] sm:$0xff] %v11553_v55  ;;  %v2333_v36 = vpop.f32.mrf.mxu1  ;;  %v11563_v53 = vadd.f32 %v9306_v12, %v2034_v10  ;;  %v2033_v38 = vadd.f32 %v1946_v13, %v11300_v18  ;;  %v4629_v12 = vld [vmem:[#allocation2 + $0x114] sm:$0xff]  ;;  %v11577_v13 = vld [vmem:[#allocation2 + $0x120] sm:$0xff] }
 0x188   :  { %v9259_v51 = vpop.f32.mrf.mxu0  ;;  %9558 = vmatmul.mubr.msk.f32.gmra.mxu0 %vm18_vm0, %v11559_v19 }
 0x189   :  { %13502 = vst [vmem:[#allocation29_spill] sm:$0xff] %v11563_v53  ;;  %v9309_v5 = vpop.f32.mrf.mxu1  ;;  %9608 = vmatmul.mubr.msk.f32.gmra.mxu1 %vm18_vm0, %v4627_v23  ;;  %v11569_v20 = vadd.f32 %v2333_v36, %v2033_v38  ;;  %v2036_v44 = vadd.f32 %v9259_v51, %v11306_v49  ;;  %9560 = vmatprep.mubr.msk.f32.mxu0 %vm18_vm0, %v11561_v6  ;;  %v4630_v53 = vld [vmem:[#allocation2 + $0x124] sm:$0xff] }
 0x18a   :  { %9610 = vmatprep.mubr.msk.f32.mxu1 %vm18_vm0, %v4628_v15  ;;  %v1956_v18 = vpop.f32.mrf.mxu0  ;;  %v11591_v51 = vld [vmem:[#allocation2 + $0x128] sm:$0xff] }
 0x18b   :  { %13503 = vst [vmem:[#allocation30_spill] sm:$0xff] %v11569_v20  ;;  %v2343_v10 = vpop.f32.mrf.mxu1  ;;  %v11579_v55 = vadd.f32 %v9309_v5, %v2036_v44  ;;  %v2035_v23 = vadd.f32 %v1956_v18, %v11312_v41  ;;  %v4631_v5 = vld [vmem:[#allocation2 + $0x12c] sm:$0xff]  ;;  %v11593_v18 = vld [vmem:[#allocation2 + $0x138] sm:$0xff] }
 0x18c   :  { %v9262_v36 = vpop.f32.mrf.mxu0  ;;  %9561 = vmatmul.mubr.msk.f32.gmra.mxu0 %vm18_vm0, %v11575_v2 }
 0x18d   :  { %13504 = vst [vmem:[#allocation31_spill] sm:$0xff] %v11579_v55  ;;  %v9312_v38 = vpop.f32.mrf.mxu1  ;;  %9611 = vmatmul.mubr.msk.f32.gmra.mxu1 %vm18_vm0, %v4629_v12  ;;  %v11585_v49 = vadd.f32 %v2343_v10, %v2035_v23  ;;  %v2038_v15 = vadd.f32 %v9262_v36, %v11320_v43  ;;  %9563 = vmatprep.mubr.msk.f32.mxu0 %vm18_vm0, %v11577_v13  ;;  %v4632_v55 = vld [vmem:[#allocation2 + $0x13c] sm:$0xff] }
 0x18e   :  { %9613 = vmatprep.mubr.msk.f32.mxu1 %vm18_vm0, %v4630_v53  ;;  %v1966_v41 = vpop.f32.mrf.mxu0  ;;  %v11607_v36 = vld [vmem:[#allocation2 + $0x140] sm:$0xff] }
 0x18f   :  { %13505 = vst [vmem:[#allocation32_spill] sm:$0xff] %v11585_v49  ;;  %v2353_v44 = vpop.f32.mrf.mxu1  ;;  %v11595_v20 = vadd.f32 %v9312_v38, %v2038_v15  ;;  %v2037_v12 = vadd.f32 %v1966_v41, %v11326_v46  ;;  %v4633_v38 = vld [vmem:[#allocation2 + $0x144] sm:$0xff]  ;;  %v11609_v41 = vld [vmem:[#allocation2 + $0x150] sm:$0xff] }
 0x190   :  { %v9265_v10 = vpop.f32.mrf.mxu0  ;;  %9564 = vmatmul.mubr.msk.f32.gmra.mxu0 %vm18_vm0, %v11591_v51 }
 0x191   :  { %13506 = vst [vmem:[#allocation23_spill] sm:$0xff] %v11595_v20  ;;  %v9315_v23 = vpop.f32.mrf.mxu1  ;;  %9614 = vmatmul.mubr.msk.f32.gmra.mxu1 %vm18_vm0, %v4631_v5  ;;  %v11601_v43 = vadd.f32 %v2353_v44, %v2037_v12  ;;  %v2040_v53 = vadd.f32 %v9265_v10, %v11337_v52  ;;  %9566 = vmatprep.mubr.msk.f32.mxu0 %vm18_vm0, %v11593_v18  ;;  %v4634_v20 = vld [vmem:[#allocation2 + $0x154] sm:$0xff] }
 0x192   :  { %9616 = vmatprep.mubr.msk.f32.mxu1 %vm18_vm0, %v4632_v55  ;;  %v1976_v46 = vpop.f32.mrf.mxu0  ;;  %v11623_v10 = vld [vmem:[#allocation2 + $0x158] sm:$0xff] }
 0x193   :  { %13507 = vst [vmem:[#allocation25_spill] sm:$0xff] %v11601_v43  ;;  %v2363_v15 = vpop.f32.mrf.mxu1  ;;  %v11611_v49 = vadd.f32 %v9315_v23, %v2040_v53  ;;  %v2039_v5 = vadd.f32 %v1976_v46, %v11344_v34  ;;  %v4635_v23 = vld [vmem:[#allocation2 + $0x15c] sm:$0xff]  ;;  %v11625_v46 = vld [vmem:[#allocation2 + $0x168] sm:$0xff] }
 0x194   :  { %v9268_v44 = vpop.f32.mrf.mxu0  ;;  %9567 = vmatmul.mubr.msk.f32.gmra.mxu0 %vm18_vm0, %v11607_v36 }
 0x195   :  { %13508 = vst [vmem:[#allocation6_spill] sm:$0xff] %v11611_v49  ;;  %v9318_v12 = vpop.f32.mrf.mxu1  ;;  %9617 = vmatmul.mubr.msk.f32.gmra.mxu1 %vm18_vm0, %v4633_v38  ;;  %v11617_v52 = vadd.f32 %v2363_v15, %v2039_v5  ;;  %v2042_v55 = vadd.f32 %v9268_v44, %v11354_v17  ;;  %9569 = vmatprep.mubr.msk.f32.mxu0 %vm18_vm0, %v11609_v41  ;;  %v4636_v49 = vld [vmem:[#allocation2 + $0x16c] sm:$0xff] }
 0x196   :  { %9619 = vmatprep.mubr.msk.f32.mxu1 %vm18_vm0, %v4634_v20  ;;  %v1986_v34 = vpop.f32.mrf.mxu0  ;;  %v11639_v44 = vld [vmem:[#allocation2 + $0x170] sm:$0xff] }
 0x197   :  { %13509 = vst [vmem:[#allocation33_spill] sm:$0xff] %v11617_v52  ;;  %v2373_v53 = vpop.f32.mrf.mxu1  ;;  %v11627_v43 = vadd.f32 %v9318_v12, %v2042_v55  ;;  %v2041_v38 = vadd.f32 %v1986_v34, %v11360_v59  ;;  %v4637_v12 = vld [vmem:[#allocation2 + $0x174] sm:$0xff] }
 0x198   :  { %v9271_v15 = vpop.f32.mrf.mxu0  ;;  %9570 = vmatmul.mubr.msk.f32.gmra.mxu0 %vm18_vm0, %v11623_v10  ;;  %v5378_v34 = vld [vmem:[#allocation2 + $0x32] sm:$0xff] }
 0x199   :  { %13510 = vst [vmem:[#allocation7_spill] sm:$0xff] %v11627_v43  ;;  %v9321_v5 = vpop.f32.mrf.mxu1  ;;  %9620 = vmatmul.mubr.msk.f32.gmra.mxu1 %vm18_vm0, %v4635_v23  ;;  %v11633_v17 = vadd.f32 %v2373_v53, %v2041_v38  ;;  %v2044_v20 = vadd.f32 %v9271_v15, %v11368_v9  ;;  %9572 = vmatprep.mubr.msk.f32.mxu0 %vm18_vm0, %v11625_v46  ;;  %v5379_v38 = vld [vmem:[#allocation2 + $0x3a] sm:$0xff] }
 0x19a   :  { %9622 = vmatprep.mubr.msk.f32.mxu1 %vm18_vm0, %v4636_v49  ;;  %v1996_v59 = vpop.f32.mrf.mxu0 }
 0x19b   :  { %13511 = vst [vmem:[#allocation34_spill] sm:$0xff] %v11633_v17  ;;  %v2383_v55 = vpop.f32.mrf.mxu1  ;;  %v11641_v43 = vadd.f32 %v9321_v5, %v2044_v20  ;;  %v2043_v52 = vadd.f32 %v1996_v59, %v11374_v28  ;;  %v5380_v59 = vld [vmem:[#allocation2 + $0x4a] sm:$0xff] }
 0x19c   :  { %v9274_v23 = vpop.f32.mrf.mxu0  ;;  %9573 = vmatmul.mubr.msk.f32.gmra.mxu0 %vm18_vm0, %v11639_v44 }
 0x19d   :  { %13512 = vst [vmem:[#allocation8_spill] sm:$0xff] %v11641_v43  ;;  %v9324_v53 = vpop.f32.mrf.mxu1  ;;  %9623 = vmatmul.mubr.msk.f32.gmra.mxu1 %vm18_vm0, %v4637_v12  ;;  %v11647_v9 = vadd.f32 %v2383_v55, %v2043_v52  ;;  %v2046_v49 = vadd.f32 %v9274_v23, %v11379_v11  ;;  %9627 = vmatprep.mubr.msk.f32.mxu0 %vm18_vm0, %v11401_v14  ;;  %v11666_v11 = vld [vmem:[%s13371_s1 + $0x38] sm:$0xff]  ;;  %v11671_v14 = vld [vmem:[%s13371_s1 + $0x40] sm:$0xff] }
 0x19e   :  { %9677 = vmatprep.mubr.msk.f32.mxu1 %vm18_vm0, %v5378_v34  ;;  %v2006_v15 = vpop.f32.mrf.mxu0  ;;  %v5381_v52 = vld [vmem:[#allocation2 + $0x52] sm:$0xff]  ;;  %v5382_v34 = vld [vmem:[#allocation2 + $0x62] sm:$0xff] }
 0x19f   :  { %13513 = vst [vmem:[#allocation35_spill] sm:$0xff] %v11647_v9  ;;  %v2393_v5 = vpop.f32.mrf.mxu1  ;;  %v11653_v28 = vadd.f32 %v9324_v53, %v2046_v49  ;;  %v2045_v20 = vadd.f32 %v2006_v15, %v11394_v62  ;;  %v5384_v49 = vld [vmem:[#allocation2 + $0x7a] sm:$0xff] }
 0x1a0   :  { %v11656_v43 = vpop.f32.mrf.mxu0  ;;  %9628 = vmatmul.mubr.msk.f32.vlgmr.msra.gmra.mxu0 %vm18_vm0, %v11419_v0 }
 0x1a1   :  { %13514 = vst [vmem:[#allocation36_spill] sm:$0xff] %v11653_v28  ;;  %v11658_v12 = vpop.f32.mrf.mxu1  ;;  %9678 = vmatmul.mubr.msk.f32.vlgmr.msra.gmra.mxu1 %vm18_vm0, %v5379_v38  ;;  %v11673_v62 = vadd.f32 %v2393_v5, %v2045_v20  ;;  %9726 = vmatpush3.msra.mxu0 %v11387_v45  ;;  %v5388_v28 = vld [vmem:[#allocation2 + $0xaa] sm:$0xff] }
 0x1a2   :  { %9776 = vmatpush3.msra.mxu1 %v11392_v50  ;;  %v11677_v0 = vpop.f32.mrf.mxu0  ;;  %9630 = vmatprep.mubr.msk.f32.mxu0 %vm18_vm0, %v11423_v48  ;;  %v5383_v50 = vld [vmem:[#allocation2 + $0x6a] sm:$0xff] }
 0x1a3   :  { %13515 = vst [vmem:[#allocation37_spill] sm:$0xff] %v11673_v62  ;;  %v11679_v55 = vpop.f32.mrf.mxu1  ;;  %9680 = vmatprep.mubr.msk.f32.mxu1 %vm18_vm0, %v5380_v59  ;;  %9825 = vmatprep.subr.mxu0 %v11666_v11  ;;  %v5386_v59 = vld [vmem:[#allocation2 + $0x92] sm:$0xff] }
 0x1a4   :  { %9875 = vmatprep.subr.mxu1 %v11671_v14  ;;  %v11686_v23 = vpop.f32.mrf.mxu0  ;;  %9631 = vmatmul.mubr.msk.f32.gmra.mxu0 %vm18_vm0, %v11441_v40  ;;  %v5385_v40 = vld [vmem:[#allocation2 + $0x82] sm:$0xff] }
 0x1a5   :  { %v11688_v45 = vpop.f32.mrf.mxu1  ;;  %9681 = vmatmul.mubr.msk.f32.gmra.mxu1 %vm18_vm0, %v5381_v52  ;;  %9633 = vmatprep.mubr.msk.f32.mxu0 %vm18_vm0, %v11445_v63 }
 0x1a6   :  { %9683 = vmatprep.mubr.msk.f32.mxu1 %vm18_vm0, %v5382_v34  ;;  %v11696_v48 = vpop.f32.mrf.mxu0 }
 0x1a7   :  { %v11698_v53 = vpop.f32.mrf.mxu1 }
 0x1a8   :  { %v11700_v38 = vpop.f32.mrf.mxu0  ;;  %9634 = vmatmul.mubr.msk.f32.gmra.mxu0 %vm18_vm0, %v11463_v35 }
 0x1a9   :  { %v11702_v15 = vpop.f32.mrf.mxu1  ;;  %9684 = vmatmul.mubr.msk.f32.gmra.mxu1 %vm18_vm0, %v5383_v50  ;;  %9636 = vmatprep.mubr.msk.f32.mxu0 %vm18_vm0, %v11465_v16  ;;  %v5387_v50 = vld [vmem:[#allocation2 + $0x9a] sm:$0xff] }
 0x1aa   :  { %13516 = vst [vmem:[#allocation38_spill] sm:$0xff] %v11702_v15  ;;  %9686 = vmatprep.mubr.msk.f32.mxu1 %vm18_vm0, %v5384_v49  ;;  %v11710_v5 = vpop.f32.mrf.mxu0 }
 0x1ab   :  { %v11712_v20 = vpop.f32.mrf.mxu1 }
 0x1ac   :  { %13517 = vst [vmem:[#allocation39_spill] sm:$0xff] %v11712_v20  ;;  %v11714_v52 = vpop.f32.mrf.mxu0  ;;  %9637 = vmatmul.mubr.msk.f32.gmra.mxu0 %vm18_vm0, %v11479_v58 }
 0x1ad   :  { %v11716_v34 = vpop.f32.mrf.mxu1  ;;  %9687 = vmatmul.mubr.msk.f32.gmra.mxu1 %vm18_vm0, %v5385_v40  ;;  %9639 = vmatprep.mubr.msk.f32.mxu0 %vm18_vm0, %v11481_v4  ;;  %v5389_v40 = vld [vmem:[#allocation2 + $0xb2] sm:$0xff] }
 0x1ae   :  { %13518 = vst [vmem:[#allocation40_spill] sm:$0xff] %v11716_v34  ;;  %9689 = vmatprep.mubr.msk.f32.mxu1 %vm18_vm0, %v5386_v59  ;;  %v11724_v49 = vpop.f32.mrf.mxu0 }
 0x1af   :  { %v11726_v62 = vpop.f32.mrf.mxu1 }
 0x1b0   :  { %13519 = vst [vmem:[#allocation41_spill] sm:$0xff] %v11726_v62  ;;  %v11728_v9 = vpop.f32.mrf.mxu0  ;;  %9640 = vmatmul.mubr.msk.f32.gmra.mxu0 %vm18_vm0, %v11495_v57  ;;  %v5390_v62 = vld [vmem:[#allocation2 + $0xc2] sm:$0xff] }
 0x1b1   :  { %v11730_v17 = vpop.f32.mrf.mxu1  ;;  %9690 = vmatmul.mubr.msk.f32.gmra.mxu1 %vm18_vm0, %v5387_v50  ;;  %9642 = vmatprep.mubr.msk.f32.mxu0 %vm18_vm0, %v11497_v25 }
 0x1b2   :  { %9692 = vmatprep.mubr.msk.f32.mxu1 %vm18_vm0, %v5388_v28  ;;  %v11738_v59 = vpop.f32.mrf.mxu0  ;;  %v5391_v28 = vld [vmem:[#allocation2 + $0xca] sm:$0xff] }
 0x1b3   :  { %v11740_v34 = vpop.f32.mrf.mxu1 }
 0x1b4   :  { %13520 = vst [vmem:[#allocation42_spill] sm:$0xff] %v11740_v34  ;;  %v11742_v20 = vpop.f32.mrf.mxu0  ;;  %9643 = vmatmul.mubr.msk.f32.gmra.mxu0 %vm18_vm0, %v11511_v21  ;;  %v5392_v34 = vld [vmem:[#allocation2 + $0xda] sm:$0xff] }
 0x1b5   :  { %13521 = vst [vmem:[#allocation43_spill] sm:$0xff] %v11742_v20  ;;  %v11744_v15 = vpop.f32.mrf.mxu1  ;;  %9693 = vmatmul.mubr.msk.f32.gmra.mxu1 %vm18_vm0, %v5389_v40  ;;  %9645 = vmatprep.mubr.msk.f32.mxu0 %vm18_vm0, %v11513_v29 }
 0x1b6   :  { %13522 = vst [vmem:[#allocation44_spill] sm:$0xff] %v11744_v15  ;;  %9695 = vmatprep.mubr.msk.f32.mxu1 %vm18_vm0, %v5390_v62  ;;  %v11752_v50 = vpop.f32.mrf.mxu0  ;;  %v5393_v62 = vld [vmem:[#allocation2 + $0xe2] sm:$0xff] }
 0x1b7   :  { %v11754_v25 = vpop.f32.mrf.mxu1 }
 0x1b8   :  { %13523 = vst [vmem:[#allocation45_spill] sm:$0xff] %v11754_v25  ;;  %v11756_v57 = vpop.f32.mrf.mxu0  ;;  %9646 = vmatmul.mubr.msk.f32.gmra.mxu0 %vm18_vm0, %v11527_v60  ;;  %v5394_v25 = vld [vmem:[#allocation2 + $0xf2] sm:$0xff] }
 0x1b9   :  { %v11758_v20 = vpop.f32.mrf.mxu1  ;;  %9696 = vmatmul.mubr.msk.f32.gmra.mxu1 %vm18_vm0, %v5391_v28  ;;  %9648 = vmatprep.mubr.msk.f32.mxu0 %vm18_vm0, %v11529_v33  ;;  %v5395_v33 = vld [vmem:[#allocation2 + $0xfa] sm:$0xff] }
 0x1ba   :  { %9698 = vmatprep.mubr.msk.f32.mxu1 %vm18_vm0, %v5392_v34  ;;  %v11766_v40 = vpop.f32.mrf.mxu0 }
 0x1bb   :  { %v11768_v15 = vpop.f32.mrf.mxu1 }
 0x1bc   :  { %13524 = vst [vmem:[#allocation46_spill] sm:$0xff] %v11768_v15  ;;  %v11770_v29 = vpop.f32.mrf.mxu0  ;;  %9649 = vmatmul.mubr.msk.f32.gmra.mxu0 %vm18_vm0, %v11543_v39  ;;  %v5396_v15 = vld [vmem:[#allocation2 + $0x10a] sm:$0xff] }
 0x1bd   :  { %13525 = vst [vmem:[#allocation47_spill] sm:$0xff] %v11770_v29  ;;  %v11772_v21 = vpop.f32.mrf.mxu1  ;;  %9699 = vmatmul.mubr.msk.f32.gmra.mxu1 %vm18_vm0, %v5393_v62  ;;  %9651 = vmatprep.mubr.msk.f32.mxu0 %vm18_vm0, %v11545_v37  ;;  %v5398_v62 = vld [vmem:[#allocation2 + $0x122] sm:$0xff] }
 0x1be   :  { %13526 = vst [vmem:[#allocation48_spill] sm:$0xff] %v11772_v21  ;;  %9701 = vmatprep.mubr.msk.f32.mxu1 %vm18_vm0, %v5394_v25  ;;  %v11780_v34 = vpop.f32.mrf.mxu0  ;;  %v5397_v25 = vld [vmem:[#allocation2 + $0x112] sm:$0xff] }
 0x1bf   :  { %v11782_v28 = vpop.f32.mrf.mxu1 }
 0x1c0   :  { %13527 = vst [vmem:[#allocation49_spill] sm:$0xff] %v11782_v28  ;;  %v11784_v60 = vpop.f32.mrf.mxu0  ;;  %9652 = vmatmul.mubr.msk.f32.gmra.mxu0 %vm18_vm0, %v11559_v19  ;;  %v5399_v19 = vld [vmem:[#allocation2 + $0x12a] sm:$0xff] }
 0x1c1   :  { %v11786_v29 = vpop.f32.mrf.mxu1  ;;  %9702 = vmatmul.mubr.msk.f32.gmra.mxu1 %vm18_vm0, %v5395_v33  ;;  %9654 = vmatprep.mubr.msk.f32.mxu0 %vm18_vm0, %v11561_v6 }
 0x1c2   :  { %9704 = vmatprep.mubr.msk.f32.mxu1 %vm18_vm0, %v5396_v15  ;;  %v11794_v39 = vpop.f32.mrf.mxu0 }
 0x1c3   :  { %v11796_v37 = vpop.f32.mrf.mxu1 }
 0x1c4   :  { %13528 = vst [vmem:[#allocation50_spill] sm:$0xff] %v11796_v37  ;;  %v11798_v28 = vpop.f32.mrf.mxu0  ;;  %9655 = vmatmul.mubr.msk.f32.gmra.mxu0 %vm18_vm0, %v11575_v2 }
 0x1c5   :  { %v11800_v21 = vpop.f32.mrf.mxu1  ;;  %9705 = vmatmul.mubr.msk.f32.gmra.mxu1 %vm18_vm0, %v5397_v25  ;;  %9657 = vmatprep.mubr.msk.f32.mxu0 %vm18_vm0, %v11577_v13 }
 0x1c6   :  { %9707 = vmatprep.mubr.msk.f32.mxu1 %vm18_vm0, %v5398_v62  ;;  %v11808_v6 = vpop.f32.mrf.mxu0 }
 0x1c7   :  { %v11810_v15 = vpop.f32.mrf.mxu1 }
 0x1c8   :  { %v11812_v33 = vpop.f32.mrf.mxu0  ;;  %9658 = vmatmul.mubr.msk.f32.gmra.mxu0 %vm18_vm0, %v11591_v51 }
 0x1c9   :  { %v11814_v37 = vpop.f32.mrf.mxu1  ;;  %9708 = vmatmul.mubr.msk.f32.gmra.mxu1 %vm18_vm0, %v5399_v19  ;;  %9660 = vmatprep.mubr.msk.f32.mxu0 %vm18_vm0, %v11593_v18 }
 0x1ca   :  { %9710 = vmatprep.mubr.msk.f32.mxu1 %vm18_vm0, %v11318_v31  ;;  %v11823_v2 = vpop.f32.mrf.mxu0 }
 0x1cb   :  { %v11825_v13 = vpop.f32.mrf.mxu1 }
 0x1cc   :  { %v11827_v25 = vpop.f32.mrf.mxu0  ;;  %9661 = vmatmul.mubr.msk.f32.gmra.mxu0 %vm18_vm0, %v11607_v36  ;;  %v11859_v36 = vld [vmem:[#allocation2 + $0x180] sm:$0xff] }
 0x1cd   :  { %v11829_v62 = vpop.f32.mrf.mxu1  ;;  %9711 = vmatmul.mubr.msk.f32.gmra.mxu1 %vm18_vm0, %v11333_v54  ;;  %9663 = vmatprep.mubr.msk.f32.mxu0 %vm18_vm0, %v11609_v41  ;;  %v5406_v41 = vld [vmem:[#allocation2 + $0x182] sm:$0xff] }
 0x1ce   :  { %9713 = vmatprep.mubr.msk.f32.mxu1 %vm18_vm0, %v11335_v61  ;;  %v11839_v31 = vpop.f32.mrf.mxu0 }
 0x1cf   :  { %v11841_v51 = vpop.f32.mrf.mxu1 }
 0x1d0   :  { %v11843_v18 = vpop.f32.mrf.mxu0  ;;  %9664 = vmatmul.mubr.msk.f32.gmra.mxu0 %vm18_vm0, %v11623_v10 }
 0x1d1   :  { %13529 = vst [vmem:[#allocation51_spill] sm:$0xff] %v11843_v18  ;;  %v11845_v19 = vpop.f32.mrf.mxu1  ;;  %9714 = vmatmul.mubr.msk.f32.gmra.mxu1 %vm18_vm0, %v11350_v27  ;;  %9666 = vmatprep.mubr.msk.f32.mxu0 %vm18_vm0, %v11625_v46  ;;  %v11872_v27 = vld [vmem:[#allocation2 + $0x188] sm:$0xff] }
 0x1d2   :  { %13530 = vst [vmem:[#allocation52_spill] sm:$0xff] %v11845_v19  ;;  %9716 = vmatprep.mubr.msk.f32.mxu1 %vm18_vm0, %v11352_v24  ;;  %v11855_v54 = vpop.f32.mrf.mxu0  ;;  %13534 = vst [vmem:[#allocation56_spill] sm:$0xff] %v11872_v27  ;;  %v5407_v24 = vld [vmem:[#allocation2 + $0x18a] sm:$0xff] }
 0x1d3   :  { %v11857_v61 = vpop.f32.mrf.mxu1 }
 0x1d4   :  { %13531 = vst [vmem:[#allocation53_spill] sm:$0xff] %v11857_v61  ;;  %v11861_v19 = vpop.f32.mrf.mxu0  ;;  %9667 = vmatmul.mubr.msk.f32.gmra.mxu0 %vm18_vm0, %v11639_v44  ;;  %v11878_v61 = vld [vmem:[#allocation2 + $0x198] sm:$0xff] }
 0x1d5   :  { %13532 = vst [vmem:[#allocation54_spill] sm:$0xff] %v11861_v19  ;;  %v11863_v18 = vpop.f32.mrf.mxu1  ;;  %9717 = vmatmul.mubr.msk.f32.gmra.mxu1 %vm18_vm0, %v11366_v7  ;;  %9669 = vmatprep.mubr.msk.f32.mxu0 %vm18_vm0, %v11859_v36  ;;  %v11890_v7 = vld [vmem:[#allocation2 + $0x1a0] sm:$0xff] }
 0x1d6   :  { %13533 = vst [vmem:[#allocation55_spill] sm:$0xff] %v11863_v18  ;;  %9719 = vmatprep.mubr.msk.f32.mxu1 %vm18_vm0, %v5406_v41  ;;  %v11874_v10 = vpop.f32.mrf.mxu0  ;;  %v5408_v18 = vld [vmem:[#allocation2 + $0x19a] sm:$0xff]  ;;  %v5409_v41 = vld [vmem:[#allocation2 + $0x1a2] sm:$0xff] }
 0x1d7   :  { %13535 = vst [vmem:[#allocation57_spill] sm:$0xff] %v11874_v10  ;;  %v11876_v46 = vpop.f32.mrf.mxu1 }
 0x1d8   :  { %13536 = vst [vmem:[#allocation58_spill] sm:$0xff] %v11876_v46  ;;  %v11880_v19 = vpop.f32.mrf.mxu0  ;;  %9670 = vmatmul.mubr.msk.f32.gmra.mxu0 %vm18_vm0, %v11872_v27 }
 0x1d9   :  { %13537 = vst [vmem:[#allocation59_spill] sm:$0xff] %v11880_v19  ;;  %v11882_v44 = vpop.f32.mrf.mxu1  ;;  %9720 = vmatmul.mubr.msk.f32.gmra.mxu1 %vm18_vm0, %v5407_v24  ;;  %9672 = vmatprep.mubr.msk.f32.mxu0 %vm18_vm0, %v11878_v61 }
 0x1da   :  { %13538 = vst [vmem:[#allocation60_spill] sm:$0xff] %v11882_v44  ;;  %9722 = vmatprep.mubr.msk.f32.mxu1 %vm18_vm0, %v5408_v18  ;;  %v11892_v46 = vpop.f32.mrf.mxu0  ;;  %v2791_v44 = vadd.f32 %v11656_v43, %v11405_v3  ;;  %v2790_v18 = vadd.f32 %v11677_v0, %v11412_v42 }
 0x1db   :  { %v11894_v10 = vpop.f32.mrf.mxu1 }
 0x1dc   :  { %13539 = vst [vmem:[#allocation61_spill] sm:$0xff] %v11894_v10  ;;  %v11898_v19 = vpop.f32.mrf.mxu0  ;;  %9673 = vmatmul.mubr.msk.f32.gmra.mxu0 %vm18_vm0, %v11890_v7  ;;  %v3178_v43 = vadd.f32 %v11658_v12, %v2791_v44  ;;  %v13547_v44 = vld [vmem:[#allocation13_spill] sm:$0xff] }
 0x1dd   :  { %v11900_v27 = vpop.f32.mrf.mxu1  ;;  %9723 = vmatmul.mubr.msk.f32.gmra.mxu1 %vm18_vm0, %v5409_v41  ;;  %9727 = vmatprep.mubr.msk.f32.mxu0 %vm18_vm0, %v11403_v26  ;;  %v2792_v41 = vadd.f32 %v11696_v48, %v11434_v22  ;;  %v3177_v26 = vadd.f32 %v11679_v55, %v2790_v18  ;;  %v2794_v22 = vadd.f32 %v11710_v5, %v11456_v32 }
 0x1de   :  { %13540 = vst [vmem:[#allocation62_spill] sm:$0xff] %v11900_v27  ;;  %9777 = vmatprep.mubr.msk.f32.mxu1 %vm18_vm0, %v11445_v63  ;;  %v11911_v24 = vpop.f32.mrf.mxu0  ;;  %v2793_v27 = vadd.f32 %v11686_v23, %v11427_v1  ;;  %v2795_v1 = vadd.f32 %v11700_v38, %v11449_v8  ;;  %v13542_v23 = vld [vmem:[#allocation12_spill] sm:$0xff]  ;;  %v2798_v18 = vadd.f32 %v11738_v59, %v13547_v44  ;;  %v13555_v44 = vld [vmem:[#allocation17_spill] sm:$0xff] }
 0x1df   :  { %v11913_v3 = vpop.f32.mrf.mxu1  ;;  %v3179_v32 = vadd.f32 %v11698_v53, %v2792_v41 }
 0x1e0   :  { %v9429_v10 = vpop.f32.mrf.mxu0  ;;  %9728 = vmatmul.mubr.msk.f32.vlgmr.msra.gmra.mxu0 %vm18_vm0, %v11421_v56  ;;  %v3180_v56 = vadd.f32 %v11688_v45, %v2793_v27 }
 0x1e1   :  { %v11920_v42 = vpop.f32.mrf.mxu1  ;;  %9778 = vmatmul.mubr.msk.f32.vlgmr.msra.gmra.mxu1 %vm18_vm0, %v11463_v35  ;;  %v3565_v63 = vadd.f32 %v9429_v10, %v3178_v43  ;;  %9826 = vmatpush3.msra.mxu0 %v11666_v11  ;;  %v2797_v35 = vadd.f32 %v11714_v52, %v11467_v47  ;;  %v13544_v52 = vld [vmem:[#allocation10_spill] sm:$0xff]  ;;  %v13546_v10 = vld [vmem:[#allocation39_spill] sm:$0xff] }
 0x1e2   :  { %9876 = vmatpush3.msra.mxu1 %v11671_v14  ;;  %v3405_v12 = vpop.f32.mrf.mxu0  ;;  %9730 = vmatprep.mubr.msk.f32.mxu0 %vm18_vm0, %v11425_v30  ;;  %v13541_v14 = vld [vmem:[#allocation11_spill] sm:$0xff]  ;;  %v2799_v30 = vadd.f32 %v11728_v9, %v13542_v23 }
 0x1e3   :  { %v11933_v0 = vpop.f32.mrf.mxu1  ;;  %9780 = vmatprep.mubr.msk.f32.mxu1 %vm18_vm0, %v11465_v16  ;;  %3598 = vst.msk [vmem:[#allocation3 + $0x8] sm:$0xff] %vm3596_vm2, %v3565_v63  ;;  %v3700_v8 = vmul.f32 %v3565_v63, %v3565_v63  ;;  %v3564_v11 = vadd.f32 %v3405_v12, %v3177_v26  ;;  %v2796_v55 = vadd.f32 %v11724_v49, %v13541_v14  ;;  %v13543_v16 = vld [vmem:[#allocation9_spill] sm:$0xff]  ;;  %v3630_v47 = vsel %vm3596_vm2, %v3565_v63, 0.0  ;;  %v11961_v9 = vld [vmem:[#allocation2 + $0x6c] sm:$0xff]  ;;  %v13545_v49 = vld [vmem:[#allocation38_spill] sm:$0xff] }
 0x1e4   :  { %v9432_v48 = vpop.f32.mrf.mxu0  ;;  %9731 = vmatmul.mubr.msk.f32.gmra.mxu0 %vm18_vm0, %v13543_v16  ;;  %v3182_v27 = vadd.f32 %v13545_v49, %v2795_v1  ;;  %v11969_v63 = vld [vmem:[#allocation2 + $0x7c] sm:$0xff]  ;;  %v13548_v12 = vld [vmem:[#allocation40_spill] sm:$0xff]  ;;  %v11977_v23 = vadd.f32 %v11730_v17, %v2799_v30  ;;  %v13551_v17 = vld [vmem:[#allocation15_spill] sm:$0xff] }
 0x1e5   :  { %v11948_v38 = vpop.f32.mrf.mxu1  ;;  %9781 = vmatmul.mubr.msk.f32.gmra.mxu1 %vm18_vm0, %v11479_v58  ;;  %3597 = vst.msk [vmem:[#allocation3] sm:$0xff] %vm3596_vm2, %v3564_v11  ;;  %v3629_v45 = vsel %vm3596_vm2, %v3564_v11, 0.0  ;;  %v3699_v53 = vmul.f32 %v3564_v11, %v3564_v11  ;;  %v3567_v5 = vadd.f32 %v9432_v48, %v3180_v56  ;;  %9733 = vmatprep.mubr.msk.f32.mxu0 %vm18_vm0, %v13544_v52  ;;  %v3732_v11 = vsel %vm3596_vm2, %v3700_v8, 0.0  ;;  %v13549_v14 = vld [vmem:[#allocation41_spill] sm:$0xff]  ;;  %v11991_v30 = vld [vmem:[#allocation2 + $0x84] sm:$0xff]  ;;  %v13553_v52 = vld [vmem:[#allocation16_spill] sm:$0xff] }
 0x1e6   :  { %9783 = vmatprep.mubr.msk.f32.mxu1 %vm18_vm0, %v11481_v4  ;;  %v3181_v58 = vadd.f32 %v13546_v10, %v2794_v22  ;;  %v3631_v43 = vadd.f32 %v3630_v47, %v3629_v45  ;;  %v3415_v41 = vpop.f32.mrf.mxu0  ;;  %v3184_v56 = vadd.f32 %v13548_v12, %v2797_v35  ;;  %v3183_v22 = vadd.f32 %v13549_v14, %v2796_v55  ;;  %v13550_v35 = vld [vmem:[#allocation14_spill] sm:$0xff]  ;;  %v13554_v49 = vld [vmem:[#allocation43_spill] sm:$0xff] }
 0x1e7   :  { %v11967_v26 = vpop.f32.mrf.mxu1  ;;  %v3731_v4 = vsel %vm3596_vm2, %v3699_v53, 0.0  ;;  %3600 = vst.msk [vmem:[#allocation3 + $0x18] sm:$0xff] %vm3596_vm2, %v3567_v5  ;;  %v3566_v1 = vadd.f32 %v3415_v41, %v3179_v32  ;;  %v3702_v8 = vmul.f32 %v3567_v5, %v3567_v5  ;;  %v13552_v45 = vld [vmem:[#allocation42_spill] sm:$0xff]  ;;  %v2801_v10 = vadd.f32 %v13554_v49, %v13553_v52 }
 0x1e8   :  { %v3733_v59 = vadd.f32 %v3732_v11, %v3731_v4  ;;  %v9435_v48 = vpop.f32.mrf.mxu0  ;;  %9734 = vmatmul.mubr.msk.f32.gmra.mxu0 %vm18_vm0, %v11961_v9  ;;  %v11994_v53 = vadd.f32 %v13552_v45, %v2798_v18  ;;  %v2800_v41 = vadd.f32 %v11752_v50, %v13555_v44  ;;  %v12002_v4 = vld [vmem:[#allocation2 + $0x94] sm:$0xff]  ;;  %v12022_v49 = vld [vmem:[#allocation2 + $0x9c] sm:$0xff] }
 0x1e9   :  { %v11979_v16 = vpop.f32.mrf.mxu1  ;;  %9784 = vmatmul.mubr.msk.f32.gmra.mxu1 %vm18_vm0, %v13550_v35  ;;  %3599 = vst.msk [vmem:[#allocation3 + $0x10] sm:$0xff] %vm3596_vm2, %v3566_v1  ;;  %v3632_v32 = vsel %vm3596_vm2, %v3566_v1, 0.0  ;;  %v3701_v47 = vmul.f32 %v3566_v1, %v3566_v1  ;;  %v3569_v55 = vadd.f32 %v9435_v48, %v3182_v27  ;;  %9736 = vmatprep.mubr.msk.f32.mxu0 %vm18_vm0, %v11969_v63  ;;  %v13557_v1 = vld [vmem:[#allocation20_spill] sm:$0xff]  ;;  %v3634_v48 = vsel %vm3596_vm2, %v3567_v5, 0.0 }
 0x1ea   :  { %9786 = vmatprep.mubr.msk.f32.mxu1 %vm18_vm0, %v13551_v17  ;;  %v3633_v12 = vadd.f32 %v3632_v32, %v3631_v43  ;;  %v3425_v11 = vpop.f32.mrf.mxu0  ;;  %v2803_v14 = vadd.f32 %v11756_v57, %v13557_v1  ;;  %v13559_v32 = vld [vmem:[#allocation18_spill] sm:$0xff]  ;;  %v3736_v57 = vsel %vm3596_vm2, %v3702_v8, 0.0  ;;  %v13561_v44 = vld [vmem:[#allocation44_spill] sm:$0xff] }
 0x1eb   :  { %v12000_v27 = vpop.f32.mrf.mxu1  ;;  %v3734_v18 = vsel %vm3596_vm2, %v3701_v47, 0.0  ;;  %3602 = vst.msk [vmem:[#allocation3 + $0x28] sm:$0xff] %vm3596_vm2, %v3569_v55  ;;  %v3568_v35 = vadd.f32 %v3425_v11, %v3181_v58  ;;  %v3704_v45 = vmul.f32 %v3569_v55, %v3569_v55  ;;  %v13562_v11 = vld [vmem:[#allocation45_spill] sm:$0xff] }
 0x1ec   :  { %13556 = vst [vmem:[#allocation11_spill] sm:$0xff] %v12000_v27  ;;  %v3735_v17 = vadd.f32 %v3734_v18, %v3733_v59  ;;  %v3635_v52 = vadd.f32 %v3634_v48, %v3633_v12  ;;  %v9438_v50 = vpop.f32.mrf.mxu0  ;;  %9737 = vmatmul.mubr.msk.f32.gmra.mxu0 %vm18_vm0, %v11991_v30  ;;  %v13560_v59 = vld [vmem:[#allocation19_spill] sm:$0xff]  ;;  %v3188_v12 = vadd.f32 %v13561_v44, %v2801_v10 }
 0x1ed   :  { %v12009_v43 = vpop.f32.mrf.mxu1  ;;  %9787 = vmatmul.mubr.msk.f32.gmra.mxu1 %vm18_vm0, %v13559_v32  ;;  %3601 = vst.msk [vmem:[#allocation3 + $0x20] sm:$0xff] %vm3596_vm2, %v3568_v35  ;;  %v3636_v5 = vsel %vm3596_vm2, %v3568_v35, 0.0  ;;  %v3703_v47 = vmul.f32 %v3568_v35, %v3568_v35  ;;  %v3571_v58 = vadd.f32 %v9438_v50, %v3184_v56  ;;  %9739 = vmatprep.mubr.msk.f32.mxu0 %vm18_vm0, %v12002_v4  ;;  %v12030_v35 = vld [vmem:[#allocation2 + $0xac] sm:$0xff]  ;;  %v6160_v56 = vld [vmem:[#allocation2 + $0xd8] sm:$0xff] }
 0x1ee   :  { %13558 = vst [vmem:[#allocation12_spill] sm:$0xff] %v12009_v43  ;;  %9789 = vmatprep.mubr.msk.f32.mxu1 %vm18_vm0, %v13560_v59  ;;  %v12026_v1 = vadd.f32 %v13562_v11, %v2800_v41  ;;  %v3637_v8 = vadd.f32 %v3636_v5, %v3635_v52  ;;  %v3737_v48 = vadd.f32 %v3736_v57, %v3735_v17  ;;  %v3435_v18 = vpop.f32.mrf.mxu0  ;;  %13564 = vst [vmem:[#allocation10_spill] sm:$0xff] %v12030_v35  ;;  %v13565_v41 = vld [vmem:[#allocation21_spill] sm:$0xff] }
 0x1ef   :  { %v12028_v32 = vpop.f32.mrf.mxu1  ;;  %v12033_v50 = vadd.f32 %v11758_v20, %v2803_v14  ;;  %v3638_v59 = vsel %vm3596_vm2, %v3569_v55, 0.0  ;;  %v3738_v43 = vsel %vm3596_vm2, %v3703_v47, 0.0  ;;  %3604 = vst.msk [vmem:[#allocation3 + $0x38] sm:$0xff] %vm3596_vm2, %v3571_v58  ;;  %v3570_v10 = vadd.f32 %v3435_v18, %v3183_v22  ;;  %v13567_v20 = vld [vmem:[#allocation22_spill] sm:$0xff]  ;;  %v13568_v47 = vld [vmem:[#allocation24_spill] sm:$0xff] }
 0x1f0   :  { %13563 = vst [vmem:[#allocation9_spill] sm:$0xff] %v12028_v32  ;;  %v2802_v52 = vadd.f32 %v11766_v40, %v13565_v41  ;;  %v3740_v17 = vsel %vm3596_vm2, %v3704_v45, 0.0  ;;  %v3739_v57 = vadd.f32 %v3738_v43, %v3737_v48  ;;  %v3639_v5 = vadd.f32 %v3638_v59, %v3637_v8  ;;  %v9441_v44 = vpop.f32.mrf.mxu0  ;;  %9740 = vmatmul.mubr.msk.f32.gmra.mxu0 %vm18_vm0, %v12022_v49  ;;  %v12053_v45 = vld [vmem:[#allocation2 + $0xb4] sm:$0xff]  ;;  %v6161_v43 = vld [vmem:[#allocation2 + $0xe0] sm:$0xff]  ;;  %v13569_v8 = vld [vmem:[#allocation47_spill] sm:$0xff] }
 0x1f1   :  { %v12041_v11 = vpop.f32.mrf.mxu1  ;;  %9790 = vmatmul.mubr.msk.f32.gmra.mxu1 %vm18_vm0, %v13567_v20  ;;  %v3706_v55 = vmul.f32 %v3571_v58, %v3571_v58  ;;  %3603 = vst.msk [vmem:[#allocation3 + $0x30] sm:$0xff] %vm3596_vm2, %v3570_v10  ;;  %v3640_v22 = vsel %vm3596_vm2, %v3570_v10, 0.0  ;;  %v3705_v14 = vmul.f32 %v3570_v10, %v3570_v10  ;;  %v3573_v40 = vadd.f32 %v9441_v44, %v11977_v23  ;;  %v13570_v18 = vld [vmem:[#allocation26_spill] sm:$0xff]  ;;  %v6162_v44 = vld [vmem:[#allocation2 + $0xf0] sm:$0xff]  ;;  %v13572_v32 = vld [vmem:[#allocation27_spill] sm:$0xff] }
 0x1f2   :  { %13566 = vst [vmem:[#allocation38_spill] sm:$0xff] %v12041_v11  ;;  %9742 = vmatprep.mubr.msk.f32.mxu0 %vm18_vm0, %v12030_v35  ;;  %9792 = vmatprep.mubr.msk.f32.mxu1 %vm18_vm0, %v6160_v56  ;;  %v2805_v48 = vadd.f32 %v13569_v8, %v13568_v47  ;;  %v2804_v59 = vadd.f32 %v11780_v34, %v13570_v18  ;;  %v3445_v11 = vpop.f32.mrf.mxu0  ;;  %v12061_v23 = vld [vmem:[#allocation2 + $0xc4] sm:$0xff]  ;;  %v3642_v27 = vsel %vm3596_vm2, %v3571_v58, 0.0  ;;  %v13575_v8 = vld [vmem:[#allocation48_spill] sm:$0xff] }
 0x1f3   :  { %v3641_v41 = vadd.f32 %v3640_v22, %v3639_v5  ;;  %v3741_v20 = vadd.f32 %v3740_v17, %v3739_v57  ;;  %v12059_v10 = vpop.f32.mrf.mxu1  ;;  %v2807_v56 = vadd.f32 %v11784_v60, %v13572_v32  ;;  %v3742_v35 = vsel %vm3596_vm2, %v3705_v14, 0.0  ;;  %3606 = vst.msk [vmem:[#allocation3 + $0x48] sm:$0xff] %vm3596_vm2, %v3573_v40 }
 0x1f4   :  { %13571 = vst [vmem:[#allocation39_spill] sm:$0xff] %v12059_v10  ;;  %v3572_v47 = vadd.f32 %v3445_v11, %v11994_v53  ;;  %v3708_v5 = vmul.f32 %v3573_v40, %v3573_v40  ;;  %v9444_v57 = vpop.f32.mrf.mxu0  ;;  %9743 = vmatmul.mubr.msk.f32.gmra.mxu0 %vm18_vm0, %v12053_v45  ;;  %v3744_v60 = vsel %vm3596_vm2, %v3706_v55, 0.0  ;;  %v12080_v53 = vld [vmem:[#allocation2 + $0xcc] sm:$0xff] }
 0x1f5   :  { %v3743_v34 = vadd.f32 %v3742_v35, %v3741_v20  ;;  %v3643_v17 = vadd.f32 %v3642_v27, %v3641_v41  ;;  %v12069_v22 = vpop.f32.mrf.mxu1  ;;  %9793 = vmatmul.mubr.msk.f32.gmra.mxu1 %vm18_vm0, %v6161_v43  ;;  %v3575_v14 = vadd.f32 %v9444_v57, %v3188_v12  ;;  %9745 = vmatprep.mubr.msk.f32.mxu0 %vm18_vm0, %v12061_v23  ;;  %v6163_v27 = vld [vmem:[#allocation2 + $0xf8] sm:$0xff]  ;;  %v13574_v35 = vld [vmem:[#allocation46_spill] sm:$0xff]  ;;  %v6164_v12 = vld [vmem:[#allocation2 + $0x108] sm:$0xff] }
 0x1f6   :  { %13573 = vst [vmem:[#allocation13_spill] sm:$0xff] %v12069_v22  ;;  %3605 = vst.msk [vmem:[#allocation3 + $0x40] sm:$0xff] %vm3596_vm2, %v3572_v47  ;;  %v3644_v58 = vsel %vm3596_vm2, %v3572_v47, 0.0  ;;  %v3707_v32 = vmul.f32 %v3572_v47, %v3572_v47  ;;  %9795 = vmatprep.mubr.msk.f32.mxu1 %vm18_vm0, %v6162_v44  ;;  %v3189_v11 = vadd.f32 %v13574_v35, %v2802_v52  ;;  %v3455_v41 = vpop.f32.mrf.mxu0  ;;  %v12086_v22 = vld [vmem:[#allocation2 + $0xdc] sm:$0xff]  ;;  %v3646_v44 = vsel %vm3596_vm2, %v3573_v40, 0.0 }
 0x1f7   :  { %v3192_v43 = vadd.f32 %v13575_v8, %v2805_v48  ;;  %v3645_v18 = vadd.f32 %v3644_v58, %v3643_v17  ;;  %v3745_v55 = vadd.f32 %v3744_v60, %v3743_v34  ;;  %v12084_v20 = vpop.f32.mrf.mxu1  ;;  %v13576_v47 = vld [vmem:[#allocation49_spill] sm:$0xff]  ;;  %3608 = vst.msk [vmem:[#allocation3 + $0x58] sm:$0xff] %vm3596_vm2, %v3575_v14  ;;  %v3574_v52 = vadd.f32 %v3455_v41, %v12026_v1 }
 0x1f8   :  { %v12089_v57 = vadd.f32 %v13576_v47, %v2804_v59  ;;  %v3746_v10 = vsel %vm3596_vm2, %v3707_v32, 0.0  ;;  %v12096_v48 = vadd.f32 %v11786_v29, %v2807_v56  ;;  %v3748_v34 = vsel %vm3596_vm2, %v3708_v5, 0.0  ;;  %v9447_v58 = vpop.f32.mrf.mxu0  ;;  %9746 = vmatmul.mubr.msk.f32.gmra.mxu0 %vm18_vm0, %v12080_v53  ;;  %v6165_v56 = vld [vmem:[#allocation2 + $0x110] sm:$0xff] }
 0x1f9   :  { %v3747_v17 = vadd.f32 %v3746_v10, %v3745_v55  ;;  %v3647_v60 = vadd.f32 %v3646_v44, %v3645_v18  ;;  %v12099_v35 = vpop.f32.mrf.mxu1  ;;  %9796 = vmatmul.mubr.msk.f32.gmra.mxu1 %vm18_vm0, %v6163_v27  ;;  %v3710_v40 = vmul.f32 %v3575_v14, %v3575_v14  ;;  %3607 = vst.msk [vmem:[#allocation3 + $0x50] sm:$0xff] %vm3596_vm2, %v3574_v52  ;;  %v3648_v1 = vsel %vm3596_vm2, %v3574_v52, 0.0  ;;  %v12110_v10 = vld [vmem:[#allocation2 + $0xe4] sm:$0xff]  ;;  %v13578_v5 = vld [vmem:[#allocation28_spill] sm:$0xff]  ;;  %v13579_v27 = vld [vmem:[#allocation29_spill] sm:$0xff] }
 0x1fa   :  { %13577 = vst [vmem:[#allocation40_spill] sm:$0xff] %v12099_v35  ;;  %v3709_v59 = vmul.f32 %v3574_v52, %v3574_v52  ;;  %v3577_v29 = vadd.f32 %v9447_v58, %v12033_v50  ;;  %9748 = vmatprep.mubr.msk.f32.mxu0 %vm18_vm0, %v12086_v22  ;;  %9798 = vmatprep.mubr.msk.f32.mxu1 %vm18_vm0, %v6164_v12  ;;  %v3465_v41 = vpop.f32.mrf.mxu0  ;;  %v12118_v50 = vld [vmem:[#allocation2 + $0xf4] sm:$0xff]  ;;  %v6166_v44 = vld [vmem:[#allocation2 + $0x120] sm:$0xff]  ;;  %v3650_v58 = vsel %vm3596_vm2, %v3575_v14, 0.0 }
 0x1fb   :  { %v2806_v32 = vadd.f32 %v11794_v39, %v13578_v5  ;;  %v2809_v8 = vadd.f32 %v11798_v28, %v13579_v27  ;;  %v3649_v18 = vadd.f32 %v3648_v1, %v3647_v60  ;;  %v3749_v55 = vadd.f32 %v3748_v34, %v3747_v17  ;;  %v12116_v47 = vpop.f32.mrf.mxu1  ;;  %v13580_v52 = vld [vmem:[#allocation30_spill] sm:$0xff] }
 0x1fc   :  { %v2808_v12 = vadd.f32 %v11808_v6, %v13580_v52  ;;  %v3750_v35 = vsel %vm3596_vm2, %v3709_v59, 0.0  ;;  %3610 = vst.msk [vmem:[#allocation3 + $0x68] sm:$0xff] %vm3596_vm2, %v3577_v29  ;;  %v3576_v39 = vadd.f32 %v3465_v41, %v3189_v11  ;;  %v3712_v28 = vmul.f32 %v3577_v29, %v3577_v29  ;;  %v9450_v34 = vpop.f32.mrf.mxu0  ;;  %9749 = vmatmul.mubr.msk.f32.gmra.mxu0 %vm18_vm0, %v12110_v10  ;;  %v12136_v11 = vld [vmem:[#allocation2 + $0xfc] sm:$0xff] }
 0x1fd   :  { %v3751_v5 = vadd.f32 %v3750_v35, %v3749_v55  ;;  %v3651_v60 = vadd.f32 %v3650_v58, %v3649_v18  ;;  %v12125_v17 = vpop.f32.mrf.mxu1  ;;  %9799 = vmatmul.mubr.msk.f32.gmra.mxu1 %vm18_vm0, %v6165_v56  ;;  %v3752_v6 = vsel %vm3596_vm2, %v3710_v40, 0.0  ;;  %v3579_v59 = vadd.f32 %v9450_v34, %v3192_v43  ;;  %9751 = vmatprep.mubr.msk.f32.mxu0 %vm18_vm0, %v12118_v50  ;;  %v6167_v35 = vld [vmem:[#allocation2 + $0x128] sm:$0xff]  ;;  %v13581_v27 = vld [vmem:[#allocation50_spill] sm:$0xff]  ;;  %v6168_v43 = vld [vmem:[#allocation2 + $0x138] sm:$0xff] }
 0x1fe   :  { %3609 = vst.msk [vmem:[#allocation3 + $0x60] sm:$0xff] %vm3596_vm2, %v3576_v39  ;;  %v3652_v14 = vsel %vm3596_vm2, %v3576_v39, 0.0  ;;  %v3711_v1 = vmul.f32 %v3576_v39, %v3576_v39  ;;  %9801 = vmatprep.mubr.msk.f32.mxu1 %vm18_vm0, %v6166_v44  ;;  %v3193_v18 = vadd.f32 %v13581_v27, %v2806_v32  ;;  %v3196_v56 = vadd.f32 %v11800_v21, %v2809_v8  ;;  %v3475_v41 = vpop.f32.mrf.mxu0  ;;  %v12142_v58 = vld [vmem:[#allocation2 + $0x10c] sm:$0xff] }
 0x1ff   :  { %v3653_v55 = vadd.f32 %v3652_v14, %v3651_v60  ;;  %v3753_v40 = vadd.f32 %v3752_v6, %v3751_v5  ;;  %v12140_v52 = vpop.f32.mrf.mxu1  ;;  %v12145_v39 = vadd.f32 %v11810_v15, %v2808_v12  ;;  %v3654_v44 = vsel %vm3596_vm2, %v3577_v29, 0.0  ;;  %3612 = vst.msk [vmem:[#allocation3 + $0x78] sm:$0xff] %vm3596_vm2, %v3579_v59  ;;  %v13583_v21 = vld [vmem:[#allocation31_spill] sm:$0xff]  ;;  %v12165_v12 = vld [vmem:[#allocation2 + $0x114] sm:$0xff] }
 0x200   :  { %13582 = vst [vmem:[#allocation41_spill] sm:$0xff] %v12140_v52  ;;  %v3754_v34 = vsel %vm3596_vm2, %v3711_v1, 0.0  ;;  %v3578_v32 = vadd.f32 %v3475_v41, %v12089_v57  ;;  %v2811_v8 = vadd.f32 %v11812_v33, %v13583_v21  ;;  %v3756_v5 = vsel %vm3596_vm2, %v3712_v28, 0.0  ;;  %v9453_v14 = vpop.f32.mrf.mxu0  ;;  %9752 = vmatmul.mubr.msk.f32.gmra.mxu0 %vm18_vm0, %v12136_v11  ;;  %v6169_v28 = vld [vmem:[#allocation2 + $0x140] sm:$0xff]  ;;  %v13585_v1 = vld [vmem:[#allocation32_spill] sm:$0xff] }
 0x201   :  { %v3755_v60 = vadd.f32 %v3754_v34, %v3753_v40  ;;  %v3655_v6 = vadd.f32 %v3654_v44, %v3653_v55  ;;  %v12154_v27 = vpop.f32.mrf.mxu1  ;;  %9802 = vmatmul.mubr.msk.f32.gmra.mxu1 %vm18_vm0, %v6167_v35  ;;  %v3714_v15 = vmul.f32 %v3579_v59, %v3579_v59  ;;  %v3581_v33 = vadd.f32 %v9453_v14, %v12096_v48  ;;  %v13586_v35 = vld [vmem:[#allocation23_spill] sm:$0xff]  ;;  %v6170_v21 = vld [vmem:[#allocation2 + $0x150] sm:$0xff]  ;;  %v13587_v14 = vld [vmem:[#allocation25_spill] sm:$0xff] }
 0x202   :  { %13584 = vst [vmem:[#allocation14_spill] sm:$0xff] %v12154_v27  ;;  %3611 = vst.msk [vmem:[#allocation3 + $0x70] sm:$0xff] %vm3596_vm2, %v3578_v32  ;;  %v3656_v57 = vsel %vm3596_vm2, %v3578_v32, 0.0  ;;  %v3713_v29 = vmul.f32 %v3578_v32, %v3578_v32  ;;  %9754 = vmatprep.mubr.msk.f32.mxu0 %vm18_vm0, %v12142_v58  ;;  %9804 = vmatprep.mubr.msk.f32.mxu1 %vm18_vm0, %v6168_v43  ;;  %v2810_v55 = vadd.f32 %v11823_v2, %v13585_v1  ;;  %v3485_v34 = vpop.f32.mrf.mxu0  ;;  %v12173_v48 = vld [vmem:[#allocation2 + $0x124] sm:$0xff] }
 0x203   :  { %v2813_v40 = vadd.f32 %v11827_v25, %v13586_v35  ;;  %v3657_v41 = vadd.f32 %v3656_v57, %v3655_v6  ;;  %v3757_v44 = vadd.f32 %v3756_v5, %v3755_v60  ;;  %v12171_v32 = vpop.f32.mrf.mxu1  ;;  %v2812_v43 = vadd.f32 %v11839_v31, %v13587_v14  ;;  %3614 = vst.msk [vmem:[#allocation3 + $0x88] sm:$0xff] %vm3596_vm2, %v3581_v33 }
 0x204   :  { %v3658_v27 = vsel %vm3596_vm2, %v3579_v59, 0.0  ;;  %v3758_v52 = vsel %vm3596_vm2, %v3713_v29, 0.0  ;;  %v3580_v2 = vadd.f32 %v3485_v34, %v3193_v18  ;;  %v3716_v25 = vmul.f32 %v3581_v33, %v3581_v33  ;;  %v9456_v5 = vpop.f32.mrf.mxu0  ;;  %9755 = vmatmul.mubr.msk.f32.gmra.mxu0 %vm18_vm0, %v12165_v12  ;;  %v12191_v18 = vld [vmem:[#allocation2 + $0x12c] sm:$0xff]  ;;  %v12197_v34 = vld [vmem:[#allocation2 + $0x13c] sm:$0xff] }
 0x205   :  { %v3759_v1 = vadd.f32 %v3758_v52, %v3757_v44  ;;  %v3659_v6 = vadd.f32 %v3658_v27, %v3657_v41  ;;  %v12180_v60 = vpop.f32.mrf.mxu1  ;;  %9805 = vmatmul.mubr.msk.f32.gmra.mxu1 %vm18_vm0, %v6169_v28  ;;  %v3760_v31 = vsel %vm3596_vm2, %v3714_v15, 0.0  ;;  %v3583_v29 = vadd.f32 %v9456_v5, %v3196_v56  ;;  %9757 = vmatprep.mubr.msk.f32.mxu0 %vm18_vm0, %v12173_v48  ;;  %v6171_v52 = vld [vmem:[#allocation2 + $0x158] sm:$0xff]  ;;  %v6172_v56 = vld [vmem:[#allocation2 + $0x168] sm:$0xff] }
 0x206   :  { %3613 = vst.msk [vmem:[#allocation3 + $0x80] sm:$0xff] %vm3596_vm2, %v3580_v2  ;;  %v3660_v59 = vsel %vm3596_vm2, %v3580_v2, 0.0  ;;  %v3715_v57 = vmul.f32 %v3580_v2, %v3580_v2  ;;  %9807 = vmatprep.mubr.msk.f32.mxu1 %vm18_vm0, %v6170_v21  ;;  %v3198_v27 = vadd.f32 %v11814_v37, %v2811_v8  ;;  %v3197_v28 = vadd.f32 %v11825_v13, %v2810_v55  ;;  %v3495_v41 = vpop.f32.mrf.mxu0 }
 0x207   :  { %v3661_v35 = vadd.f32 %v3660_v59, %v3659_v6  ;;  %v3761_v15 = vadd.f32 %v3760_v31, %v3759_v1  ;;  %v12195_v44 = vpop.f32.mrf.mxu1  ;;  %v3200_v14 = vadd.f32 %v11829_v62, %v2813_v40  ;;  %v3662_v2 = vsel %vm3596_vm2, %v3581_v33, 0.0  ;;  %3616 = vst.msk [vmem:[#allocation3 + $0x98] sm:$0xff] %vm3596_vm2, %v3583_v29  ;;  %v13591_v31 = vld [vmem:[#allocation51_spill] sm:$0xff] }
 0x208   :  { %13588 = vst [vmem:[#allocation15_spill] sm:$0xff] %v12195_v44  ;;  %v3762_v21 = vsel %vm3596_vm2, %v3715_v57, 0.0  ;;  %v3582_v37 = vadd.f32 %v3495_v41, %v12145_v39  ;;  %v3199_v13 = vadd.f32 %v11841_v51, %v2812_v43  ;;  %v3764_v8 = vsel %vm3596_vm2, %v3716_v25, 0.0  ;;  %v9459_v6 = vpop.f32.mrf.mxu0  ;;  %9758 = vmatmul.mubr.msk.f32.gmra.mxu0 %vm18_vm0, %v12191_v18  ;;  %v12216_v51 = vld [vmem:[#allocation2 + $0x144] sm:$0xff]  ;;  %v6173_v43 = vld [vmem:[#allocation2 + $0x170] sm:$0xff]  ;;  %v13592_v57 = vld [vmem:[#allocation33_spill] sm:$0xff] }
 0x209   :  { %v3763_v55 = vadd.f32 %v3762_v21, %v3761_v15  ;;  %v3663_v1 = vadd.f32 %v3662_v2, %v3661_v35  ;;  %v12206_v5 = vpop.f32.mrf.mxu1  ;;  %9808 = vmatmul.mubr.msk.f32.gmra.mxu1 %vm18_vm0, %v6171_v52  ;;  %v3718_v62 = vmul.f32 %v3583_v29, %v3583_v29  ;;  %v3585_v40 = vadd.f32 %v9459_v6, %v3198_v27  ;;  %v13590_v25 = vld [vmem:[#allocation6_spill] sm:$0xff]  ;;  %v12224_v27 = vld [vmem:[#allocation2 + $0x154] sm:$0xff]  ;;  %v13593_v21 = vld [vmem:[#allocation7_spill] sm:$0xff] }
 0x20a   :  { %13589 = vst [vmem:[#allocation42_spill] sm:$0xff] %v12206_v5  ;;  %3615 = vst.msk [vmem:[#allocation3 + $0x90] sm:$0xff] %vm3596_vm2, %v3582_v37  ;;  %v3664_v33 = vsel %vm3596_vm2, %v3582_v37, 0.0  ;;  %v3717_v39 = vmul.f32 %v3582_v37, %v3582_v37  ;;  %9760 = vmatprep.mubr.msk.f32.mxu0 %vm18_vm0, %v12197_v34  ;;  %9810 = vmatprep.mubr.msk.f32.mxu1 %vm18_vm0, %v6172_v56  ;;  %v2815_v59 = vadd.f32 %v13591_v31, %v13590_v25  ;;  %v3505_v41 = vpop.f32.mrf.mxu0  ;;  %v13594_v37 = vld [vmem:[#allocation54_spill] sm:$0xff] }
 0x20b   :  { %v2814_v52 = vadd.f32 %v11855_v54, %v13592_v57  ;;  %v3665_v35 = vadd.f32 %v3664_v33, %v3663_v1  ;;  %v3765_v15 = vadd.f32 %v3764_v8, %v3763_v55  ;;  %v12222_v2 = vpop.f32.mrf.mxu1  ;;  %v2817_v6 = vadd.f32 %v13594_v37, %v13593_v21  ;;  %3618 = vst.msk [vmem:[#allocation3 + $0xa8] sm:$0xff] %vm3596_vm2, %v3585_v40 }
 0x20c   :  { %v3666_v56 = vsel %vm3596_vm2, %v3583_v29, 0.0  ;;  %v3766_v5 = vsel %vm3596_vm2, %v3717_v39, 0.0  ;;  %v3584_v25 = vadd.f32 %v3505_v41, %v3197_v28  ;;  %v3720_v44 = vmul.f32 %v3585_v40, %v3585_v40  ;;  %v9462_v1 = vpop.f32.mrf.mxu0  ;;  %9761 = vmatmul.mubr.msk.f32.gmra.mxu0 %vm18_vm0, %v12216_v51  ;;  %v12243_v28 = vld [vmem:[#allocation2 + $0x15c] sm:$0xff] }
 0x20d   :  { %v3767_v31 = vadd.f32 %v3766_v5, %v3765_v15  ;;  %v3667_v54 = vadd.f32 %v3666_v56, %v3665_v35  ;;  %v12231_v8 = vpop.f32.mrf.mxu1  ;;  %9811 = vmatmul.mubr.msk.f32.gmra.mxu1 %vm18_vm0, %v6173_v43  ;;  %v3768_v55 = vsel %vm3596_vm2, %v3718_v62, 0.0  ;;  %v3587_v39 = vadd.f32 %v9462_v1, %v3200_v14  ;;  %9763 = vmatprep.mubr.msk.f32.mxu0 %vm18_vm0, %v12224_v27  ;;  %v13596_v5 = vld [vmem:[#allocation52_spill] sm:$0xff]  ;;  %v13597_v35 = vld [vmem:[#allocation34_spill] sm:$0xff]  ;;  %v13598_v43 = vld [vmem:[#allocation57_spill] sm:$0xff] }
 0x20e   :  { %13595 = vst [vmem:[#allocation16_spill] sm:$0xff] %v12231_v8  ;;  %3617 = vst.msk [vmem:[#allocation3 + $0xa0] sm:$0xff] %vm3596_vm2, %v3584_v25  ;;  %v3668_v29 = vsel %vm3596_vm2, %v3584_v25, 0.0  ;;  %v3719_v33 = vmul.f32 %v3584_v25, %v3584_v25  ;;  %9813 = vmatprep.mubr.msk.f32.mxu1 %vm18_vm0, %v11859_v36  ;;  %v3202_v57 = vadd.f32 %v13596_v5, %v2815_v59  ;;  %v3515_v21 = vpop.f32.mrf.mxu0  ;;  %v12250_v56 = vld [vmem:[#allocation2 + $0x16c] sm:$0xff]  ;;  %v13600_v14 = vld [vmem:[#allocation53_spill] sm:$0xff]  ;;  %v3670_v1 = vsel %vm3596_vm2, %v3585_v40, 0.0 }
 0x20f   :  { %v2816_v15 = vadd.f32 %v13598_v43, %v13597_v35  ;;  %v3669_v62 = vadd.f32 %v3668_v29, %v3667_v54  ;;  %v3769_v41 = vadd.f32 %v3768_v55, %v3767_v31  ;;  %v12248_v37 = vpop.f32.mrf.mxu1  ;;  %v3201_v25 = vadd.f32 %v13600_v14, %v2814_v52  ;;  %3620 = vst.msk [vmem:[#allocation3 + $0xb8] sm:$0xff] %vm3596_vm2, %v3587_v39  ;;  %v13601_v59 = vld [vmem:[#allocation55_spill] sm:$0xff]  ;;  %v13603_v52 = vld [vmem:[#allocation56_spill] sm:$0xff]  ;;  %v13604_v43 = vld [vmem:[#allocation58_spill] sm:$0xff] }
 0x210   :  { %13599 = vst [vmem:[#allocation43_spill] sm:$0xff] %v12248_v37  ;;  %v3770_v36 = vsel %vm3596_vm2, %v3719_v33, 0.0  ;;  %v3586_v8 = vadd.f32 %v3515_v21, %v3199_v13  ;;  %v3204_v5 = vadd.f32 %v13601_v59, %v2817_v6  ;;  %v3772_v35 = vsel %vm3596_vm2, %v3720_v44, 0.0  ;;  %v9465_v55 = vpop.f32.mrf.mxu0  ;;  %9764 = vmatmul.mubr.msk.f32.gmra.mxu0 %vm18_vm0, %v12243_v28  ;;  %v12270_v44 = vld [vmem:[#allocation2 + $0x174] sm:$0xff]  ;;  %v13606_v21 = vld [vmem:[#allocation59_spill] sm:$0xff] }
 0x211   :  { %v3771_v54 = vadd.f32 %v3770_v36, %v3769_v41  ;;  %v3671_v31 = vadd.f32 %v3670_v1, %v3669_v62  ;;  %v12258_v29 = vpop.f32.mrf.mxu1  ;;  %9814 = vmatmul.mubr.msk.f32.gmra.mxu1 %vm18_vm0, %v13603_v52  ;;  %v3722_v40 = vmul.f32 %v3587_v39, %v3587_v39  ;;  %v3589_v6 = vadd.f32 %v9465_v55, %v3202_v57  ;;  %v13605_v41 = vld [vmem:[#allocation8_spill] sm:$0xff]  ;;  %v13608_v55 = vld [vmem:[#allocation35_spill] sm:$0xff] }
 0x212   :  { %13602 = vst [vmem:[#allocation17_spill] sm:$0xff] %v12258_v29  ;;  %3619 = vst.msk [vmem:[#allocation3 + $0xb0] sm:$0xff] %vm3596_vm2, %v3586_v8  ;;  %v3672_v13 = vsel %vm3596_vm2, %v3586_v8, 0.0  ;;  %v3721_v33 = vmul.f32 %v3586_v8, %v3586_v8  ;;  %9766 = vmatprep.mubr.msk.f32.mxu0 %vm18_vm0, %v12250_v56  ;;  %9816 = vmatprep.mubr.msk.f32.mxu1 %vm18_vm0, %v11878_v61  ;;  %v3203_v62 = vadd.f32 %v13604_v43, %v2816_v15  ;;  %v3525_v59 = vpop.f32.mrf.mxu0  ;;  %v12277_v8 = vld [vmem:[#allocation2 + $0x184] sm:$0xff]  ;;  %v6178_v57 = vld [vmem:[#allocation2 + $0x1b0] sm:$0xff] }
 0x213   :  { %v2819_v14 = vadd.f32 %v13606_v21, %v13605_v41  ;;  %v3673_v1 = vadd.f32 %v3672_v13, %v3671_v31  ;;  %v3773_v36 = vadd.f32 %v3772_v35, %v3771_v54  ;;  %v12275_v52 = vpop.f32.mrf.mxu1  ;;  %v2818_v29 = vadd.f32 %v11892_v46, %v13608_v55  ;;  %3622 = vst.msk [vmem:[#allocation3 + $0xc8] sm:$0xff] %vm3596_vm2, %v3589_v6  ;;  %v13610_v21 = vld [vmem:[#allocation60_spill] sm:$0xff] }
 0x214   :  { %13607 = vst [vmem:[#allocation20_spill] sm:$0xff] %v12275_v52  ;;  %v3674_v61 = vsel %vm3596_vm2, %v3587_v39, 0.0  ;;  %v3774_v37 = vsel %vm3596_vm2, %v3721_v33, 0.0  ;;  %v3588_v15 = vadd.f32 %v3525_v59, %v3201_v25  ;;  %v3724_v41 = vmul.f32 %v3589_v6, %v3589_v6  ;;  %v9468_v35 = vpop.f32.mrf.mxu0  ;;  %9767 = vmatmul.mubr.msk.f32.gmra.mxu0 %vm18_vm0, %v12270_v44  ;;  %v6179_v33 = vld [vmem:[#allocation2 + $0x1b8] sm:$0xff] }
 0x215   :  { %v3775_v43 = vadd.f32 %v3774_v37, %v3773_v36  ;;  %v3675_v31 = vadd.f32 %v3674_v61, %v3673_v1  ;;  %v12284_v54 = vpop.f32.mrf.mxu1  ;;  %9817 = vmatmul.mubr.msk.f32.gmra.mxu1 %vm18_vm0, %v11890_v7  ;;  %v3776_v46 = vsel %vm3596_vm2, %v3722_v40, 0.0  ;;  %v3591_v25 = vadd.f32 %v9468_v35, %v3204_v5  ;;  %9769 = vmatprep.mubr.msk.f32.mxu0 %vm18_vm0, %v12277_v8  ;;  %v12296_v37 = vld [vmem:[#allocation2 + $0x18c] sm:$0xff]  ;;  %v13614_v35 = vld [vmem:[#allocation37_spill] sm:$0xff] }
 0x216   :  { %13609 = vst [vmem:[#allocation18_spill] sm:$0xff] %v12284_v54  ;;  %3621 = vst.msk [vmem:[#allocation3 + $0xc0] sm:$0xff] %vm3596_vm2, %v3588_v15  ;;  %v3676_v39 = vsel %vm3596_vm2, %v3588_v15, 0.0  ;;  %v3723_v13 = vmul.f32 %v3588_v15, %v3588_v15  ;;  %9819 = vmatprep.mubr.msk.f32.mxu1 %vm18_vm0, %v6178_v57  ;;  %v3206_v1 = vadd.f32 %v13610_v21, %v2819_v14  ;;  %v13611_v36 = vld [vmem:[#allocation36_spill] sm:$0xff]  ;;  %v3535_v55 = vpop.f32.mrf.mxu0  ;;  %v12303_v15 = vld [vmem:[#allocation2 + $0x19c] sm:$0xff]  ;;  %v3678_v57 = vsel %vm3596_vm2, %v3589_v6, 0.0 }
 0x217   :  { %v2821_v7 = vadd.f32 %v11898_v19, %v13611_v36  ;;  %v3677_v40 = vadd.f32 %v3676_v39, %v3675_v31  ;;  %v3777_v59 = vadd.f32 %v3776_v46, %v3775_v43  ;;  %v12301_v61 = vpop.f32.mrf.mxu1  ;;  %13613 = vst [vmem:[#allocation44_spill] sm:$0xff] %v12303_v15  ;;  %v6180_v5 = vld [vmem:[#allocation2 + $0x1c8] sm:$0xff]  ;;  %v2820_v54 = vadd.f32 %v11911_v24, %v13614_v35  ;;  %v13615_v21 = vld [vmem:[#allocation61_spill] sm:$0xff] }
 0x218   :  { %13612 = vst [vmem:[#allocation19_spill] sm:$0xff] %v12301_v61  ;;  %v3778_v52 = vsel %vm3596_vm2, %v3723_v13, 0.0  ;;  %3624 = vst.msk [vmem:[#allocation3 + $0xd8] sm:$0xff] %vm3596_vm2, %v3591_v25  ;;  %v3590_v14 = vadd.f32 %v3535_v55, %v3203_v62  ;;  %v3205_v19 = vadd.f32 %v13615_v21, %v2818_v29  ;;  %v3780_v43 = vsel %vm3596_vm2, %v3724_v41, 0.0  ;;  %v9471_v39 = vpop.f32.mrf.mxu0  ;;  %9770 = vmatmul.mubr.msk.f32.gmra.mxu0 %vm18_vm0, %v12296_v37  ;;  %v12322_v29 = vld [vmem:[#allocation2 + $0x1a4] sm:$0xff] }
 0x219   :  { %v3779_v31 = vadd.f32 %v3778_v52, %v3777_v59  ;;  %v3679_v46 = vadd.f32 %v3678_v57, %v3677_v40  ;;  %v12312_v36 = vpop.f32.mrf.mxu1  ;;  %9820 = vmatmul.mubr.msk.f32.gmra.mxu1 %vm18_vm0, %v6179_v33  ;;  %v3726_v24 = vmul.f32 %v3591_v25, %v3591_v25  ;;  %v3593_v13 = vadd.f32 %v9471_v39, %v3206_v1  ;;  %v6181_v52 = vld [vmem:[#allocation2 + $0x1d0] sm:$0xff]  ;;  %v13617_v41 = vld [vmem:[#allocation62_spill] sm:$0xff] }
 0x21a   :  { %13616 = vst [vmem:[#allocation45_spill] sm:$0xff] %v12312_v36  ;;  %3623 = vst.msk [vmem:[#allocation3 + $0xd0] sm:$0xff] %vm3596_vm2, %v3590_v14  ;;  %v3680_v6 = vsel %vm3596_vm2, %v3590_v14, 0.0  ;;  %v3725_v62 = vmul.f32 %v3590_v14, %v3590_v14  ;;  %9772 = vmatprep.mubr.msk.f32.mxu0 %vm18_vm0, %v12303_v15  ;;  %9822 = vmatprep.mubr.msk.f32.mxu1 %vm18_vm0, %v6180_v5  ;;  %v3208_v40 = vadd.f32 %v13617_v41, %v2821_v7  ;;  %v3545_v33 = vpop.f32.mrf.mxu0  ;;  %v6536_v57 = vld [vmem:[#allocation2 + $0x62] sm:$0xff] }
 0x21b   :  { %v3681_v59 = vadd.f32 %v3680_v6, %v3679_v46  ;;  %v3781_v55 = vadd.f32 %v3780_v43, %v3779_v31  ;;  %v12325_v35 = vpop.f32.mrf.mxu1  ;;  %v6922_v21 = vld [vmem:[#allocation2 + $0x64] sm:$0xff]  ;;  %v3207_v14 = vadd.f32 %v11913_v3, %v2820_v54  ;;  %v3682_v1 = vsel %vm3596_vm2, %v3591_v25, 0.0  ;;  %3626 = vst.msk [vmem:[#allocation3 + $0xe8] sm:$0xff] %vm3596_vm2, %v3593_v13 }
 0x21c   :  { %v3782_v39 = vsel %vm3596_vm2, %v3725_v62, 0.0  ;;  %v3592_v5 = vadd.f32 %v3545_v33, %v3205_v19  ;;  %v3728_v61 = vmul.f32 %v3593_v13, %v3593_v13  ;;  %v9474_v7 = vpop.f32.mrf.mxu0  ;;  %9773 = vmatmul.mubr.msk.f32.gmra.mxu0 %vm18_vm0, %v12322_v29  ;;  %v3784_v3 = vsel %vm3596_vm2, %v3726_v24, 0.0  ;;  %v6537_v19 = vld [vmem:[#allocation2 + $0x6a] sm:$0xff] }
 0x21d   :  { %v3783_v36 = vadd.f32 %v3782_v39, %v3781_v55  ;;  %v3683_v15 = vadd.f32 %v3682_v1, %v3681_v59  ;;  %v12331_v46 = vpop.f32.mrf.mxu1  ;;  %9823 = vmatmul.mubr.msk.f32.gmra.mxu1 %vm18_vm0, %v6181_v52  ;;  %v3595_v43 = vadd.f32 %v9474_v7, %v3208_v40  ;;  %9827 = vmatprep.mubr.msk.f32.mxu0 %vm18_vm0, %v6536_v57  ;;  %v6538_v59 = vld [vmem:[#allocation2 + $0x7a] sm:$0xff]  ;;  %v3686_v52 = vsel %vm3596_vm2, %v3593_v13, 0.0 }
 0x21e   :  { %3625 = vst.msk [vmem:[#allocation3 + $0xe0] sm:$0xff] %vm3596_vm2, %v3592_v5  ;;  %v3684_v54 = vsel %vm3596_vm2, %v3592_v5, 0.0  ;;  %v3727_v25 = vmul.f32 %v3592_v5, %v3592_v5  ;;  %9877 = vmatprep.mubr.msk.f32.mxu1 %vm18_vm0, %v6922_v21  ;;  %v3555_v62 = vpop.f32.mrf.mxu0  ;;  %v3788_v40 = vsel %vm3596_vm2, %v3728_v61, 0.0  ;;  %v6539_v61 = vld [vmem:[#allocation2 + $0x82] sm:$0xff] }
 0x21f   :  { %v3685_v31 = vadd.f32 %v3684_v54, %v3683_v15  ;;  %v3785_v6 = vadd.f32 %v3784_v3, %v3783_v36  ;;  %v12341_v41 = vpop.f32.mrf.mxu1  ;;  %3628 = vst.msk [vmem:[#allocation3 + $0xf8] sm:$0xff] %vm3596_vm2, %v3595_v43  ;;  %v3594_v55 = vadd.f32 %v3555_v62, %v3207_v14  ;;  %v3730_v15 = vmul.f32 %v3595_v43, %v3595_v43  ;;  %v6540_v54 = vld [vmem:[#allocation2 + $0x92] sm:$0xff] }
 0x220   :  { %v3786_v24 = vsel %vm3596_vm2, %v3727_v25, 0.0  ;;  %v9529_v1 = vpop.f32.mrf.mxu0  ;;  %9828 = vmatmul.mubr.msk.f32.vlgmr.msra.gmra.mxu0 %vm18_vm0, %v6537_v19 }
 0x221   :  { %v3787_v33 = vadd.f32 %v3786_v24, %v3785_v6  ;;  %v3687_v57 = vadd.f32 %v3686_v52, %v3685_v31  ;;  %v9579_v21 = vpop.f32.mrf.mxu1  ;;  %9878 = vmatmul.mubr.msk.f32.vlgmr.msra.gmra.mxu1 %vm18_vm0, %v11961_v9  ;;  %3627 = vst.msk [vmem:[#allocation3 + $0xf0] sm:$0xff] %vm3596_vm2, %v3594_v55  ;;  %v3688_v36 = vsel %vm3596_vm2, %v3594_v55, 0.0  ;;  %v3729_v13 = vmul.f32 %v3594_v55, %v3594_v55 }
 0x222   :  { %v4453_v39 = vadd.f32 %v9529_v1, %v11920_v42  ;;  %9830 = vmatprep.mubr.msk.f32.mxu0 %vm18_vm0, %v6538_v59  ;;  %9880 = vmatprep.mubr.msk.f32.mxu1 %vm18_vm0, %v11969_v63  ;;  %v4447_v7 = vpop.f32.mrf.mxu0  ;;  %v3690_v9 = vsel %vm3596_vm2, %v3595_v43, 0.0  ;;  %v3792_v63 = vsel %vm3596_vm2, %v3730_v15, 0.0  ;;  %v13620_v15 = vld [vmem:[#allocation10_spill] sm:$0xff] }
 0x223   :  { %v3689_v14 = vadd.f32 %v3688_v36, %v3687_v57  ;;  %v3789_v5 = vadd.f32 %v3788_v40, %v3787_v33  ;;  %v4801_v3 = vpop.f32.mrf.mxu1  ;;  %v3790_v25 = vsel %vm3596_vm2, %v3729_v13, 0.0  ;;  %v4448_v31 = vadd.f32 %v4447_v7, %v11933_v0  ;;  %v6541_v0 = vld [vmem:[#allocation2 + $0x9a] sm:$0xff]  ;;  %v6542_v33 = vld [vmem:[#allocation2 + $0xaa] sm:$0xff]  ;;  %v6543_v36 = vld [vmem:[#allocation2 + $0xb2] sm:$0xff] }
 0x224   :  { %v12358_v19 = vadd.f32 %v9579_v21, %v4453_v39  ;;  %v9532_v62 = vpop.f32.mrf.mxu0  ;;  %9831 = vmatmul.mubr.msk.f32.gmra.mxu0 %vm18_vm0, %v6539_v61 }
 0x225   :  { %v12361_v42 = vadd.f32 %v3690_v9, %v3689_v14  ;;  %v3791_v6 = vadd.f32 %v3790_v25, %v3789_v5  ;;  %v9582_v59 = vpop.f32.mrf.mxu1  ;;  %9881 = vmatmul.mubr.msk.f32.gmra.mxu1 %vm18_vm0, %v11991_v30  ;;  %v12367_v52 = vadd.f32 %v4801_v3, %v4448_v31  ;;  %v4463_v43 = vadd.f32 %v9532_v62, %v11948_v38  ;;  %v13621_v14 = vld [vmem:[#allocation11_spill] sm:$0xff] }
 0x226   :  { %9833 = vmatprep.mubr.msk.f32.mxu0 %vm18_vm0, %v6540_v54  ;;  %9883 = vmatprep.mubr.msk.f32.mxu1 %vm18_vm0, %v12002_v4  ;;  %v4457_v55 = vpop.f32.mrf.mxu0  ;;  %v6545_v9 = vld [vmem:[#allocation2 + $0xca] sm:$0xff] }
 0x227   :  { %13618 = vst [vmem:[#allocation21_spill] sm:$0xff] %v12361_v42  ;;  %v12373_v24 = vadd.f32 %v3792_v63, %v3791_v6  ;;  %v4811_v40 = vpop.f32.mrf.mxu1  ;;  %v12375_v57 = vadd.f32 %v9582_v59, %v4463_v43  ;;  %v4458_v30 = vadd.f32 %v4457_v55, %v11967_v26  ;;  %v6544_v26 = vld [vmem:[#allocation2 + $0xc2] sm:$0xff]  ;;  %v6546_v6 = vld [vmem:[#allocation2 + $0xda] sm:$0xff] }
 0x228   :  { %v9535_v1 = vpop.f32.mrf.mxu0  ;;  %9834 = vmatmul.mubr.msk.f32.gmra.mxu0 %vm18_vm0, %v6541_v0  ;;  %v13623_v59 = vld [vmem:[#allocation9_spill] sm:$0xff]  ;;  %v13624_v55 = vld [vmem:[#allocation38_spill] sm:$0xff] }
 0x229   :  { %13619 = vst [vmem:[#allocation22_spill] sm:$0xff] %v12373_v24  ;;  %v9585_v21 = vpop.f32.mrf.mxu1  ;;  %9884 = vmatmul.mubr.msk.f32.gmra.mxu1 %vm18_vm0, %v12022_v49  ;;  %v12381_v38 = vadd.f32 %v4811_v40, %v4458_v30  ;;  %v4473_v4 = vadd.f32 %v9535_v1, %v11979_v16  ;;  %9836 = vmatprep.mubr.msk.f32.mxu0 %vm18_vm0, %v6542_v33  ;;  %v13622_v49 = vld [vmem:[#allocation12_spill] sm:$0xff] }
 0x22a   :  { %9886 = vmatprep.mubr.msk.f32.mxu1 %vm18_vm0, %v13620_v15  ;;  %v4467_v13 = vpop.f32.mrf.mxu0  ;;  %v6548_v1 = vld [vmem:[#allocation2 + $0xf2] sm:$0xff] }
 0x22b   :  { %v4821_v39 = vpop.f32.mrf.mxu1  ;;  %v12387_v61 = vadd.f32 %v9585_v21, %v4473_v4  ;;  %v4468_v5 = vadd.f32 %v4467_v13, %v13621_v14  ;;  %v13625_v4 = vld [vmem:[#allocation39_spill] sm:$0xff] }
 0x22c   :  { %v9538_v7 = vpop.f32.mrf.mxu0  ;;  %9837 = vmatmul.mubr.msk.f32.gmra.mxu0 %vm18_vm0, %v6543_v36 }
 0x22d   :  { %v9588_v3 = vpop.f32.mrf.mxu1  ;;  %9887 = vmatmul.mubr.msk.f32.gmra.mxu1 %vm18_vm0, %v12053_v45  ;;  %v12393_v16 = vadd.f32 %v4821_v39, %v4468_v5  ;;  %v4483_v54 = vadd.f32 %v9538_v7, %v13622_v49  ;;  %9839 = vmatprep.mubr.msk.f32.mxu0 %vm18_vm0, %v6544_v26  ;;  %v13626_v39 = vld [vmem:[#allocation13_spill] sm:$0xff]  ;;  %v6550_v7 = vld [vmem:[#allocation2 + $0x10a] sm:$0xff] }
 0x22e   :  { %9889 = vmatprep.mubr.msk.f32.mxu1 %vm18_vm0, %v12061_v23  ;;  %v4477_v25 = vpop.f32.mrf.mxu0  ;;  %v6547_v23 = vld [vmem:[#allocation2 + $0xe2] sm:$0xff] }
 0x22f   :  { %v4831_v31 = vpop.f32.mrf.mxu1  ;;  %v12399_v62 = vadd.f32 %v9588_v3, %v4483_v54  ;;  %v4478_v63 = vadd.f32 %v4477_v25, %v13623_v59  ;;  %v13627_v25 = vld [vmem:[#allocation40_spill] sm:$0xff] }
 0x230   :  { %v9541_v43 = vpop.f32.mrf.mxu0  ;;  %9840 = vmatmul.mubr.msk.f32.gmra.mxu0 %vm18_vm0, %v6545_v9 }
 0x231   :  { %v9591_v0 = vpop.f32.mrf.mxu1  ;;  %9890 = vmatmul.mubr.msk.f32.gmra.mxu1 %vm18_vm0, %v12080_v53  ;;  %v12405_v45 = vadd.f32 %v4831_v31, %v4478_v63  ;;  %v4493_v40 = vadd.f32 %v9541_v43, %v13624_v55  ;;  %9842 = vmatprep.mubr.msk.f32.mxu0 %vm18_vm0, %v6546_v6 }
 0x232   :  { %9892 = vmatprep.mubr.msk.f32.mxu1 %vm18_vm0, %v12086_v22  ;;  %v4487_v33 = vpop.f32.mrf.mxu0  ;;  %v6549_v22 = vld [vmem:[#allocation2 + $0xfa] sm:$0xff] }
 0x233   :  { %v4841_v30 = vpop.f32.mrf.mxu1  ;;  %v12411_v21 = vadd.f32 %v9591_v0, %v4493_v40  ;;  %v4488_v15 = vadd.f32 %v4487_v33, %v13625_v4 }
 0x234   :  { %v9544_v36 = vpop.f32.mrf.mxu0  ;;  %9843 = vmatmul.mubr.msk.f32.gmra.mxu0 %vm18_vm0, %v6547_v23 }
 0x235   :  { %v9594_v13 = vpop.f32.mrf.mxu1  ;;  %9893 = vmatmul.mubr.msk.f32.gmra.mxu1 %vm18_vm0, %v12110_v10  ;;  %v12417_v53 = vadd.f32 %v4841_v30, %v4488_v15  ;;  %v4503_v26 = vadd.f32 %v9544_v36, %v13626_v39  ;;  %9845 = vmatprep.mubr.msk.f32.mxu0 %vm18_vm0, %v6548_v1  ;;  %v13628_v1 = vld [vmem:[#allocation41_spill] sm:$0xff] }
 0x236   :  { %9895 = vmatprep.mubr.msk.f32.mxu1 %vm18_vm0, %v12118_v50  ;;  %v4497_v14 = vpop.f32.mrf.mxu0  ;;  %v6551_v50 = vld [vmem:[#allocation2 + $0x112] sm:$0xff] }
 0x237   :  { %v4851_v5 = vpop.f32.mrf.mxu1  ;;  %v12423_v3 = vadd.f32 %v9594_v13, %v4503_v26  ;;  %v4498_v49 = vadd.f32 %v4497_v14, %v12084_v20  ;;  %v6552_v20 = vld [vmem:[#allocation2 + $0x122] sm:$0xff] }
 0x238   :  { %v9547_v54 = vpop.f32.mrf.mxu0  ;;  %9846 = vmatmul.mubr.msk.f32.gmra.mxu0 %vm18_vm0, %v6549_v22  ;;  %v6556_v22 = vld [vmem:[#allocation2 + $0x152] sm:$0xff] }
 0x239   :  { %v9597_v9 = vpop.f32.mrf.mxu1  ;;  %9896 = vmatmul.mubr.msk.f32.gmra.mxu1 %vm18_vm0, %v12136_v11  ;;  %v12429_v10 = vadd.f32 %v4851_v5, %v4498_v49  ;;  %v4513_v31 = vadd.f32 %v9547_v54, %v13627_v25  ;;  %9848 = vmatprep.mubr.msk.f32.mxu0 %vm18_vm0, %v6550_v7 }
 0x23a   :  { %9898 = vmatprep.mubr.msk.f32.mxu1 %vm18_vm0, %v12142_v58  ;;  %v4507_v6 = vpop.f32.mrf.mxu0  ;;  %v6553_v58 = vld [vmem:[#allocation2 + $0x12a] sm:$0xff] }
 0x23b   :  { %v4861_v59 = vpop.f32.mrf.mxu1  ;;  %v12435_v63 = vadd.f32 %v9597_v9, %v4513_v31  ;;  %v4508_v43 = vadd.f32 %v4507_v6, %v12116_v47  ;;  %v6554_v47 = vld [vmem:[#allocation2 + $0x13a] sm:$0xff] }
 0x23c   :  { %v9550_v0 = vpop.f32.mrf.mxu0  ;;  %9849 = vmatmul.mubr.msk.f32.gmra.mxu0 %vm18_vm0, %v6551_v50  ;;  %v13630_v50 = vld [vmem:[#allocation15_spill] sm:$0xff] }
 0x23d   :  { %v9600_v55 = vpop.f32.mrf.mxu1  ;;  %9899 = vmatmul.mubr.msk.f32.gmra.mxu1 %vm18_vm0, %v12165_v12  ;;  %v12441_v11 = vadd.f32 %v4861_v59, %v4508_v43  ;;  %v4523_v40 = vadd.f32 %v9550_v0, %v12125_v17  ;;  %9851 = vmatprep.mubr.msk.f32.mxu0 %vm18_vm0, %v6552_v20  ;;  %v13629_v12 = vld [vmem:[#allocation14_spill] sm:$0xff] }
 0x23e   :  { %9901 = vmatprep.mubr.msk.f32.mxu1 %vm18_vm0, %v12173_v48  ;;  %v4517_v23 = vpop.f32.mrf.mxu0  ;;  %v6555_v48 = vld [vmem:[#allocation2 + $0x142] sm:$0xff] }
 0x23f   :  { %v4871_v33 = vpop.f32.mrf.mxu1  ;;  %v12447_v30 = vadd.f32 %v9600_v55, %v4523_v40  ;;  %v4518_v4 = vadd.f32 %v4517_v23, %v13628_v1  ;;  %v6560_v40 = vld [vmem:[#allocation2 + $0x182] sm:$0xff]  ;;  %v13632_v1 = vld [vmem:[#allocation16_spill] sm:$0xff] }
 0x240   :  { %v9553_v15 = vpop.f32.mrf.mxu0  ;;  %9852 = vmatmul.mubr.msk.f32.gmra.mxu0 %vm18_vm0, %v6553_v58 }
 0x241   :  { %v9603_v36 = vpop.f32.mrf.mxu1  ;;  %9902 = vmatmul.mubr.msk.f32.gmra.mxu1 %vm18_vm0, %v12191_v18  ;;  %v12453_v17 = vadd.f32 %v4871_v33, %v4518_v4  ;;  %v4533_v13 = vadd.f32 %v9553_v15, %v13629_v12  ;;  %9854 = vmatprep.mubr.msk.f32.mxu0 %vm18_vm0, %v6554_v47 }
 0x242   :  { %9904 = vmatprep.mubr.msk.f32.mxu1 %vm18_vm0, %v12197_v34  ;;  %v4527_v39 = vpop.f32.mrf.mxu0  ;;  %v6557_v34 = vld [vmem:[#allocation2 + $0x15a] sm:$0xff] }
 0x243   :  { %v4881_v26 = vpop.f32.mrf.mxu1  ;;  %v12459_v14 = vadd.f32 %v9603_v36, %v4533_v13  ;;  %v4528_v5 = vadd.f32 %v4527_v39, %v12171_v32  ;;  %v6558_v32 = vld [vmem:[#allocation2 + $0x16a] sm:$0xff] }
 0x244   :  { %v9556_v7 = vpop.f32.mrf.mxu0  ;;  %9855 = vmatmul.mubr.msk.f32.gmra.mxu0 %vm18_vm0, %v6555_v48  ;;  %v13633_v13 = vld [vmem:[#allocation43_spill] sm:$0xff] }
 0x245   :  { %v9606_v49 = vpop.f32.mrf.mxu1  ;;  %9905 = vmatmul.mubr.msk.f32.gmra.mxu1 %vm18_vm0, %v12216_v51  ;;  %v12465_v18 = vadd.f32 %v4881_v26, %v4528_v5  ;;  %v4543_v54 = vadd.f32 %v9556_v7, %v12180_v60  ;;  %9857 = vmatprep.mubr.msk.f32.mxu0 %vm18_vm0, %v6556_v22  ;;  %v13631_v51 = vld [vmem:[#allocation42_spill] sm:$0xff]  ;;  %v13634_v22 = vld [vmem:[#allocation17_spill] sm:$0xff] }
 0x246   :  { %9907 = vmatprep.mubr.msk.f32.mxu1 %vm18_vm0, %v12224_v27  ;;  %v4537_v9 = vpop.f32.mrf.mxu0  ;;  %v6559_v27 = vld [vmem:[#allocation2 + $0x172] sm:$0xff]  ;;  %v6563_v7 = vld [vmem:[#allocation2 + $0x1a2] sm:$0xff] }
 0x247   :  { %v4891_v25 = vpop.f32.mrf.mxu1  ;;  %v12471_v31 = vadd.f32 %v9606_v49, %v4543_v54  ;;  %v4538_v6 = vadd.f32 %v4537_v9, %v13630_v50  ;;  %v6950_v9 = vld [vmem:[#allocation2 + $0x1b4] sm:$0xff] }
 0x248   :  { %v9559_v59 = vpop.f32.mrf.mxu0  ;;  %9858 = vmatmul.mubr.msk.f32.gmra.mxu0 %vm18_vm0, %v6557_v34  ;;  %v6564_v34 = vld [vmem:[#allocation2 + $0x1b2] sm:$0xff] }
 0x249   :  { %v9609_v20 = vpop.f32.mrf.mxu1  ;;  %9908 = vmatmul.mubr.msk.f32.gmra.mxu1 %vm18_vm0, %v12243_v28  ;;  %v12477_v60 = vadd.f32 %v4891_v25, %v4538_v6  ;;  %v4553_v43 = vadd.f32 %v9559_v59, %v13631_v51  ;;  %9860 = vmatprep.mubr.msk.f32.mxu0 %vm18_vm0, %v6558_v32  ;;  %v13636_v32 = vld [vmem:[#allocation20_spill] sm:$0xff] }
 0x24a   :  { %9910 = vmatprep.mubr.msk.f32.mxu1 %vm18_vm0, %v12250_v56  ;;  %v4547_v0 = vpop.f32.mrf.mxu0  ;;  %v6561_v56 = vld [vmem:[#allocation2 + $0x18a] sm:$0xff] }
 0x24b   :  { %v4901_v55 = vpop.f32.mrf.mxu1  ;;  %v12483_v58 = vadd.f32 %v9609_v20, %v4553_v43  ;;  %v4548_v23 = vadd.f32 %v4547_v0, %v12222_v2  ;;  %v6562_v2 = vld [vmem:[#allocation2 + $0x19a] sm:$0xff] }
 0x24c   :  { %v9562_v33 = vpop.f32.mrf.mxu0  ;;  %9861 = vmatmul.mubr.msk.f32.gmra.mxu0 %vm18_vm0, %v6559_v27  ;;  %v13637_v20 = vld [vmem:[#allocation18_spill] sm:$0xff] }
 0x24d   :  { %v9612_v47 = vpop.f32.mrf.mxu1  ;;  %9911 = vmatmul.mubr.msk.f32.gmra.mxu1 %vm18_vm0, %v12270_v44  ;;  %v12489_v28 = vadd.f32 %v4901_v55, %v4548_v23  ;;  %v4563_v4 = vadd.f32 %v9562_v33, %v13632_v1  ;;  %9863 = vmatprep.mubr.msk.f32.mxu0 %vm18_vm0, %v6560_v40  ;;  %v6565_v43 = vld [vmem:[#allocation2 + $0x1ba] sm:$0xff]  ;;  %v6566_v40 = vld [vmem:[#allocation2 + $0x1ca] sm:$0xff] }
 0x24e   :  { %9913 = vmatprep.mubr.msk.f32.mxu1 %vm18_vm0, %v12277_v8  ;;  %v4557_v15 = vpop.f32.mrf.mxu0  ;;  %v13635_v8 = vld [vmem:[#allocation44_spill] sm:$0xff]  ;;  %v6951_v27 = vld [vmem:[#allocation2 + $0x1bc] sm:$0xff] }
 0x24f   :  { %v4911_v36 = vpop.f32.mrf.mxu1  ;;  %v12495_v12 = vadd.f32 %v9612_v47, %v4563_v4  ;;  %v4558_v48 = vadd.f32 %v4557_v15, %v13633_v13  ;;  %v6952_v23 = vld [vmem:[#allocation2 + $0x1cc] sm:$0xff]  ;;  %v13639_v15 = vld [vmem:[#allocation45_spill] sm:$0xff] }
 0x250   :  { %v9565_v39 = vpop.f32.mrf.mxu0  ;;  %9864 = vmatmul.mubr.msk.f32.gmra.mxu0 %vm18_vm0, %v6561_v56  ;;  %v13638_v47 = vld [vmem:[#allocation19_spill] sm:$0xff]  ;;  %v6953_v13 = vld [vmem:[#allocation2 + $0x1d4] sm:$0xff] }
 0x251   :  { %v9615_v26 = vpop.f32.mrf.mxu1  ;;  %9914 = vmatmul.mubr.msk.f32.gmra.mxu1 %vm18_vm0, %v12296_v37  ;;  %v12501_v44 = vadd.f32 %v4911_v36, %v4558_v48  ;;  %v4573_v5 = vadd.f32 %v9565_v39, %v13634_v22  ;;  %9866 = vmatprep.mubr.msk.f32.mxu0 %vm18_vm0, %v6562_v2  ;;  %v6567_v2 = vld [vmem:[#allocation2 + $0x1d2] sm:$0xff] }
 0x252   :  { %9916 = vmatprep.mubr.msk.f32.mxu1 %vm18_vm0, %v13635_v8  ;;  %v4567_v49 = vpop.f32.mrf.mxu0 }
 0x253   :  { %v4921_v54 = vpop.f32.mrf.mxu1  ;;  %v12507_v25 = vadd.f32 %v9615_v26, %v4573_v5  ;;  %v4568_v50 = vadd.f32 %v4567_v49, %v13636_v32 }
 0x254   :  { %v9568_v6 = vpop.f32.mrf.mxu0  ;;  %9867 = vmatmul.mubr.msk.f32.gmra.mxu0 %vm18_vm0, %v6563_v7 }
 0x255   :  { %v9618_v37 = vpop.f32.mrf.mxu1  ;;  %9917 = vmatmul.mubr.msk.f32.gmra.mxu1 %vm18_vm0, %v12322_v29  ;;  %v12513_v59 = vadd.f32 %v4921_v54, %v4568_v50  ;;  %v4583_v51 = vadd.f32 %v9568_v6, %v13637_v20  ;;  %9869 = vmatprep.mubr.msk.f32.mxu0 %vm18_vm0, %v6564_v34 }
 0x256   :  { %9919 = vmatprep.mubr.msk.f32.mxu1 %vm18_vm0, %v6950_v9  ;;  %v4577_v0 = vpop.f32.mrf.mxu0 }
 0x257   :  { %v4931_v55 = vpop.f32.mrf.mxu1  ;;  %v12518_v33 = vadd.f32 %v9618_v37, %v4583_v51  ;;  %v4578_v1 = vadd.f32 %v4577_v0, %v13638_v47 }
 0x258   :  { %v9571_v4 = vpop.f32.mrf.mxu0  ;;  %9870 = vmatmul.mubr.msk.f32.gmra.mxu0 %vm18_vm0, %v6565_v43 }
 0x259   :  { %v9621_v29 = vpop.f32.mrf.mxu1  ;;  %9920 = vmatmul.mubr.msk.f32.gmra.mxu1 %vm18_vm0, %v6951_v27  ;;  %v12523_v56 = vadd.f32 %v4931_v55, %v4578_v1  ;;  %v4593_v36 = vadd.f32 %v9571_v4, %v13639_v15  ;;  %9872 = vmatprep.mubr.msk.f32.mxu0 %vm18_vm0, %v6566_v40 }
 0x25a   :  { %9922 = vmatprep.mubr.msk.f32.mxu1 %vm18_vm0, %v6952_v23  ;;  %v4587_v48 = vpop.f32.mrf.mxu0 }
 0x25b   :  { %v4941_v39 = vpop.f32.mrf.mxu1  ;;  %v12528_v26 = vadd.f32 %v9621_v29, %v4593_v36  ;;  %v4588_v22 = vadd.f32 %v4587_v48, %v12325_v35 }
 0x25c   :  { %v9574_v5 = vpop.f32.mrf.mxu0  ;;  %9873 = vmatmul.mubr.msk.f32.gmra.mxu0 %vm18_vm0, %v6567_v2 }
 0x25d   :  { %v9624_v8 = vpop.f32.mrf.mxu1  ;;  %9923 = vmatmul.mubr.msk.f32.gmra.mxu1 %vm18_vm0, %v6953_v13  ;;  %v12533_v7 = vadd.f32 %v4941_v39, %v4588_v22  ;;  %v4603_v49 = vadd.f32 %v9574_v5, %v12331_v46 }
 0x25e   :  { %v4597_v54 = vpop.f32.mrf.mxu0 }
 0x25f   :  { %v4951_v34 = vpop.f32.mrf.mxu1  ;;  %v12536_v9 = vadd.f32 %v9624_v8, %v4603_v49  ;;  %v4598_v32 = vadd.f32 %v4597_v54, %v12341_v41 }
 0x260   :  { %v9629_v50 = vpop.f32.mrf.mxu0 }
 0x261   :  { %v9679_v6 = vpop.f32.mrf.mxu1  ;;  %v12539_v37 = vadd.f32 %v4951_v34, %v4598_v32  ;;  %v5347_v35 = vadd.f32 %v9629_v50, %v12358_v19 }
 0x262   :  { %v5187_v20 = vpop.f32.mrf.mxu0 }
 0x263   :  { %v5573_v51 = vpop.f32.mrf.mxu1  ;;  %v12542_v43 = vadd.f32 %v9679_v6, %v5347_v35  ;;  %v5346_v27 = vadd.f32 %v5187_v20, %v12367_v52 }
 0x264   :  { %v9632_v0 = vpop.f32.mrf.mxu0 }
 0x265   :  { %v9682_v46 = vpop.f32.mrf.mxu1  ;;  %v12545_v55 = vadd.f32 %v5573_v51, %v5346_v27  ;;  %v5349_v40 = vadd.f32 %v9632_v0, %v12375_v57 }
 0x266   :  { %v5197_v23 = vpop.f32.mrf.mxu0 }
 0x267   :  { %v5583_v41 = vpop.f32.mrf.mxu1  ;;  %v12548_v47 = vadd.f32 %v9682_v46, %v5349_v40  ;;  %v5348_v1 = vadd.f32 %v5197_v23, %v12381_v38 }
 0x268   :  { %v9635_v4 = vpop.f32.mrf.mxu0 }
 0x269   :  { %v9685_v19 = vpop.f32.mrf.mxu1  ;;  %v12551_v29 = vadd.f32 %v5583_v41, %v5348_v1  ;;  %v5351_v15 = vadd.f32 %v9635_v4, %v12387_v61 }
 0x26a   :  { %v5207_v36 = vpop.f32.mrf.mxu0 }
 0x26b   :  { %v5593_v52 = vpop.f32.mrf.mxu1  ;;  %v12554_v2 = vadd.f32 %v9685_v19, %v5351_v15  ;;  %v5350_v13 = vadd.f32 %v5207_v36, %v12393_v16 }
 0x26c   :  { %v9638_v48 = vpop.f32.mrf.mxu0 }
 0x26d   :  { %v9688_v57 = vpop.f32.mrf.mxu1  ;;  %v12557_v39 = vadd.f32 %v5593_v52, %v5350_v13  ;;  %v5353_v22 = vadd.f32 %v9638_v48, %v12399_v62 }
 0x26e   :  { %v5217_v5 = vpop.f32.mrf.mxu0 }
 0x26f   :  { %v5603_v38 = vpop.f32.mrf.mxu1  ;;  %v12560_v8 = vadd.f32 %v9688_v57, %v5353_v22  ;;  %v5352_v49 = vadd.f32 %v5217_v5, %v12405_v45 }
 0x270   :  { %v9641_v54 = vpop.f32.mrf.mxu0 }
 0x271   :  { %v9691_v61 = vpop.f32.mrf.mxu1  ;;  %v12563_v34 = vadd.f32 %v5603_v38, %v5352_v49  ;;  %v5355_v32 = vadd.f32 %v9641_v54, %v12411_v21 }
 0x272   :  { %v5227_v50 = vpop.f32.mrf.mxu0 }
 0x273   :  { %v5613_v16 = vpop.f32.mrf.mxu1  ;;  %v12566_v6 = vadd.f32 %v9691_v61, %v5355_v32  ;;  %v5354_v35 = vadd.f32 %v5227_v50, %v12417_v53 }
 0x274   :  { %v9644_v20 = vpop.f32.mrf.mxu0 }
 0x275   :  { %v9694_v62 = vpop.f32.mrf.mxu1  ;;  %v12569_v51 = vadd.f32 %v5613_v16, %v5354_v35  ;;  %v5357_v27 = vadd.f32 %v9644_v20, %v12423_v3 }
 0x276   :  { %v5237_v0 = vpop.f32.mrf.mxu0 }
 0x277   :  { %v5623_v45 = vpop.f32.mrf.mxu1  ;;  %v12572_v46 = vadd.f32 %v9694_v62, %v5357_v27  ;;  %v5356_v40 = vadd.f32 %v5237_v0, %v12429_v10 }
 0x278   :  { %v9647_v23 = vpop.f32.mrf.mxu0 }
 0x279   :  { %v9697_v21 = vpop.f32.mrf.mxu1  ;;  %v12575_v41 = vadd.f32 %v5623_v45, %v5356_v40  ;;  %v5359_v1 = vadd.f32 %v9647_v23, %v12435_v63 }
 0x27a   :  { %v5247_v4 = vpop.f32.mrf.mxu0 }
 0x27b   :  { %v5633_v53 = vpop.f32.mrf.mxu1  ;;  %v12578_v19 = vadd.f32 %v9697_v21, %v5359_v1  ;;  %v5358_v15 = vadd.f32 %v5247_v4, %v12441_v11 }
 0x27c   :  { %v9650_v36 = vpop.f32.mrf.mxu0 }
 0x27d   :  { %v9700_v3 = vpop.f32.mrf.mxu1  ;;  %v12581_v52 = vadd.f32 %v5633_v53, %v5358_v15  ;;  %v5361_v13 = vadd.f32 %v9650_v36, %v12447_v30 }
 0x27e   :  { %v5257_v48 = vpop.f32.mrf.mxu0 }
 0x27f   :  { %v5643_v10 = vpop.f32.mrf.mxu1  ;;  %v12584_v57 = vadd.f32 %v9700_v3, %v5361_v13  ;;  %v5360_v22 = vadd.f32 %v5257_v48, %v12453_v17 }
 0x280   :  { %v9653_v5 = vpop.f32.mrf.mxu0 }
 0x281   :  { %v9703_v63 = vpop.f32.mrf.mxu1  ;;  %v12587_v38 = vadd.f32 %v5643_v10, %v5360_v22  ;;  %v5363_v49 = vadd.f32 %v9653_v5, %v12459_v14 }
 0x282   :  { %v5267_v54 = vpop.f32.mrf.mxu0 }
 0x283   :  { %v5653_v11 = vpop.f32.mrf.mxu1  ;;  %v12590_v61 = vadd.f32 %v9703_v63, %v5363_v49  ;;  %v5362_v32 = vadd.f32 %v5267_v54, %v12465_v18 }
 0x284   :  { %v9656_v50 = vpop.f32.mrf.mxu0 }
 0x285   :  { %v9706_v30 = vpop.f32.mrf.mxu1  ;;  %v12593_v16 = vadd.f32 %v5653_v11, %v5362_v32  ;;  %v5365_v35 = vadd.f32 %v9656_v50, %v12471_v31 }
 0x286   :  { %v5277_v20 = vpop.f32.mrf.mxu0 }
 0x287   :  { %v5663_v17 = vpop.f32.mrf.mxu1  ;;  %v12596_v62 = vadd.f32 %v9706_v30, %v5365_v35  ;;  %v5364_v27 = vadd.f32 %v5277_v20, %v12477_v60 }
 0x288   :  { %v9659_v0 = vpop.f32.mrf.mxu0 }
 0x289   :  { %v9709_v14 = vpop.f32.mrf.mxu1  ;;  %v12599_v45 = vadd.f32 %v5663_v17, %v5364_v27  ;;  %v5367_v40 = vadd.f32 %v9659_v0, %v12483_v58 }
 0x28a   :  { %v5287_v23 = vpop.f32.mrf.mxu0 }
 0x28b   :  { %v5673_v18 = vpop.f32.mrf.mxu1  ;;  %v12602_v21 = vadd.f32 %v9709_v14, %v5367_v40  ;;  %v5366_v1 = vadd.f32 %v5287_v23, %v12489_v28 }
 0x28c   :  { %v9662_v4 = vpop.f32.mrf.mxu0 }
 0x28d   :  { %13640 = vst [vmem:[#allocation24_spill] sm:$0xff] %v12602_v21  ;;  %v9712_v31 = vpop.f32.mrf.mxu1  ;;  %v12605_v53 = vadd.f32 %v5673_v18, %v5366_v1  ;;  %v5369_v15 = vadd.f32 %v9662_v4, %v12495_v12 }
 0x28e   :  { %v5297_v36 = vpop.f32.mrf.mxu0 }
 0x28f   :  { %13641 = vst [vmem:[#allocation47_spill] sm:$0xff] %v12605_v53  ;;  %v5683_v60 = vpop.f32.mrf.mxu1  ;;  %v12608_v3 = vadd.f32 %v9712_v31, %v5369_v15  ;;  %v5368_v13 = vadd.f32 %v5297_v36, %v12501_v44 }
 0x290   :  { %v9665_v48 = vpop.f32.mrf.mxu0 }
 0x291   :  { %13642 = vst [vmem:[#allocation26_spill] sm:$0xff] %v12608_v3  ;;  %v9715_v58 = vpop.f32.mrf.mxu1  ;;  %v12611_v10 = vadd.f32 %v5683_v60, %v5368_v13  ;;  %v5371_v22 = vadd.f32 %v9665_v48, %v12507_v25 }
 0x292   :  { %v5307_v5 = vpop.f32.mrf.mxu0 }
 0x293   :  { %13643 = vst [vmem:[#allocation27_spill] sm:$0xff] %v12611_v10  ;;  %v5693_v28 = vpop.f32.mrf.mxu1  ;;  %v12614_v63 = vadd.f32 %v9715_v58, %v5371_v22  ;;  %v5370_v49 = vadd.f32 %v5307_v5, %v12513_v59 }
 0x294   :  { %v9668_v54 = vpop.f32.mrf.mxu0 }
 0x295   :  { %13644 = vst [vmem:[#allocation46_spill] sm:$0xff] %v12614_v63  ;;  %v9718_v12 = vpop.f32.mrf.mxu1  ;;  %v12617_v11 = vadd.f32 %v5693_v28, %v5370_v49  ;;  %v5373_v32 = vadd.f32 %v9668_v54, %v12518_v33 }
 0x296   :  { %v5317_v50 = vpop.f32.mrf.mxu0 }
 0x297   :  { %13645 = vst [vmem:[#allocation48_spill] sm:$0xff] %v12617_v11  ;;  %v5703_v44 = vpop.f32.mrf.mxu1  ;;  %v12620_v30 = vadd.f32 %v9718_v12, %v5373_v32  ;;  %v5372_v35 = vadd.f32 %v5317_v50, %v12523_v56 }
 0x298   :  { %v9671_v20 = vpop.f32.mrf.mxu0 }
 0x299   :  { %13646 = vst [vmem:[#allocation49_spill] sm:$0xff] %v12620_v30  ;;  %v9721_v25 = vpop.f32.mrf.mxu1  ;;  %v12623_v17 = vadd.f32 %v5703_v44, %v5372_v35  ;;  %v5375_v27 = vadd.f32 %v9671_v20, %v12528_v26 }
 0x29a   :  { %v5327_v0 = vpop.f32.mrf.mxu0 }
 0x29b   :  { %13647 = vst [vmem:[#allocation28_spill] sm:$0xff] %v12623_v17  ;;  %v5713_v59 = vpop.f32.mrf.mxu1  ;;  %v12626_v14 = vadd.f32 %v9721_v25, %v5375_v27  ;;  %v5374_v40 = vadd.f32 %v5327_v0, %v12533_v7 }
 0x29c   :  { %v9674_v23 = vpop.f32.mrf.mxu0 }
 0x29d   :  { %13648 = vst [vmem:[#allocation29_spill] sm:$0xff] %v12626_v14  ;;  %v9724_v33 = vpop.f32.mrf.mxu1  ;;  %v12629_v18 = vadd.f32 %v5713_v59, %v5374_v40  ;;  %v5377_v1 = vadd.f32 %v9674_v23, %v12536_v9 }
 0x29e   :  { %v5337_v4 = vpop.f32.mrf.mxu0 }
 0x29f   :  { %13649 = vst [vmem:[#allocation30_spill] sm:$0xff] %v12629_v18  ;;  %v5723_v56 = vpop.f32.mrf.mxu1  ;;  %v12632_v31 = vadd.f32 %v9724_v33, %v5377_v1  ;;  %v5376_v15 = vadd.f32 %v5337_v4, %v12539_v37 }
 0x2a0   :  { %v9729_v36 = vpop.f32.mrf.mxu0 }
 0x2a1   :  { %13650 = vst [vmem:[#allocation50_spill] sm:$0xff] %v12632_v31  ;;  %v12635_v26 = vpop.f32.mrf.mxu1  ;;  %v12637_v60 = vadd.f32 %v5723_v56, %v5376_v15 }
 0x2a2   :  { %v5959_v13 = vpop.f32.mrf.mxu0 }
 0x2a3   :  { %13651 = vst [vmem:[#allocation31_spill] sm:$0xff] %v12637_v60  ;;  %v12639_v48 = vpop.f32.mrf.mxu1 }
 0x2a4   :  { %v9732_v7 = vpop.f32.mrf.mxu0 }
 0x2a5   :  { %v12641_v58 = vpop.f32.mrf.mxu1 }
 0x2a6   :  { %v5969_v22 = vpop.f32.mrf.mxu0 }
 0x2a7   :  { %v12643_v5 = vpop.f32.mrf.mxu1 }
 0x2a8   :  { %v9735_v9 = vpop.f32.mrf.mxu0 }
 0x2a9   :  { %v12645_v28 = vpop.f32.mrf.mxu1 }
 0x2aa   :  { %v5979_v49 = vpop.f32.mrf.mxu0 }
 0x2ab   :  { %v12647_v54 = vpop.f32.mrf.mxu1 }
 0x2ac   :  { %v9738_v37 = vpop.f32.mrf.mxu0 }
 0x2ad   :  { %v12649_v12 = vpop.f32.mrf.mxu1 }
 0x2ae   :  { %v5989_v32 = vpop.f32.mrf.mxu0 }
 0x2af   :  { %v12651_v50 = vpop.f32.mrf.mxu1 }
 0x2b0   :  { %v9741_v44 = vpop.f32.mrf.mxu0 }
 0x2b1   :  { %v12653_v35 = vpop.f32.mrf.mxu1 }
 0x2b2   :  { %v5999_v20 = vpop.f32.mrf.mxu0 }
 0x2b3   :  { %v12655_v25 = vpop.f32.mrf.mxu1 }
 0x2b4   :  { %v9744_v27 = vpop.f32.mrf.mxu0 }
 0x2b5   :  { %v12657_v0 = vpop.f32.mrf.mxu1 }
 0x2b6   :  { %v6009_v59 = vpop.f32.mrf.mxu0 }
 0x2b7   :  { %v12659_v40 = vpop.f32.mrf.mxu1 }
 0x2b8   :  { %v9747_v23 = vpop.f32.mrf.mxu0 }
 0x2b9   :  { %v12661_v33 = vpop.f32.mrf.mxu1 }
 0x2ba   :  { %v12663_v1 = vpop.f32.mrf.mxu0 }
 0x2bb   :  { %v12665_v4 = vpop.f32.mrf.mxu1 }
 0x2bc   :  { %13652 = vst [vmem:[#allocation32_spill] sm:$0xff] %v12665_v4  ;;  %v12667_v56 = vpop.f32.mrf.mxu0 }
 0x2bd   :  { %v12669_v15 = vpop.f32.mrf.mxu1 }
 0x2be   :  { %13653 = vst [vmem:[#allocation23_spill] sm:$0xff] %v12669_v15  ;;  %v12671_v24 = vpop.f32.mrf.mxu0 }
 0x2bf   :  { %v12673_v42 = vpop.f32.mrf.mxu1 }
 0x2c0   :  { %13654 = vst [vmem:[#allocation25_spill] sm:$0xff] %v12673_v42  ;;  %v12675_v60 = vpop.f32.mrf.mxu0 }
 0x2c1   :  { %v12677_v31 = vpop.f32.mrf.mxu1 }
 0x2c2   :  { %13655 = vst [vmem:[#allocation6_spill] sm:$0xff] %v12677_v31  ;;  %v12679_v18 = vpop.f32.mrf.mxu0 }
 0x2c3   :  { %v12681_v14 = vpop.f32.mrf.mxu1 }
 0x2c4   :  { %13656 = vst [vmem:[#allocation51_spill] sm:$0xff] %v12681_v14  ;;  %v12683_v17 = vpop.f32.mrf.mxu0 }
 0x2c5   :  { %v12685_v30 = vpop.f32.mrf.mxu1 }
 0x2c6   :  { %13657 = vst [vmem:[#allocation33_spill] sm:$0xff] %v12685_v30  ;;  %v12687_v11 = vpop.f32.mrf.mxu0 }
 0x2c7   :  { %v12689_v63 = vpop.f32.mrf.mxu1 }
 0x2c8   :  { %13658 = vst [vmem:[#allocation7_spill] sm:$0xff] %v12689_v63  ;;  %v12691_v10 = vpop.f32.mrf.mxu0 }
 0x2c9   :  { %13659 = vst [vmem:[#allocation54_spill] sm:$0xff] %v12691_v10  ;;  %v12693_v3 = vpop.f32.mrf.mxu1 }
 0x2ca   :  { %13660 = vst [vmem:[#allocation52_spill] sm:$0xff] %v12693_v3  ;;  %v12695_v53 = vpop.f32.mrf.mxu0 }
 0x2cb   :  { %13661 = vst [vmem:[#allocation34_spill] sm:$0xff] %v12695_v53  ;;  %v12697_v21 = vpop.f32.mrf.mxu1 }
 0x2cc   :  { %13662 = vst [vmem:[#allocation57_spill] sm:$0xff] %v12697_v21  ;;  %v12699_v31 = vpop.f32.mrf.mxu0 }
 0x2cd   :  { %13663 = vst [vmem:[#allocation53_spill] sm:$0xff] %v12699_v31  ;;  %v12701_v42 = vpop.f32.mrf.mxu1 }
 0x2ce   :  { %13664 = vst [vmem:[#allocation55_spill] sm:$0xff] %v12701_v42  ;;  %v12703_v14 = vpop.f32.mrf.mxu0 }
 0x2cf   :  { %13665 = vst [vmem:[#allocation56_spill] sm:$0xff] %v12703_v14  ;;  %v12705_v15 = vpop.f32.mrf.mxu1 }
 0x2d0   :  { %13666 = vst [vmem:[#allocation58_spill] sm:$0xff] %v12705_v15  ;;  %v12707_v30 = vpop.f32.mrf.mxu0 }
 0x2d1   :  { %13667 = vst [vmem:[#allocation8_spill] sm:$0xff] %v12707_v30  ;;  %v12709_v4 = vpop.f32.mrf.mxu1 }
 0x2d2   :  { %13668 = vst [vmem:[#allocation59_spill] sm:$0xff] %v12709_v4  ;;  %v12711_v63 = vpop.f32.mrf.mxu0 }
 0x2d3   :  { %13669 = vst [vmem:[#allocation35_spill] sm:$0xff] %v12711_v63  ;;  %v12713_v10 = vpop.f32.mrf.mxu1  ;;  %v6119_v63 = vadd.f32 %v9729_v36, %v12542_v43  ;;  %v6125_v36 = vadd.f32 %v9738_v37, %v12560_v8  ;;  %v6133_v37 = vadd.f32 %v12667_v56, %v12584_v57  ;;  %v6137_v57 = vadd.f32 %v12683_v17, %v12596_v62 }
 0x2d4   :  { %13670 = vst [vmem:[#allocation60_spill] sm:$0xff] %v12713_v10  ;;  %v12715_v3 = vpop.f32.mrf.mxu0 }
 0x2d5   :  { %13671 = vst [vmem:[#allocation36_spill] sm:$0xff] %v12715_v3  ;;  %v12717_v53 = vpop.f32.mrf.mxu1  ;;  %v6505_v43 = vadd.f32 %v12635_v26, %v6119_v63 }
 0x2d6   :  { %13672 = vst [vmem:[#allocation37_spill] sm:$0xff] %v12717_v53  ;;  %v12719_v21 = vpop.f32.mrf.mxu0  ;;  %v6118_v53 = vadd.f32 %v5959_v13, %v12545_v55  ;;  %v6127_v55 = vadd.f32 %v9741_v44, %v12566_v6 }
 0x2d7   :  { %13673 = vst [vmem:[#allocation61_spill] sm:$0xff] %v12719_v21  ;;  %v12721_v31 = vpop.f32.mrf.mxu1  ;;  %v6121_v21 = vadd.f32 %v9732_v7, %v12548_v47  ;;  %v6126_v47 = vadd.f32 %v5999_v20, %v12569_v51 }
 0x2d8   :  { %13674 = vst [vmem:[#allocation62_spill] sm:$0xff] %v12721_v31  ;;  %v12723_v42 = vpop.f32.mrf.mxu0  ;;  %v6120_v31 = vadd.f32 %v5969_v22, %v12551_v29  ;;  %v6129_v29 = vadd.f32 %v9744_v27, %v12572_v46  ;;  %v6504_v7 = vadd.f32 %v12639_v48, %v6118_v53  ;;  %v6131_v22 = vadd.f32 %v9747_v23, %v12578_v19 }
 0x2d9   :  { %13675 = vst [vmem:[#allocation10_spill] sm:$0xff] %v12723_v42  ;;  %v12725_v14 = vpop.f32.mrf.mxu1  ;;  %v6123_v42 = vadd.f32 %v9735_v9, %v12554_v2  ;;  %v6128_v2 = vadd.f32 %v6009_v59, %v12575_v41  ;;  %v6507_v63 = vadd.f32 %v12641_v58, %v6121_v21  ;;  %v6511_v46 = vadd.f32 %v12649_v12, %v6125_v36  ;;  %v13681_v36 = vld [vmem:[#allocation25_spill] sm:$0xff] }
 0x2da   :  { %13676 = vst [vmem:[#allocation11_spill] sm:$0xff] %v12725_v14  ;;  %v12727_v15 = vpop.f32.mrf.mxu0  ;;  %v6122_v14 = vadd.f32 %v5979_v49, %v12557_v39  ;;  %v6506_v8 = vadd.f32 %v12643_v5, %v6120_v31  ;;  %v12763_v19 = vadd.f32 %v12653_v35, %v6127_v55  ;;  %v12766_v21 = vadd.f32 %v12655_v25, %v6126_v47 }
 0x2db   :  { %13677 = vst [vmem:[#allocation12_spill] sm:$0xff] %v12727_v15  ;;  %v12729_v30 = vpop.f32.mrf.mxu1  ;;  %v12769_v31 = vadd.f32 %v12657_v0, %v6129_v29  ;;  %v12775_v58 = vadd.f32 %v12661_v33, %v6131_v22  ;;  %v6132_v12 = vadd.f32 %v12671_v24, %v12587_v38  ;;  %v13679_v33 = vld [vmem:[#allocation32_spill] sm:$0xff]  ;;  %v13682_v29 = vld [vmem:[#allocation6_spill] sm:$0xff] }
 0x2dc   :  { %v12732_v4 = vpop.f32.mrf.mxu0  ;;  %v6508_v6 = vadd.f32 %v12647_v54, %v6122_v14  ;;  %v6130_v54 = vadd.f32 %v12663_v1, %v12581_v52  ;;  %v6134_v52 = vadd.f32 %v12679_v18, %v12593_v16  ;;  %v13680_v16 = vld [vmem:[#allocation23_spill] sm:$0xff] }
 0x2dd   :  { %v12734_v10 = vpop.f32.mrf.mxu1  ;;  %v12802_v18 = vadd.f32 %v13680_v16, %v6133_v37  ;;  %v12805_v55 = vadd.f32 %v13681_v36, %v6132_v12  ;;  %v13690_v36 = vld [vmem:[#allocation52_spill] sm:$0xff] }
 0x2de   :  { %13678 = vst [vmem:[#allocation9_spill] sm:$0xff] %v12734_v10  ;;  %v12741_v3 = vpop.f32.mrf.mxu0  ;;  %v6124_v10 = vadd.f32 %v5989_v32, %v12563_v34  ;;  %v6509_v34 = vadd.f32 %v12645_v28, %v6123_v42  ;;  %v12772_v42 = vadd.f32 %v12659_v40, %v6128_v2  ;;  %v6135_v32 = vadd.f32 %v12675_v60, %v12590_v61 }
 0x2df   :  { %v12743_v15 = vpop.f32.mrf.mxu1  ;;  %v6136_v60 = vadd.f32 %v12687_v11, %v12599_v45  ;;  %v12799_v1 = vadd.f32 %v13679_v33, %v6130_v54 }
 0x2e0   :  { %v9829_v13 = vpop.f32.mrf.mxu0  ;;  %v12760_v41 = vadd.f32 %v12651_v50, %v6124_v10  ;;  %v12808_v2 = vadd.f32 %v13682_v29, %v6135_v32 }
 0x2e1   :  { %v9879_v39 = vpop.f32.mrf.mxu1  ;;  %v6891_v9 = vadd.f32 %v9829_v13, %v6505_v43  ;;  %v13683_v13 = vld [vmem:[#allocation51_spill] sm:$0xff] }
 0x2e2   :  { %v6731_v51 = vpop.f32.mrf.mxu0 }
 0x2e3   :  { %v7117_v26 = vpop.f32.mrf.mxu1  ;;  %v7277_v49 = vadd.f32 %v9879_v39, %v6891_v9  ;;  %v6890_v53 = vadd.f32 %v6731_v51, %v6504_v7  ;;  %v12811_v39 = vadd.f32 %v13683_v13, %v6134_v52  ;;  %v13685_v51 = vld [vmem:[#allocation7_spill] sm:$0xff] }
 0x2e4   :  { %v9832_v14 = vpop.f32.mrf.mxu0 }
 0x2e5   :  { %v9882_v48 = vpop.f32.mrf.mxu1  ;;  %7309 = vst.msk [vmem:[#allocation3 + $0x108] sm:$0xff] %vm3596_vm2, %v7277_v49  ;;  %v7411_v10 = vmul.f32 %v7277_v49, %v7277_v49  ;;  %v7276_v5 = vadd.f32 %v7117_v26, %v6890_v53  ;;  %v6893_v28 = vadd.f32 %v9832_v14, %v6507_v63  ;;  %v7341_v35 = vsel %vm3596_vm2, %v7277_v49, 0.0  ;;  %v13686_v53 = vld [vmem:[#allocation24_spill] sm:$0xff]  ;;  %v13687_v14 = vld [vmem:[#allocation54_spill] sm:$0xff] }
 0x2e6   :  { %v6741_v50 = vpop.f32.mrf.mxu0  ;;  %v12819_v26 = vadd.f32 %v13685_v51, %v6136_v60 }
 0x2e7   :  { %v7127_v44 = vpop.f32.mrf.mxu1  ;;  %7308 = vst.msk [vmem:[#allocation3 + $0x100] sm:$0xff] %vm3596_vm2, %v7276_v5  ;;  %v7340_v20 = vsel %vm3596_vm2, %v7276_v5, 0.0  ;;  %v7410_v25 = vmul.f32 %v7276_v5, %v7276_v5  ;;  %v7279_v27 = vadd.f32 %v9882_v48, %v6893_v28  ;;  %v6892_v38 = vadd.f32 %v6741_v50, %v6506_v8  ;;  %v13684_v8 = vld [vmem:[#allocation33_spill] sm:$0xff] }
 0x2e8   :  { %v7342_v24 = vadd.f32 %v7341_v35, %v7340_v20  ;;  %v9835_v0 = vpop.f32.mrf.mxu0  ;;  %v7443_v59 = vsel %vm3596_vm2, %v7411_v10, 0.0  ;;  %v6139_v48 = vadd.f32 %v13687_v14, %v13686_v53 }
 0x2e9   :  { %v9885_v61 = vpop.f32.mrf.mxu1  ;;  %v7442_v40 = vsel %vm3596_vm2, %v7410_v25, 0.0  ;;  %7311 = vst.msk [vmem:[#allocation3 + $0x118] sm:$0xff] %vm3596_vm2, %v7279_v27  ;;  %v6895_v23 = vadd.f32 %v9835_v0, %v6509_v34  ;;  %v7278_v17 = vadd.f32 %v7127_v44, %v6892_v38  ;;  %v7413_v45 = vmul.f32 %v7279_v27, %v7279_v27  ;;  %v13689_v38 = vld [vmem:[#allocation34_spill] sm:$0xff] }
 0x2ea   :  { %v7444_v62 = vadd.f32 %v7443_v59, %v7442_v40  ;;  %v6751_v56 = vpop.f32.mrf.mxu0  ;;  %v12816_v34 = vadd.f32 %v13684_v8, %v6137_v57  ;;  %v7345_v10 = vsel %vm3596_vm2, %v7279_v27, 0.0 }
 0x2eb   :  { %v7137_v43 = vpop.f32.mrf.mxu1  ;;  %v7281_v11 = vadd.f32 %v9885_v61, %v6895_v23  ;;  %v6894_v47 = vadd.f32 %v6751_v56, %v6508_v6  ;;  %7310 = vst.msk [vmem:[#allocation3 + $0x110] sm:$0xff] %vm3596_vm2, %v7278_v17  ;;  %v7343_v7 = vsel %vm3596_vm2, %v7278_v17, 0.0  ;;  %v7412_v22 = vmul.f32 %v7278_v17, %v7278_v17 }
 0x2ec   :  { %v9838_v9 = vpop.f32.mrf.mxu0  ;;  %v7344_v6 = vadd.f32 %v7343_v7, %v7342_v24  ;;  %v7447_v12 = vsel %vm3596_vm2, %v7413_v45, 0.0  ;;  %v13688_v24 = vld [vmem:[#allocation47_spill] sm:$0xff]  ;;  %v12838_v45 = vadd.f32 %v13690_v36, %v6139_v48  ;;  %v13691_v7 = vld [vmem:[#allocation57_spill] sm:$0xff] }
 0x2ed   :  { %v9888_v63 = vpop.f32.mrf.mxu1  ;;  %7313 = vst.msk [vmem:[#allocation3 + $0x128] sm:$0xff] %vm3596_vm2, %v7281_v11  ;;  %v7280_v49 = vadd.f32 %v7137_v43, %v6894_v47  ;;  %v7445_v5 = vsel %vm3596_vm2, %v7412_v22, 0.0  ;;  %v6897_v28 = vadd.f32 %v9838_v9, %v6511_v46  ;;  %v7415_v35 = vmul.f32 %v7281_v11, %v7281_v11  ;;  %v13692_v9 = vld [vmem:[#allocation26_spill] sm:$0xff] }
 0x2ee   :  { %v6761_v54 = vpop.f32.mrf.mxu0  ;;  %v7446_v32 = vadd.f32 %v7445_v5, %v7444_v62  ;;  %v7346_v50 = vadd.f32 %v7345_v10, %v7344_v6  ;;  %v6138_v46 = vadd.f32 %v13689_v38, %v13688_v24  ;;  %v7349_v59 = vsel %vm3596_vm2, %v7281_v11, 0.0  ;;  %v13695_v24 = vld [vmem:[#allocation56_spill] sm:$0xff] }
 0x2ef   :  { %v7147_v37 = vpop.f32.mrf.mxu1  ;;  %7312 = vst.msk [vmem:[#allocation3 + $0x120] sm:$0xff] %vm3596_vm2, %v7280_v49  ;;  %v7347_v44 = vsel %vm3596_vm2, %v7280_v49, 0.0  ;;  %v7414_v20 = vmul.f32 %v7280_v49, %v7280_v49  ;;  %v7283_v25 = vadd.f32 %v9888_v63, %v6897_v28  ;;  %v6896_v52 = vadd.f32 %v6761_v54, %v12760_v41  ;;  %v13693_v63 = vld [vmem:[#allocation53_spill] sm:$0xff] }
 0x2f0   :  { %v9841_v57 = vpop.f32.mrf.mxu0  ;;  %v7348_v0 = vadd.f32 %v7347_v44, %v7346_v50  ;;  %v7448_v61 = vadd.f32 %v7447_v12, %v7446_v32  ;;  %v12844_v22 = vadd.f32 %v13691_v7, %v6138_v46  ;;  %v6141_v8 = vadd.f32 %v13693_v63, %v13692_v9  ;;  %v13696_v46 = vld [vmem:[#allocation46_spill] sm:$0xff] }
 0x2f1   :  { %v9891_v27 = vpop.f32.mrf.mxu1  ;;  %v6899_v60 = vadd.f32 %v9841_v57, %v12763_v19  ;;  %v7449_v40 = vsel %vm3596_vm2, %v7414_v20, 0.0  ;;  %7315 = vst.msk [vmem:[#allocation3 + $0x138] sm:$0xff] %vm3596_vm2, %v7283_v25  ;;  %v7417_v23 = vmul.f32 %v7283_v25, %v7283_v25  ;;  %v7282_v33 = vadd.f32 %v7147_v37, %v6896_v52 }
 0x2f2   :  { %v6771_v16 = vpop.f32.mrf.mxu0  ;;  %v7450_v41 = vadd.f32 %v7449_v40, %v7448_v61  ;;  %v7350_v17 = vadd.f32 %v7349_v59, %v7348_v0  ;;  %v7451_v19 = vsel %vm3596_vm2, %v7415_v35, 0.0  ;;  %v7353_v6 = vsel %vm3596_vm2, %v7283_v25, 0.0  ;;  %v13697_v0 = vld [vmem:[#allocation8_spill] sm:$0xff] }
 0x2f3   :  { %v7157_v62 = vpop.f32.mrf.mxu1  ;;  %v7285_v56 = vadd.f32 %v9891_v27, %v6899_v60  ;;  %v6898_v43 = vadd.f32 %v6771_v16, %v12766_v21  ;;  %7314 = vst.msk [vmem:[#allocation3 + $0x130] sm:$0xff] %vm3596_vm2, %v7282_v33  ;;  %v7351_v11 = vsel %vm3596_vm2, %v7282_v33, 0.0  ;;  %v7416_v47 = vmul.f32 %v7282_v33, %v7282_v33  ;;  %v13694_v27 = vld [vmem:[#allocation27_spill] sm:$0xff] }
 0x2f4   :  { %v9844_v29 = vpop.f32.mrf.mxu0  ;;  %v7352_v51 = vadd.f32 %v7351_v11, %v7350_v17  ;;  %v7452_v21 = vadd.f32 %v7451_v19, %v7450_v41  ;;  %v7455_v5 = vsel %vm3596_vm2, %v7417_v23, 0.0  ;;  %v6140_v38 = vadd.f32 %v13695_v24, %v13694_v27 }
 0x2f5   :  { %v9894_v13 = vpop.f32.mrf.mxu1  ;;  %7317 = vst.msk [vmem:[#allocation3 + $0x148] sm:$0xff] %vm3596_vm2, %v7285_v56  ;;  %v7453_v49 = vsel %vm3596_vm2, %v7416_v47, 0.0  ;;  %v7284_v53 = vadd.f32 %v7157_v62, %v6898_v43  ;;  %v6901_v14 = vadd.f32 %v9844_v29, %v12769_v31  ;;  %v7419_v12 = vmul.f32 %v7285_v56, %v7285_v56 }
 0x2f6   :  { %v6781_v48 = vpop.f32.mrf.mxu0  ;;  %v7454_v28 = vadd.f32 %v7453_v49, %v7452_v21  ;;  %v7354_v54 = vadd.f32 %v7353_v6, %v7352_v51  ;;  %v7357_v61 = vsel %vm3596_vm2, %v7285_v56, 0.0 }
 0x2f7   :  { %v7167_v10 = vpop.f32.mrf.mxu1  ;;  %v6900_v37 = vadd.f32 %v6781_v48, %v12772_v42  ;;  %7316 = vst.msk [vmem:[#allocation3 + $0x140] sm:$0xff] %vm3596_vm2, %v7284_v53  ;;  %v7355_v32 = vsel %vm3596_vm2, %v7284_v53, 0.0  ;;  %v7418_v50 = vmul.f32 %v7284_v53, %v7284_v53  ;;  %v7287_v44 = vadd.f32 %v9894_v13, %v6901_v14  ;;  %v13698_v13 = vld [vmem:[#allocation55_spill] sm:$0xff]  ;;  %v13699_v48 = vld [vmem:[#allocation58_spill] sm:$0xff] }
 0x2f8   :  { %v9847_v35 = vpop.f32.mrf.mxu0  ;;  %v7356_v25 = vadd.f32 %v7355_v32, %v7354_v54  ;;  %v7456_v52 = vadd.f32 %v7455_v5, %v7454_v28  ;;  %v6143_v42 = vadd.f32 %v13697_v0, %v13696_v46  ;;  %v7459_v62 = vsel %vm3596_vm2, %v7419_v12, 0.0  ;;  %v13701_v32 = vld [vmem:[#allocation48_spill] sm:$0xff] }
 0x2f9   :  { %v9897_v20 = vpop.f32.mrf.mxu1  ;;  %v7286_v31 = vadd.f32 %v7167_v10, %v6900_v37  ;;  %v6903_v57 = vadd.f32 %v9847_v35, %v12775_v58  ;;  %v7457_v60 = vsel %vm3596_vm2, %v7418_v50, 0.0  ;;  %7319 = vst.msk [vmem:[#allocation3 + $0x158] sm:$0xff] %vm3596_vm2, %v7287_v44  ;;  %v7421_v41 = vmul.f32 %v7287_v44, %v7287_v44  ;;  %v13700_v37 = vld [vmem:[#allocation59_spill] sm:$0xff] }
 0x2fa   :  { %v6791_v59 = vpop.f32.mrf.mxu0  ;;  %v7458_v23 = vadd.f32 %v7457_v60, %v7456_v52  ;;  %v7358_v33 = vadd.f32 %v7357_v61, %v7356_v25  ;;  %v12871_v7 = vadd.f32 %v13698_v13, %v6141_v8  ;;  %v7361_v9 = vsel %vm3596_vm2, %v7287_v44, 0.0  ;;  %v13702_v50 = vld [vmem:[#allocation35_spill] sm:$0xff] }
 0x2fb   :  { %v7177_v40 = vpop.f32.mrf.mxu1  ;;  %7318 = vst.msk [vmem:[#allocation3 + $0x150] sm:$0xff] %vm3596_vm2, %v7286_v31  ;;  %v7359_v58 = vsel %vm3596_vm2, %v7286_v31, 0.0  ;;  %v7420_v16 = vmul.f32 %v7286_v31, %v7286_v31  ;;  %v7289_v17 = vadd.f32 %v9897_v20, %v6903_v57  ;;  %v6902_v43 = vadd.f32 %v6791_v59, %v12799_v1 }
 0x2fc   :  { %v9850_v56 = vpop.f32.mrf.mxu0  ;;  %v7360_v19 = vadd.f32 %v7359_v58, %v7358_v33  ;;  %v7460_v11 = vadd.f32 %v7459_v62, %v7458_v23  ;;  %v12877_v10 = vadd.f32 %v13699_v48, %v6140_v38  ;;  %v12883_v12 = vadd.f32 %v13700_v37, %v6143_v42  ;;  %v13703_v62 = vld [vmem:[#allocation49_spill] sm:$0xff] }
 0x2fd   :  { %v9900_v36 = vpop.f32.mrf.mxu1  ;;  %v7461_v47 = vsel %vm3596_vm2, %v7420_v16, 0.0  ;;  %v6905_v29 = vadd.f32 %v9850_v56, %v12802_v18  ;;  %7321 = vst.msk [vmem:[#allocation3 + $0x168] sm:$0xff] %vm3596_vm2, %v7289_v17  ;;  %v7423_v63 = vmul.f32 %v7289_v17, %v7289_v17  ;;  %v7288_v51 = vadd.f32 %v7177_v40, %v6902_v43  ;;  %v13705_v43 = vld [vmem:[#allocation28_spill] sm:$0xff]  ;;  %v13706_v56 = vld [vmem:[#allocation61_spill] sm:$0xff] }
 0x2fe   :  { %v6801_v21 = vpop.f32.mrf.mxu0  ;;  %v7462_v1 = vadd.f32 %v7461_v47, %v7460_v11  ;;  %v7362_v49 = vadd.f32 %v7361_v9, %v7360_v19  ;;  %v7463_v18 = vsel %vm3596_vm2, %v7421_v41, 0.0  ;;  %v6142_v44 = vadd.f32 %v13702_v50, %v13701_v32  ;;  %v13704_v41 = vld [vmem:[#allocation36_spill] sm:$0xff] }
 0x2ff   :  { %v7187_v6 = vpop.f32.mrf.mxu1  ;;  %v7291_v53 = vadd.f32 %v9900_v36, %v6905_v29  ;;  %v6904_v14 = vadd.f32 %v6801_v21, %v12805_v55  ;;  %7320 = vst.msk [vmem:[#allocation3 + $0x160] sm:$0xff] %vm3596_vm2, %v7288_v51  ;;  %v7363_v8 = vsel %vm3596_vm2, %v7288_v51, 0.0  ;;  %v7422_v5 = vmul.f32 %v7288_v51, %v7288_v51 }
 0x300   :  { %v9853_v28 = vpop.f32.mrf.mxu0  ;;  %v7364_v35 = vadd.f32 %v7363_v8, %v7362_v49  ;;  %v7464_v55 = vadd.f32 %v7463_v18, %v7462_v1  ;;  %v7365_v20 = vsel %vm3596_vm2, %v7289_v17, 0.0  ;;  %v7467_v24 = vsel %vm3596_vm2, %v7423_v63, 0.0  ;;  %v13707_v8 = vld [vmem:[#allocation60_spill] sm:$0xff] }
 0x301   :  { %v9903_v54 = vpop.f32.mrf.mxu1  ;;  %7323 = vst.msk [vmem:[#allocation3 + $0x178] sm:$0xff] %vm3596_vm2, %v7291_v53  ;;  %v7465_v25 = vsel %vm3596_vm2, %v7422_v5, 0.0  ;;  %v7290_v52 = vadd.f32 %v7187_v6, %v6904_v14  ;;  %v6907_v31 = vadd.f32 %v9853_v28, %v12808_v2  ;;  %v7425_v42 = vmul.f32 %v7291_v53, %v7291_v53 }
 0x302   :  { %v6811_v57 = vpop.f32.mrf.mxu0  ;;  %v7466_v38 = vadd.f32 %v7465_v25, %v7464_v55  ;;  %v7366_v46 = vadd.f32 %v7365_v20, %v7364_v35  ;;  %v6145_v17 = vadd.f32 %v13704_v41, %v13703_v62  ;;  %v7369_v36 = vsel %vm3596_vm2, %v7291_v53, 0.0  ;;  %v13708_v25 = vld [vmem:[#allocation37_spill] sm:$0xff] }
 0x303   :  { %v7197_v27 = vpop.f32.mrf.mxu1  ;;  %v6906_v0 = vadd.f32 %v6811_v57, %v12811_v39  ;;  %7322 = vst.msk [vmem:[#allocation3 + $0x170] sm:$0xff] %vm3596_vm2, %v7290_v52  ;;  %v7367_v61 = vsel %vm3596_vm2, %v7290_v52, 0.0  ;;  %v7424_v60 = vmul.f32 %v7290_v52, %v7290_v52  ;;  %v7293_v59 = vadd.f32 %v9903_v54, %v6907_v31 }
 0x304   :  { %v9856_v40 = vpop.f32.mrf.mxu0  ;;  %v7368_v33 = vadd.f32 %v7367_v61, %v7366_v46  ;;  %v7468_v58 = vadd.f32 %v7467_v24, %v7466_v38  ;;  %v6144_v39 = vadd.f32 %v13706_v56, %v13705_v43  ;;  %v7471_v63 = vsel %vm3596_vm2, %v7425_v42, 0.0  ;;  %v13709_v24 = vld [vmem:[#allocation62_spill] sm:$0xff]  ;;  %v13710_v46 = vld [vmem:[#allocation29_spill] sm:$0xff] }
 0x305   :  { %v9906_v23 = vpop.f32.mrf.mxu1  ;;  %v7292_v2 = vadd.f32 %v7197_v27, %v6906_v0  ;;  %v6909_v16 = vadd.f32 %v9856_v40, %v12816_v34  ;;  %v7469_v19 = vsel %vm3596_vm2, %v7424_v60, 0.0  ;;  %7325 = vst.msk [vmem:[#allocation3 + $0x188] sm:$0xff] %vm3596_vm2, %v7293_v59  ;;  %v7427_v51 = vmul.f32 %v7293_v59, %v7293_v59  ;;  %v13711_v0 = vld [vmem:[#allocation10_spill] sm:$0xff] }
 0x306   :  { %v6821_v11 = vpop.f32.mrf.mxu0  ;;  %v7470_v29 = vadd.f32 %v7469_v19, %v7468_v58  ;;  %v7370_v13 = vadd.f32 %v7369_v36, %v7368_v33  ;;  %v6528_v5 = vadd.f32 %v13707_v8, %v6142_v44  ;;  %v7373_v28 = vsel %vm3596_vm2, %v7293_v59, 0.0 }
 0x307   :  { %v7207_v47 = vpop.f32.mrf.mxu1  ;;  %7324 = vst.msk [vmem:[#allocation3 + $0x180] sm:$0xff] %vm3596_vm2, %v7292_v2  ;;  %v7371_v34 = vsel %vm3596_vm2, %v7292_v2, 0.0  ;;  %v7426_v9 = vmul.f32 %v7292_v2, %v7292_v2  ;;  %v7295_v21 = vadd.f32 %v9906_v23, %v6909_v16  ;;  %v6908_v6 = vadd.f32 %v6821_v11, %v12819_v26 }
 0x308   :  { %v9859_v1 = vpop.f32.mrf.mxu0  ;;  %v7372_v53 = vadd.f32 %v7371_v34, %v7370_v13  ;;  %v7472_v14 = vadd.f32 %v7471_v63, %v7470_v29  ;;  %v6531_v52 = vadd.f32 %v13708_v25, %v6145_v17  ;;  %v7475_v31 = vsel %vm3596_vm2, %v7427_v51, 0.0  ;;  %v13712_v13 = vld [vmem:[#allocation30_spill] sm:$0xff]  ;;  %v13713_v34 = vld [vmem:[#allocation12_spill] sm:$0xff] }
 0x309   :  { %v9909_v49 = vpop.f32.mrf.mxu1  ;;  %v7473_v48 = vsel %vm3596_vm2, %v7426_v9, 0.0  ;;  %v6911_v18 = vadd.f32 %v9859_v1, %v12838_v45  ;;  %7327 = vst.msk [vmem:[#allocation3 + $0x198] sm:$0xff] %vm3596_vm2, %v7295_v21  ;;  %v7429_v54 = vmul.f32 %v7295_v21, %v7295_v21  ;;  %v7294_v37 = vadd.f32 %v7207_v47, %v6908_v6  ;;  %v13714_v63 = vld [vmem:[#allocation50_spill] sm:$0xff] }
 0x30a   :  { %v6831_v32 = vpop.f32.mrf.mxu0  ;;  %v7474_v35 = vadd.f32 %v7473_v48, %v7472_v14  ;;  %v7374_v26 = vadd.f32 %v7373_v28, %v7372_v53  ;;  %v6530_v38 = vadd.f32 %v13709_v24, %v6144_v39  ;;  %v6147_v42 = vadd.f32 %v13711_v0, %v13710_v46 }
 0x30b   :  { %v7217_v50 = vpop.f32.mrf.mxu1  ;;  %v7297_v55 = vadd.f32 %v9909_v49, %v6911_v18  ;;  %v6910_v20 = vadd.f32 %v6831_v32, %v12844_v22  ;;  %7326 = vst.msk [vmem:[#allocation3 + $0x190] sm:$0xff] %vm3596_vm2, %v7294_v37  ;;  %v7375_v45 = vsel %vm3596_vm2, %v7294_v37, 0.0  ;;  %v7428_v44 = vmul.f32 %v7294_v37, %v7294_v37 }
 0x30c   :  { %v9862_v57 = vpop.f32.mrf.mxu0  ;;  %v7376_v61 = vadd.f32 %v7375_v45, %v7374_v26  ;;  %v7476_v60 = vadd.f32 %v7475_v31, %v7474_v35  ;;  %v7377_v22 = vsel %vm3596_vm2, %v7295_v21, 0.0  ;;  %v7479_v2 = vsel %vm3596_vm2, %v7429_v54, 0.0  ;;  %v13715_v26 = vld [vmem:[#allocation11_spill] sm:$0xff] }
 0x30d   :  { %v9912_v27 = vpop.f32.mrf.mxu1  ;;  %7329 = vst.msk [vmem:[#allocation3 + $0x1a8] sm:$0xff] %vm3596_vm2, %v7297_v55  ;;  %v7477_v59 = vsel %vm3596_vm2, %v7428_v44, 0.0  ;;  %v7296_v40 = vadd.f32 %v7217_v50, %v6910_v20  ;;  %v6913_v23 = vadd.f32 %v9862_v57, %v12871_v7  ;;  %v7431_v17 = vmul.f32 %v7297_v55, %v7297_v55 }
 0x30e   :  { %v6841_v33 = vpop.f32.mrf.mxu0  ;;  %v7478_v16 = vadd.f32 %v7477_v59, %v7476_v60  ;;  %v7378_v62 = vadd.f32 %v7377_v22, %v7376_v61  ;;  %v6146_v9 = vadd.f32 %v13713_v34, %v13712_v13  ;;  %v7381_v51 = vsel %vm3596_vm2, %v7297_v55, 0.0  ;;  %v13716_v22 = vld [vmem:[#allocation9_spill] sm:$0xff] }
 0x30f   :  { %v7227_v58 = vpop.f32.mrf.mxu1  ;;  %v6912_v41 = vadd.f32 %v6841_v33, %v12877_v10  ;;  %7328 = vst.msk [vmem:[#allocation3 + $0x1a0] sm:$0xff] %vm3596_vm2, %v7296_v40  ;;  %v7379_v43 = vsel %vm3596_vm2, %v7296_v40, 0.0  ;;  %v7430_v56 = vmul.f32 %v7296_v40, %v7296_v40  ;;  %v7299_v39 = vadd.f32 %v9912_v27, %v6913_v23  ;;  %v13717_v40 = vld [vmem:[#allocation31_spill] sm:$0xff] }
 0x310   :  { %v9865_v36 = vpop.f32.mrf.mxu0  ;;  %v7380_v11 = vadd.f32 %v7379_v43, %v7378_v62  ;;  %v7480_v47 = vadd.f32 %v7479_v2, %v7478_v16  ;;  %v6149_v10 = vadd.f32 %v12732_v4, %v13714_v63  ;;  %v7483_v48 = vsel %vm3596_vm2, %v7431_v17, 0.0  ;;  %v13718_v63 = vld [vmem:[#allocation21_spill] sm:$0xff] }
 0x311   :  { %v9915_v19 = vpop.f32.mrf.mxu1  ;;  %v7298_v7 = vadd.f32 %v7227_v58, %v6912_v41  ;;  %v6915_v29 = vadd.f32 %v9865_v36, %v12883_v12  ;;  %v7481_v21 = vsel %vm3596_vm2, %v7430_v56, 0.0  ;;  %7331 = vst.msk [vmem:[#allocation3 + $0x1b8] sm:$0xff] %vm3596_vm2, %v7299_v39  ;;  %v7433_v18 = vmul.f32 %v7299_v39, %v7299_v39 }
 0x312   :  { %v6851_v6 = vpop.f32.mrf.mxu0  ;;  %v7482_v49 = vadd.f32 %v7481_v21, %v7480_v47  ;;  %v7382_v53 = vadd.f32 %v7381_v51, %v7380_v11  ;;  %v6533_v55 = vadd.f32 %v13715_v26, %v6147_v42  ;;  %v7385_v20 = vsel %vm3596_vm2, %v7299_v39, 0.0 }
 0x313   :  { %v7237_v1 = vpop.f32.mrf.mxu1  ;;  %7330 = vst.msk [vmem:[#allocation3 + $0x1b0] sm:$0xff] %vm3596_vm2, %v7298_v7  ;;  %v7383_v12 = vsel %vm3596_vm2, %v7298_v7, 0.0  ;;  %v7432_v14 = vmul.f32 %v7298_v7, %v7298_v7  ;;  %v7301_v8 = vadd.f32 %v9915_v19, %v6915_v29  ;;  %v6914_v4 = vadd.f32 %v6851_v6, %v6528_v5 }
 0x314   :  { %v9868_v28 = vpop.f32.mrf.mxu0  ;;  %v7384_v37 = vadd.f32 %v7383_v12, %v7382_v53  ;;  %v7484_v32 = vadd.f32 %v7483_v48, %v7482_v49  ;;  %v6532_v46 = vadd.f32 %v12729_v30, %v6146_v9  ;;  %v7487_v0 = vsel %vm3596_vm2, %v7433_v18, 0.0 }
 0x315   :  { %v9918_v54 = vpop.f32.mrf.mxu1  ;;  %v7485_v50 = vsel %vm3596_vm2, %v7432_v14, 0.0  ;;  %v6917_v35 = vadd.f32 %v9868_v28, %v6531_v52  ;;  %7333 = vst.msk [vmem:[#allocation3 + $0x1c8] sm:$0xff] %vm3596_vm2, %v7301_v8  ;;  %v7435_v25 = vmul.f32 %v7301_v8, %v7301_v8  ;;  %v7300_v31 = vadd.f32 %v7237_v1, %v6914_v4 }
 0x316   :  { %v6861_v45 = vpop.f32.mrf.mxu0  ;;  %v7486_v57 = vadd.f32 %v7485_v50, %v7484_v32  ;;  %v7386_v27 = vadd.f32 %v7385_v20, %v7384_v37  ;;  %v6535_v59 = vadd.f32 %v13716_v22, %v6149_v10  ;;  %v6148_v23 = vadd.f32 %v12741_v3, %v13717_v40 }
 0x317   :  { %v7247_v44 = vpop.f32.mrf.mxu1  ;;  %v7303_v5 = vadd.f32 %v9918_v54, %v6917_v35  ;;  %v6916_v24 = vadd.f32 %v6861_v45, %v6530_v38  ;;  %7332 = vst.msk [vmem:[#allocation3 + $0x1c0] sm:$0xff] %vm3596_vm2, %v7300_v31  ;;  %v7387_v52 = vsel %vm3596_vm2, %v7300_v31, 0.0  ;;  %v7434_v42 = vmul.f32 %v7300_v31, %v7300_v31 }
 0x318   :  { %v9871_v61 = vpop.f32.mrf.mxu0  ;;  %v7388_v33 = vadd.f32 %v7387_v52, %v7386_v27  ;;  %v7488_v58 = vadd.f32 %v7487_v0, %v7486_v57  ;;  %v7389_v30 = vsel %vm3596_vm2, %v7301_v8, 0.0  ;;  %v7491_v17 = vsel %vm3596_vm2, %v7435_v25, 0.0 }
 0x319   :  { %v9921_v60 = vpop.f32.mrf.mxu1  ;;  %7335 = vst.msk [vmem:[#allocation3 + $0x1d8] sm:$0xff] %vm3596_vm2, %v7303_v5  ;;  %v7489_v38 = vsel %vm3596_vm2, %v7434_v42, 0.0  ;;  %v7302_v2 = vadd.f32 %v7247_v44, %v6916_v24  ;;  %v6919_v16 = vadd.f32 %v9871_v61, %v6533_v55  ;;  %v7437_v36 = vmul.f32 %v7303_v5, %v7303_v5 }
 0x31a   :  { %v6871_v62 = vpop.f32.mrf.mxu0  ;;  %v7490_v43 = vadd.f32 %v7489_v38, %v7488_v58  ;;  %v7390_v56 = vadd.f32 %v7389_v30, %v7388_v33  ;;  %v3692_v10 = vrot.slane %v13718_v63, 4  ;;  %v6534_v51 = vadd.f32 %v12743_v15, %v6148_v23  ;;  %v13719_v15 = vld [vmem:[#allocation22_spill] sm:$0xff] }
 0x31b   :  { %v7257_v41 = vpop.f32.mrf.mxu1  ;;  %v6918_v39 = vadd.f32 %v6871_v62, %v6532_v46  ;;  %7334 = vst.msk [vmem:[#allocation3 + $0x1d0] sm:$0xff] %vm3596_vm2, %v7302_v2  ;;  %v7391_v3 = vsel %vm3596_vm2, %v7302_v2, 0.0  ;;  %v7436_v19 = vmul.f32 %v7302_v2, %v7302_v2  ;;  %v7305_v11 = vadd.f32 %v9921_v60, %v6919_v16 }
 0x31c   :  { %v9874_v47 = vpop.f32.mrf.mxu0  ;;  %v7392_v7 = vadd.f32 %v7391_v3, %v7390_v56  ;;  %v7492_v29 = vadd.f32 %v7491_v17, %v7490_v43  ;;  %v7393_v21 = vsel %vm3596_vm2, %v7303_v5, 0.0  ;;  %v7495_v48 = vsel %vm3596_vm2, %v7437_v36, 0.0 }
 0x31d   :  { %v7304_v13 = vadd.f32 %v7257_v41, %v6918_v39  ;;  %v6921_v34 = vadd.f32 %v9874_v47, %v6535_v59  ;;  %v9924_v9 = vpop.f32.mrf.mxu1  ;;  %v7493_v6 = vsel %vm3596_vm2, %v7436_v19, 0.0  ;;  %7337 = vst.msk [vmem:[#allocation3 + $0x1e8] sm:$0xff] %vm3596_vm2, %v7305_v11  ;;  %v7439_v18 = vmul.f32 %v7305_v11, %v7305_v11 }
 0x31e   :  { %v6881_v1 = vpop.f32.mrf.mxu0  ;;  %v7494_v49 = vadd.f32 %v7493_v6, %v7492_v29  ;;  %v7394_v53 = vadd.f32 %v7393_v21, %v7392_v7  ;;  %v3794_v28 = vrot.slane %v13719_v15, 4  ;;  %v7397_v35 = vsel %vm3596_vm2, %v7305_v11, 0.0  ;;  %v7516_v21 = vld [vmem:[%s13372_s2] sm:$0x1]  ;;  %s9954_s2 = smov [#allocation3]  }
 0x31f   :  { %7336 = vst.msk [vmem:[#allocation3 + $0x1e0] sm:$0xff] %vm3596_vm2, %v7304_v13  ;;  %v7395_v12 = vsel %vm3596_vm2, %v7304_v13, 0.0  ;;  %v7438_v14 = vmul.f32 %v7304_v13, %v7304_v13  ;;  %v7307_v8 = vadd.f32 %v9924_v9, %v6921_v34  ;;  %v6920_v4 = vadd.f32 %v6881_v1, %v6534_v51  ;;  %v7267_v50 = vpop.f32.mrf.mxu1 }
 0x320   :  { %v7396_v54 = vadd.f32 %v7395_v12, %v7394_v53  ;;  %v7496_v37 = vadd.f32 %v7495_v48, %v7494_v49  ;;  %v3693_v55 = vadd.f32 %v3692_v10, %v13718_v63  ;;  %v7499_v31 = vsel %vm3596_vm2, %v7439_v18, 0.0  ;;  %v7524_v53 = vld [vmem:[#allocation3 + $0x8] sm:$0xff]  ;;  %v7523_v12 = vld [vmem:[#allocation3] sm:$0xff]  ;;  %v7526_v48 = vld [vmem:[#allocation3 + $0x18] sm:$0xff] }
 0x321   :  { %v7497_v32 = vsel %vm3596_vm2, %v7438_v14, 0.0  ;;  %7339 = vst.msk [vmem:[#allocation3 + $0x1f8] sm:$0xff] %vm3596_vm2, %v7307_v8  ;;  %v7306_v26 = vadd.f32 %v7267_v50, %v6920_v4  ;;  %v7441_v45 = vmul.f32 %v7307_v8, %v7307_v8  ;;  %v3795_v27 = vadd.f32 %v3794_v28, %v13719_v15  ;;  %v7520_v14 = vld [vmem:[%s13373_s3] sm:$0x1]  ;;  %v7525_v18 = vld [vmem:[#allocation3 + $0x10] sm:$0xff]  ;;  %v7532_v50 = vld [vmem:[#allocation3 + $0x48] sm:$0xff] }
 0x322   :  { %v7498_v20 = vadd.f32 %v7497_v32, %v7496_v37  ;;  %v7398_v25 = vadd.f32 %v7397_v35, %v7396_v54  ;;  %v7401_v46 = vsel %vm3596_vm2, %v7307_v8, 0.0  ;;  %v3694_v52 = vrot.slane %v3693_v55, 2  ;;  %v7528_v8 = vld [vmem:[#allocation3 + $0x28] sm:$0xff]  ;;  %v7527_v4 = vld [vmem:[#allocation3 + $0x20] sm:$0xff]  ;;  %v7530_v54 = vld [vmem:[#allocation3 + $0x38] sm:$0xff]  ;;  %s7796_s3 = sshll.u32 %s9954_s2, 4  ;;  %s7797_s3 = int_to_ptr.vmem [resolvable:$true] %s7796_s3 }
 0x323   :  { %7338 = vst.msk [vmem:[#allocation3 + $0x1f0] sm:$0xff] %vm3596_vm2, %v7306_v26  ;;  %v7399_v44 = vsel %vm3596_vm2, %v7306_v26, 0.0  ;;  %v7440_v57 = vmul.f32 %v7306_v26, %v7306_v26  ;;  %v7503_v60 = vsel %vm3596_vm2, %v7441_v45, 0.0  ;;  %v3796_v22 = vrot.slane %v3795_v27, 2  ;;  %v7529_v37 = vld [vmem:[#allocation3 + $0x30] sm:$0xff]  ;;  %v7531_v35 = vld [vmem:[#allocation3 + $0x40] sm:$0xff]  ;;  %p9936_p1 = scmp.lt.s32.totalorder %s7797_s3, %s7797_s3 }
 0x324   :  { %v7400_v5 = vadd.f32 %v7399_v44, %v7398_v25  ;;  %v7500_v24 = vadd.f32 %v7499_v31, %v7498_v20  ;;  %v3695_v23 = vadd.f32 %v3694_v52, %v3693_v55  ;;  %v7556_v10 = vlaneseq  ;;  %v7534_v26 = vld [vmem:[#allocation3 + $0x58] sm:$0xff]  ;;  %v7533_v55 = vld [vmem:[#allocation3 + $0x50] sm:$0xff]  ;;  %v7536_v44 = vld [vmem:[#allocation3 + $0x68] sm:$0xff]  ;;  %s9931_s25 = scalar_lea.vmem %s7797_s3, 8192 }
 0x325   :  { %v7501_v0 = vsel %vm3596_vm2, %v7440_v57, 0.0  ;;  %v3797_v30 = vadd.f32 %v3796_v22, %v3795_v27  ;;  %v7535_v57 = vld [vmem:[#allocation3 + $0x60] sm:$0xff]  ;;  %v7538_v27 = vld [vmem:[#allocation3 + $0x78] sm:$0xff]  ;;  %v7541_v22 = vld [vmem:[#allocation3 + $0x90] sm:$0xff]  ;;  %p9932_p0 = scmp.ne.s32.totalorder %s7797_s3, %s9931_s25  ;;  %p9937_p2 = scmp.lt.s32.totalorder %s9931_s25, %s9931_s25 }
 0x326   :  { %v7402_v42 = vadd.f32 %v7401_v46, %v7400_v5  ;;  %v7502_v61 = vadd.f32 %v7501_v0, %v7500_v24  ;;  %v3696_v16 = vrot.slane %v3695_v23, 1  ;;  %v7557_v51 = vshrl.u32 %v7556_v10, 7  ;;  %v7537_v5 = vld [vmem:[#allocation3 + $0x70] sm:$0xff] }
 0x327   :  { %v3798_v17 = vrot.slane %v3797_v30, 1  ;;  %p9938_p3 = por %p9937_p2, %p9936_p1 }
 0x328   :  { %v7403_v59 = vrot.slane %v7402_v42, 4  ;;  %v7504_v40 = vadd.f32 %v7503_v60, %v7502_v61  ;;  %v3697_v39 = vadd.f32 %v3696_v16, %v3695_v23  ;;  %v7558_v6 = vsub.s32 0, %v7557_v51  ;;  %v7539_v61 = vld [vmem:[#allocation3 + $0x80] sm:$0xff]  ;;  %v7542_v60 = vld [vmem:[#allocation3 + $0x98] sm:$0xff] }
 0x329   :  { %v3799_v19 = vadd.f32 %v3798_v17, %v3797_v30  ;;  %v7543_v30 = vld [vmem:[#allocation3 + $0xa0] sm:$0xff]  ;;  %p9939_p4 = pnand %p9938_p3, %p9932_p0 }
 0x32a   :  { %v7404_v33 = vadd.f32 %v7403_v59, %v7402_v42  ;;  %v7505_v58 = vrot.slane %v7504_v40, 4  ;;  %v7693_v32 = vld [vmem:[#allocation3 + $0x1f0] sm:$0xff]  ;;  %v7540_v42 = vld [vmem:[#allocation3 + $0x88] sm:$0xff] }
 0x32c   :  { %v7405_v38 = vrot.slane %v7404_v33, 2  ;;  %v7506_v2 = vadd.f32 %v7505_v58, %v7504_v40  ;;  %v7544_v58 = vld [vmem:[#allocation3 + $0xa8] sm:$0xff] }
 0x32e   :  { %v7406_v62 = vadd.f32 %v7405_v38, %v7404_v33  ;;  %v7507_v41 = vrot.slane %v7506_v2, 2  ;;  %v7546_v38 = vld [vmem:[#allocation3 + $0xb8] sm:$0xff] }
 0x330   :  { %v7407_v43 = vrot.slane %v7406_v62, 1  ;;  %v7508_v56 = vadd.f32 %v7507_v41, %v7506_v2  ;;  %v7545_v2 = vld [vmem:[#allocation3 + $0xb0] sm:$0xff] }
 0x332   :  { %v7408_v36 = vadd.f32 %v7407_v43, %v7406_v62  ;;  %v7509_v3 = vrot.slane %v7508_v56, 1  ;;  %v7548_v43 = vld [vmem:[#allocation3 + $0xc8] sm:$0xff] }
 0x334   :  { %v7409_v11 = vadd.f32 %v7408_v36, %v3697_v39  ;;  %v7510_v47 = vadd.f32 %v7509_v3, %v7508_v56  ;;  %v7547_v56 = vld [vmem:[#allocation3 + $0xc0] sm:$0xff]  ;;  %v7550_v39 = vld [vmem:[#allocation3 + $0xd8] sm:$0xff]  ;;  %v7549_v36 = vld [vmem:[#allocation3 + $0xd0] sm:$0xff] }
 0x336   :  { %v7511_v7 = vadd.f32 %v7510_v47, %v3799_v19  ;;  %v7512_v29 = vmul.f32 0.001953125, %v7409_v11 }
 0x338   :  { %v7513_v13 = vmul.f32 0.001953125, %v7511_v7  ;;  %v7514_v34 = vmul.f32 %v7512_v29, %v7512_v29  ;;  %v7552_v7 = vld [vmem:[#allocation3 + $0xe8] sm:$0xff] }
 0x33a   :  { %v7515_v9 = vsub.f32 %v7513_v13, %v7514_v34  ;;  %v7554_v13 = vld [vmem:[#allocation3 + $0xf8] sm:$0xff]  ;;  %v7553_v34 = vld [vmem:[#allocation3 + $0xf0] sm:$0xff] }
 0x33c   :  { %v7517_v63 = vadd.f32 1e-05, %v7515_v9 }
 0x33e   :  { %9929 = vrsqrt.f32 %v7517_v63 }
 0x34b   :  { %v9930_v1 = vpop.eup %9929 }
 0x34c   :  { %v7519_v49 = vmul.f32 %v9930_v1, %v7516_v21  ;;  %v7664_v21 = vld [vmem:[#allocation3 + $0x108] sm:$0xff]  ;;  %v7666_v1 = vld [vmem:[#allocation3 + $0x118] sm:$0xff] }
 0x34e   :  { %v7521_v15 = vmul.f32 %v7519_v49, %v7512_v29  ;;  %v12982_v28 = vrot.slane %v7519_v49, %v7558_v6  ;;  %v7551_v29 = vld [vmem:[#allocation3 + $0xe0] sm:$0xff]  ;;  %v7665_v49 = vld [vmem:[#allocation3 + $0x110] sm:$0xff] }
 0x350   :  { %v7522_v20 = vsub.f32 %v7520_v14, %v7521_v15  ;;  %v7725_v25 = vmul.f32 %v7693_v32, %v12982_v28  ;;  %v12986_v31 = vmul.f32 %v12982_v28, %v7523_v12  ;;  %v12989_v45 = vmul.f32 %v12982_v28, %v7524_v53 }
 0x351   :  { %v12992_v24 = vmul.f32 %v12982_v28, %v7525_v18  ;;  %v12995_v46 = vmul.f32 %v12982_v28, %v7526_v48  ;;  %v12998_v0 = vmul.f32 %v12982_v28, %v7527_v4  ;;  %v13001_v52 = vmul.f32 %v12982_v28, %v7528_v8  ;;  %v7668_v18 = vld [vmem:[#allocation3 + $0x128] sm:$0xff]  ;;  %v7667_v8 = vld [vmem:[#allocation3 + $0x120] sm:$0xff]  ;;  %v7670_v4 = vld [vmem:[#allocation3 + $0x138] sm:$0xff] }
 0x352   :  { %v13003_v59 = vrot.slane %v7522_v20, %v7558_v6  ;;  %v13006_v40 = vmul.f32 %v12982_v28, %v7529_v37  ;;  %v13009_v23 = vmul.f32 %v12982_v28, %v7530_v54  ;;  %v13012_v33 = vmul.f32 %v12982_v28, %v7531_v35  ;;  %v7663_v6 = vld [vmem:[#allocation3 + $0x100] sm:$0xff]  ;;  %v7672_v35 = vld [vmem:[#allocation3 + $0x148] sm:$0xff] }
 0x353   :  { %v13015_v16 = vmul.f32 %v12982_v28, %v7532_v50  ;;  %v13018_v62 = vmul.f32 %v12982_v28, %v7533_v55  ;;  %v13021_v41 = vmul.f32 %v12982_v28, %v7534_v26  ;;  %v13024_v17 = vmul.f32 %v12982_v28, %v7535_v57  ;;  %v7669_v50 = vld [vmem:[#allocation3 + $0x130] sm:$0xff]  ;;  %v7671_v26 = vld [vmem:[#allocation3 + $0x140] sm:$0xff]  ;;  %v7674_v57 = vld [vmem:[#allocation3 + $0x158] sm:$0xff] }
 0x354   :  { %v7757_v3 = vadd.f32 %v7725_v25, %v13003_v59  ;;  %v13028_v19 = vmul.f32 %v12982_v28, %v7536_v44  ;;  %v13031_v11 = vmul.f32 %v12982_v28, %v7537_v5  ;;  %v13034_v47 = vmul.f32 %v12982_v28, %v7538_v27  ;;  %v7673_v27 = vld [vmem:[#allocation3 + $0x150] sm:$0xff]  ;;  %v7676_v5 = vld [vmem:[#allocation3 + $0x168] sm:$0xff] }
 0x355   :  { %v13037_v9 = vmul.f32 %v12982_v28, %v7539_v61  ;;  %v13040_v63 = vmul.f32 %v12982_v28, %v7540_v42  ;;  %v13043_v10 = vmul.f32 %v12982_v28, %v7541_v22  ;;  %v13046_v51 = vmul.f32 %v12982_v28, %v7542_v60 }
 0x356   :  { %7789 = vst.msk [vmem:[#allocation3 + $0x1f0] sm:$0xff] %vm3596_vm2, %v7757_v3  ;;  %v13050_v53 = vmul.f32 %v12982_v28, %v7543_v30  ;;  %v13053_v12 = vmul.f32 %v12982_v28, %v7544_v58  ;;  %v13056_v14 = vmul.f32 %v12982_v28, %v7545_v2  ;;  %v13059_v48 = vmul.f32 %v12982_v28, %v7546_v38  ;;  %v7675_v58 = vld [vmem:[#allocation3 + $0x160] sm:$0xff]  ;;  %v7678_v30 = vld [vmem:[#allocation3 + $0x178] sm:$0xff]  ;;  %v7677_v38 = vld [vmem:[#allocation3 + $0x170] sm:$0xff] }
 0x357   :  { %v13062_v15 = vmul.f32 %v12982_v28, %v7547_v56  ;;  %v13065_v54 = vmul.f32 %v12982_v28, %v7548_v43  ;;  %v13068_v37 = vmul.f32 %v12982_v28, %v7549_v36  ;;  %v13071_v32 = vmul.f32 %v12982_v28, %v7550_v39  ;;  %v7680_v36 = vld [vmem:[#allocation3 + $0x188] sm:$0xff]  ;;  %v7679_v3 = vld [vmem:[#allocation3 + $0x180] sm:$0xff] }
 0x358   :  { %v13074_v55 = vmul.f32 %v12982_v28, %v7551_v29  ;;  %v13077_v20 = vmul.f32 %v12982_v28, %v7552_v7  ;;  %v13080_v25 = vmul.f32 %v12982_v28, %v7553_v34  ;;  %v13083_v44 = vmul.f32 %v12982_v28, %v7554_v13  ;;  %v7682_v7 = vld [vmem:[#allocation3 + $0x198] sm:$0xff] }
 0x359   :  { %v13086_v42 = vmul.f32 %v7663_v6, %v12982_v28  ;;  %v13089_v61 = vmul.f32 %v7664_v21, %v12982_v28  ;;  %v13092_v60 = vmul.f32 %v7665_v49, %v12982_v28  ;;  %v13095_v22 = vmul.f32 %v7666_v1, %v12982_v28  ;;  %v7681_v6 = vld [vmem:[#allocation3 + $0x190] sm:$0xff]  ;;  %v7684_v1 = vld [vmem:[#allocation3 + $0x1a8] sm:$0xff]  ;;  %v7683_v49 = vld [vmem:[#allocation3 + $0x1a0] sm:$0xff] }
 0x35a   :  { %v13098_v2 = vmul.f32 %v7667_v8, %v12982_v28  ;;  %v13101_v43 = vmul.f32 %v7668_v18, %v12982_v28  ;;  %v13104_v56 = vmul.f32 %v7669_v50, %v12982_v28  ;;  %v13107_v39 = vmul.f32 %v7670_v4, %v12982_v28 }
 0x35b   :  { %v13110_v29 = vmul.f32 %v7671_v26, %v12982_v28  ;;  %v13113_v13 = vmul.f32 %v7672_v35, %v12982_v28  ;;  %v13116_v34 = vmul.f32 %v7673_v27, %v12982_v28  ;;  %v13119_v21 = vmul.f32 %v7674_v57, %v12982_v28  ;;  %v7686_v35 = vld [vmem:[#allocation3 + $0x1b8] sm:$0xff]  ;;  %v7685_v26 = vld [vmem:[#allocation3 + $0x1b0] sm:$0xff]  ;;  %v7688_v27 = vld [vmem:[#allocation3 + $0x1c8] sm:$0xff] }
 0x35c   :  { %v13122_v18 = vmul.f32 %v7675_v58, %v12982_v28  ;;  %v13125_v8 = vmul.f32 %v7676_v5, %v12982_v28  ;;  %v13128_v4 = vmul.f32 %v7677_v38, %v12982_v28  ;;  %v13131_v50 = vmul.f32 %v7678_v30, %v12982_v28  ;;  %v7687_v38 = vld [vmem:[#allocation3 + $0x1c0] sm:$0xff] }
 0x35d   :  { %13720 = vst [vmem:[#allocation38_spill] sm:$0xff] %v13119_v21  ;;  %v13134_v57 = vmul.f32 %v7679_v3, %v12982_v28  ;;  %v13137_v21 = vmul.f32 %v7680_v36, %v12982_v28  ;;  %v13140_v58 = vmul.f32 %v7681_v6, %v12982_v28  ;;  %v13143_v5 = vmul.f32 %v7682_v7, %v12982_v28  ;;  %v7692_v6 = vld [vmem:[#allocation3 + $0x1e8] sm:$0xff] }
 0x35e   :  { %13721 = vst [vmem:[#allocation39_spill] sm:$0xff] %v13125_v8  ;;  %13722 = vst [vmem:[#allocation13_spill] sm:$0xff] %v13128_v4  ;;  %v7690_v4 = vld [vmem:[#allocation3 + $0x1d8] sm:$0xff]  ;;  %v7689_v8 = vld [vmem:[#allocation3 + $0x1d0] sm:$0xff]  ;;  %v13146_v30 = vmul.f32 %v7683_v49, %v12982_v28  ;;  %v13152_v3 = vmul.f32 %v7685_v26, %v12982_v28  ;;  %v13155_v36 = vmul.f32 %v7686_v35, %v12982_v28 }
 0x35f   :  { %13723 = vst [vmem:[#allocation40_spill] sm:$0xff] %v13131_v50  ;;  %13724 = vst [vmem:[#allocation41_spill] sm:$0xff] %v13137_v21  ;;  %v13149_v50 = vmul.f32 %v7684_v1, %v12982_v28  ;;  %v7694_v21 = vld [vmem:[#allocation3 + $0x1f8] sm:$0xff]  ;;  %v13158_v7 = vmul.f32 %v7687_v38, %v12982_v28  ;;  %v13164_v49 = vmul.f32 %v7689_v8, %v12982_v28 }
 0x360   :  { %13725 = vst [vmem:[#allocation14_spill] sm:$0xff] %v13140_v58  ;;  %13726 = vst [vmem:[#allocation15_spill] sm:$0xff] %v13143_v5  ;;  %v7691_v58 = vld [vmem:[#allocation3 + $0x1e0] sm:$0xff]  ;;  %v13161_v5 = vmul.f32 %v7688_v27, %v12982_v28  ;;  %v13167_v1 = vmul.f32 %v7690_v4, %v12982_v28  ;;  %v13173_v35 = vmul.f32 %v7692_v6, %v12982_v28 }
 0x361   :  { %13727 = vst [vmem:[#allocation42_spill] sm:$0xff] %v13155_v36  ;;  %v13170_v26 = vmul.f32 %v7691_v58, %v12982_v28  ;;  %v13176_v36 = vmul.f32 %v7694_v21, %v12982_v28  ;;  %v7599_v38 = vadd.f32 %v13003_v59, %v12986_v31  ;;  %v7600_v27 = vadd.f32 %v13003_v59, %v12989_v45 }
 0x362   :  { %v7601_v8 = vadd.f32 %v13003_v59, %v12992_v24  ;;  %v7602_v4 = vadd.f32 %v13003_v59, %v12995_v46  ;;  %v7603_v58 = vadd.f32 %v13003_v59, %v12998_v0  ;;  %v7604_v6 = vadd.f32 %v13003_v59, %v13001_v52 }
 0x363   :  { %v7605_v28 = vadd.f32 %v13003_v59, %v13006_v40  ;;  %v7606_v31 = vadd.f32 %v13003_v59, %v13009_v23  ;;  %v7607_v45 = vadd.f32 %v13003_v59, %v13012_v33  ;;  %7631 = vst.msk [vmem:[#allocation3] sm:$0xff] %vm3596_vm2, %v7599_v38  ;;  %v7608_v24 = vadd.f32 %v13003_v59, %v13015_v16 }
 0x364   :  { %v7609_v46 = vadd.f32 %v13003_v59, %v13018_v62  ;;  %v7610_v0 = vadd.f32 %v13003_v59, %v13021_v41  ;;  %v7611_v52 = vadd.f32 %v13003_v59, %v13024_v17  ;;  %7632 = vst.msk [vmem:[#allocation3 + $0x8] sm:$0xff] %vm3596_vm2, %v7600_v27  ;;  %7633 = vst.msk [vmem:[#allocation3 + $0x10] sm:$0xff] %vm3596_vm2, %v7601_v8 }
 0x365   :  { %7634 = vst.msk [vmem:[#allocation3 + $0x18] sm:$0xff] %vm3596_vm2, %v7602_v4  ;;  %7635 = vst.msk [vmem:[#allocation3 + $0x20] sm:$0xff] %vm3596_vm2, %v7603_v58  ;;  %v7612_v40 = vadd.f32 %v13003_v59, %v13028_v19  ;;  %v7613_v23 = vadd.f32 %v13003_v59, %v13031_v11  ;;  %v7614_v33 = vadd.f32 %v13003_v59, %v13034_v47 }
 0x366   :  { %v7615_v16 = vadd.f32 %v13003_v59, %v13037_v9  ;;  %7636 = vst.msk [vmem:[#allocation3 + $0x28] sm:$0xff] %vm3596_vm2, %v7604_v6  ;;  %7637 = vst.msk [vmem:[#allocation3 + $0x30] sm:$0xff] %vm3596_vm2, %v7605_v28  ;;  %v7616_v62 = vadd.f32 %v13003_v59, %v13040_v63  ;;  %v7617_v41 = vadd.f32 %v13003_v59, %v13043_v10  ;;  %v13731_v21 = vld [vmem:[#allocation40_spill] sm:$0xff]  ;;  %v13732_v27 = vld [vmem:[#allocation41_spill] sm:$0xff] }
 0x367   :  { %7638 = vst.msk [vmem:[#allocation3 + $0x38] sm:$0xff] %vm3596_vm2, %v7606_v31  ;;  %7639 = vst.msk [vmem:[#allocation3 + $0x40] sm:$0xff] %vm3596_vm2, %v7607_v45  ;;  %v7618_v17 = vadd.f32 %v13003_v59, %v13046_v51  ;;  %v7619_v19 = vadd.f32 %v13003_v59, %v13050_v53  ;;  %v7620_v11 = vadd.f32 %v13003_v59, %v13053_v12  ;;  %v13733_v4 = vld [vmem:[#allocation14_spill] sm:$0xff]  ;;  %v13734_v6 = vld [vmem:[#allocation15_spill] sm:$0xff] }
 0x368   :  { %7640 = vst.msk [vmem:[#allocation3 + $0x48] sm:$0xff] %vm3596_vm2, %v7608_v24  ;;  %7641 = vst.msk [vmem:[#allocation3 + $0x50] sm:$0xff] %vm3596_vm2, %v7609_v46  ;;  %v7621_v47 = vadd.f32 %v13003_v59, %v13056_v14  ;;  %v7622_v9 = vadd.f32 %v13003_v59, %v13059_v48  ;;  %v7623_v63 = vadd.f32 %v13003_v59, %v13062_v15  ;;  %v13735_v24 = vld [vmem:[#allocation42_spill] sm:$0xff] }
 0x369   :  { %7642 = vst.msk [vmem:[#allocation3 + $0x58] sm:$0xff] %vm3596_vm2, %v7610_v0  ;;  %7643 = vst.msk [vmem:[#allocation3 + $0x60] sm:$0xff] %vm3596_vm2, %v7611_v52  ;;  %v7624_v10 = vadd.f32 %v13003_v59, %v13065_v54  ;;  %v7625_v51 = vadd.f32 %v13003_v59, %v13068_v37  ;;  %v7626_v53 = vadd.f32 %v13003_v59, %v13071_v32 }
 0x36a   :  { %7644 = vst.msk [vmem:[#allocation3 + $0x68] sm:$0xff] %vm3596_vm2, %v7612_v40  ;;  %7645 = vst.msk [vmem:[#allocation3 + $0x70] sm:$0xff] %vm3596_vm2, %v7613_v23  ;;  %v7627_v12 = vadd.f32 %v13003_v59, %v13074_v55  ;;  %v7628_v14 = vadd.f32 %v13003_v59, %v13077_v20  ;;  %v7629_v48 = vadd.f32 %v13003_v59, %v13080_v25 }
 0x36b   :  { %7646 = vst.msk [vmem:[#allocation3 + $0x78] sm:$0xff] %vm3596_vm2, %v7614_v33  ;;  %7647 = vst.msk [vmem:[#allocation3 + $0x80] sm:$0xff] %vm3596_vm2, %v7615_v16  ;;  %v7630_v15 = vadd.f32 %v13003_v59, %v13083_v44  ;;  %v7727_v54 = vadd.f32 %v13086_v42, %v13003_v59  ;;  %v7728_v37 = vadd.f32 %v13089_v61, %v13003_v59 }
 0x36c   :  { %7648 = vst.msk [vmem:[#allocation3 + $0x88] sm:$0xff] %vm3596_vm2, %v7616_v62  ;;  %7649 = vst.msk [vmem:[#allocation3 + $0x90] sm:$0xff] %vm3596_vm2, %v7617_v41  ;;  %v7729_v32 = vadd.f32 %v13092_v60, %v13003_v59  ;;  %v7730_v55 = vadd.f32 %v13095_v22, %v13003_v59  ;;  %v7731_v20 = vadd.f32 %v13098_v2, %v13003_v59  ;;  %v13728_v2 = vld [vmem:[#allocation38_spill] sm:$0xff] }
 0x36d   :  { %7650 = vst.msk [vmem:[#allocation3 + $0x98] sm:$0xff] %vm3596_vm2, %v7618_v17  ;;  %7651 = vst.msk [vmem:[#allocation3 + $0xa0] sm:$0xff] %vm3596_vm2, %v7619_v19  ;;  %v7732_v25 = vadd.f32 %v13101_v43, %v13003_v59  ;;  %v7733_v44 = vadd.f32 %v13104_v56, %v13003_v59  ;;  %v7734_v42 = vadd.f32 %v13107_v39, %v13003_v59  ;;  %v13729_v39 = vld [vmem:[#allocation39_spill] sm:$0xff] }
 0x36e   :  { %7652 = vst.msk [vmem:[#allocation3 + $0xa8] sm:$0xff] %vm3596_vm2, %v7620_v11  ;;  %7653 = vst.msk [vmem:[#allocation3 + $0xb0] sm:$0xff] %vm3596_vm2, %v7621_v47  ;;  %v7735_v61 = vadd.f32 %v13110_v29, %v13003_v59  ;;  %v7736_v60 = vadd.f32 %v13113_v13, %v13003_v59  ;;  %v7737_v22 = vadd.f32 %v13116_v34, %v13003_v59  ;;  %v13730_v13 = vld [vmem:[#allocation13_spill] sm:$0xff] }
 0x36f   :  { %7654 = vst.msk [vmem:[#allocation3 + $0xb8] sm:$0xff] %vm3596_vm2, %v7622_v9  ;;  %7655 = vst.msk [vmem:[#allocation3 + $0xc0] sm:$0xff] %vm3596_vm2, %v7623_v63  ;;  %v7738_v43 = vadd.f32 %v13728_v2, %v13003_v59  ;;  %v7739_v56 = vadd.f32 %v13122_v18, %v13003_v59  ;;  %v7740_v29 = vadd.f32 %v13729_v39, %v13003_v59 }
 0x370   :  { %7656 = vst.msk [vmem:[#allocation3 + $0xc8] sm:$0xff] %vm3596_vm2, %v7624_v10  ;;  %7657 = vst.msk [vmem:[#allocation3 + $0xd0] sm:$0xff] %vm3596_vm2, %v7625_v51  ;;  %v7741_v34 = vadd.f32 %v13730_v13, %v13003_v59  ;;  %v7742_v38 = vadd.f32 %v13731_v21, %v13003_v59  ;;  %v7743_v18 = vadd.f32 %v13134_v57, %v13003_v59 }
 0x371   :  { %7658 = vst.msk [vmem:[#allocation3 + $0xd8] sm:$0xff] %vm3596_vm2, %v7626_v53  ;;  %7659 = vst.msk [vmem:[#allocation3 + $0xe0] sm:$0xff] %vm3596_vm2, %v7627_v12  ;;  %v7744_v8 = vadd.f32 %v13732_v27, %v13003_v59  ;;  %v7745_v58 = vadd.f32 %v13733_v4, %v13003_v59  ;;  %v7746_v28 = vadd.f32 %v13734_v6, %v13003_v59 }
 0x372   :  { %7660 = vst.msk [vmem:[#allocation3 + $0xe8] sm:$0xff] %vm3596_vm2, %v7628_v14  ;;  %7661 = vst.msk [vmem:[#allocation3 + $0xf0] sm:$0xff] %vm3596_vm2, %v7629_v48  ;;  %v7747_v57 = vadd.f32 %v13146_v30, %v13003_v59  ;;  %v7748_v31 = vadd.f32 %v13149_v50, %v13003_v59  ;;  %v7749_v45 = vadd.f32 %v13152_v3, %v13003_v59 }
 0x373   :  { %7662 = vst.msk [vmem:[#allocation3 + $0xf8] sm:$0xff] %vm3596_vm2, %v7630_v15  ;;  %7759 = vst.msk [vmem:[#allocation3 + $0x100] sm:$0xff] %vm3596_vm2, %v7727_v54  ;;  %v7750_v46 = vadd.f32 %v13735_v24, %v13003_v59  ;;  %v7751_v30 = vadd.f32 %v13158_v7, %v13003_v59  ;;  %v7752_v50 = vadd.f32 %v13161_v5, %v13003_v59 }
 0x374   :  { %7760 = vst.msk [vmem:[#allocation3 + $0x108] sm:$0xff] %vm3596_vm2, %v7728_v37  ;;  %7761 = vst.msk [vmem:[#allocation3 + $0x110] sm:$0xff] %vm3596_vm2, %v7729_v32  ;;  %v7753_v3 = vadd.f32 %v13164_v49, %v13003_v59  ;;  %v7754_v0 = vadd.f32 %v13167_v1, %v13003_v59  ;;  %v7755_v7 = vadd.f32 %v13170_v26, %v13003_v59 }
 0x375   :  { %7762 = vst.msk [vmem:[#allocation3 + $0x118] sm:$0xff] %vm3596_vm2, %v7730_v55  ;;  %7763 = vst.msk [vmem:[#allocation3 + $0x120] sm:$0xff] %vm3596_vm2, %v7731_v20  ;;  %v7756_v5 = vadd.f32 %v13173_v35, %v13003_v59  ;;  %v7758_v49 = vadd.f32 %v13176_v36, %v13003_v59 }
 0x376   :  { %7764 = vst.msk [vmem:[#allocation3 + $0x128] sm:$0xff] %vm3596_vm2, %v7732_v25  ;;  %7765 = vst.msk [vmem:[#allocation3 + $0x130] sm:$0xff] %vm3596_vm2, %v7733_v44 }
 0x377   :  { %7766 = vst.msk [vmem:[#allocation3 + $0x138] sm:$0xff] %vm3596_vm2, %v7734_v42  ;;  %7767 = vst.msk [vmem:[#allocation3 + $0x140] sm:$0xff] %vm3596_vm2, %v7735_v61 }
 0x378   :  { %7768 = vst.msk [vmem:[#allocation3 + $0x148] sm:$0xff] %vm3596_vm2, %v7736_v60  ;;  %7769 = vst.msk [vmem:[#allocation3 + $0x150] sm:$0xff] %vm3596_vm2, %v7737_v22 }
 0x379   :  { %7770 = vst.msk [vmem:[#allocation3 + $0x158] sm:$0xff] %vm3596_vm2, %v7738_v43  ;;  %7771 = vst.msk [vmem:[#allocation3 + $0x160] sm:$0xff] %vm3596_vm2, %v7739_v56 }
 0x37a   :  { %7772 = vst.msk [vmem:[#allocation3 + $0x168] sm:$0xff] %vm3596_vm2, %v7740_v29  ;;  %7773 = vst.msk [vmem:[#allocation3 + $0x170] sm:$0xff] %vm3596_vm2, %v7741_v34 }
 0x37b   :  { %7774 = vst.msk [vmem:[#allocation3 + $0x178] sm:$0xff] %vm3596_vm2, %v7742_v38  ;;  %7775 = vst.msk [vmem:[#allocation3 + $0x180] sm:$0xff] %vm3596_vm2, %v7743_v18 }
 0x37c   :  { %7776 = vst.msk [vmem:[#allocation3 + $0x188] sm:$0xff] %vm3596_vm2, %v7744_v8  ;;  %7777 = vst.msk [vmem:[#allocation3 + $0x190] sm:$0xff] %vm3596_vm2, %v7745_v58 }
 0x37d   :  { %7778 = vst.msk [vmem:[#allocation3 + $0x198] sm:$0xff] %vm3596_vm2, %v7746_v28  ;;  %7779 = vst.msk [vmem:[#allocation3 + $0x1a0] sm:$0xff] %vm3596_vm2, %v7747_v57 }
 0x37e   :  { %7780 = vst.msk [vmem:[#allocation3 + $0x1a8] sm:$0xff] %vm3596_vm2, %v7748_v31  ;;  %7781 = vst.msk [vmem:[#allocation3 + $0x1b0] sm:$0xff] %vm3596_vm2, %v7749_v45 }
 0x37f   :  { %7782 = vst.msk [vmem:[#allocation3 + $0x1b8] sm:$0xff] %vm3596_vm2, %v7750_v46  ;;  %7783 = vst.msk [vmem:[#allocation3 + $0x1c0] sm:$0xff] %vm3596_vm2, %v7751_v30 }
 0x380   :  { %7784 = vst.msk [vmem:[#allocation3 + $0x1c8] sm:$0xff] %vm3596_vm2, %v7752_v50  ;;  %7785 = vst.msk [vmem:[#allocation3 + $0x1d0] sm:$0xff] %vm3596_vm2, %v7753_v3 }
 0x381   :  { %7786 = vst.msk [vmem:[#allocation3 + $0x1d8] sm:$0xff] %vm3596_vm2, %v7754_v0  ;;  %7787 = vst.msk [vmem:[#allocation3 + $0x1e0] sm:$0xff] %vm3596_vm2, %v7755_v7 }
 0x382   :  { %7788 = vst.msk [vmem:[#allocation3 + $0x1e8] sm:$0xff] %vm3596_vm2, %v7756_v5  ;;  %7790 = vst.msk [vmem:[#allocation3 + $0x1f8] sm:$0xff] %vm3596_vm2, %v7758_v49 }
 0x383   :  { %9942 = shalt.err (!%p9939_p4)
}
 0x384   :  { %s9955_s26 = smov 128   ;;  %s9956_s27 = smov 8  }
 0x385   :  { %7802 = dma.vmem_to_hbm [thread:$0]  %s7797_s3, 8192, %s13374_s4, [#allocation4], %s9955_s26, %s9955_s26, %s9956_s27  }
 0x386   :  { %9951 = dma.done.wait [#allocation4], 8192  }
 0x387   :  { %9952 = vsyncadd [#allocation4], 4294959104 }
 0x388   :  { %7806 = vsyncpa [#allocation4], 1 }

</bundles_post_ra>
